<compile_context>
chip_gen: v5e
topology: v5e:2x2
jax: 0.10.0
libtpu: 0.0.40
codegen_flags: <defaults>
</compile_context>

<pallas_src>
import functools

import jax
import jax.numpy as jnp
from jax import lax
from jax.experimental import pallas as pl
from jax.experimental.pallas import tpu as pltpu


def _cdiv(a, b):
    return -(-a // b)


def _round_up(a, m):
    return _cdiv(a, m) * m


# ----------------------------------------------------------------------------
# Conv3d (stride 1, "same") on a corner-layout flat activation, with fused
# per-(n, c) masked sum / sum-of-squares (InstanceNorm statistics) and an
# optionally fused 1x1x1 shortcut conv.
# ----------------------------------------------------------------------------
def _conv_kernel(xb_ref, xm_ref, xf_ref, w_ref, m_ref, y_ref, st_ref,
                 *, offsets, tp, h, o_center):
    s = pl.program_id(1)
    ns = pl.num_programs(1)

    @pl.when(s == 0)
    def _():
        st_ref[0] = jnp.zeros_like(st_ref[0])

    # Zero the halos that fall outside the buffer (true values there are 0).
    zb = jnp.minimum(s, 1).astype(jnp.bfloat16)             # 0 on first tile
    zf = jnp.minimum(ns - 1 - s, 1).astype(jnp.bfloat16)    # 0 on last tile
    xm = xm_ref[0]                                           # (Cin, tp)
    xcat = jnp.concatenate([xb_ref[0] * zb, xm, xf_ref[0] * zf], axis=-1)

    base = h - o_center
    patch = jnp.concatenate(
        [xcat[:, base + o: base + o + tp] for o in offsets], axis=0)
    acc = jnp.dot(w_ref[...], patch, preferred_element_type=jnp.float32)
    y_ref[0] = acc.astype(jnp.bfloat16)

    m = m_ref[...]                                           # (1, tp) f32
    am = acc * m
    st_ref[0] += jnp.concatenate(
        [jnp.sum(am, axis=-1, keepdims=True),
         jnp.sum(acc * am, axis=-1, keepdims=True)], axis=-1)


def _conv_sc_kernel(xb_ref, xm_ref, xf_ref, w_ref, wsc_ref, m_ref,
                    y_ref, ysc_ref, st_ref, stsc_ref,
                    *, offsets, tp, h, o_center):
    s = pl.program_id(1)
    ns = pl.num_programs(1)

    @pl.when(s == 0)
    def _():
        st_ref[0] = jnp.zeros_like(st_ref[0])
        stsc_ref[0] = jnp.zeros_like(stsc_ref[0])

    zb = jnp.minimum(s, 1).astype(jnp.bfloat16)
    zf = jnp.minimum(ns - 1 - s, 1).astype(jnp.bfloat16)
    xm = xm_ref[0]
    xcat = jnp.concatenate([xb_ref[0] * zb, xm, xf_ref[0] * zf], axis=-1)

    base = h - o_center
    patch = jnp.concatenate(
        [xcat[:, base + o: base + o + tp] for o in offsets], axis=0)
    m = m_ref[...]

    acc = jnp.dot(w_ref[...], patch, preferred_element_type=jnp.float32)
    y_ref[0] = acc.astype(jnp.bfloat16)
    am = acc * m
    st_ref[0] += jnp.concatenate(
        [jnp.sum(am, axis=-1, keepdims=True),
         jnp.sum(acc * am, axis=-1, keepdims=True)], axis=-1)

    # Fused 1x1x1 shortcut conv: its "patch" is exactly the main tile.
    accs = jnp.dot(wsc_ref[...], xm, preferred_element_type=jnp.float32)
    ysc_ref[0] = accs.astype(jnp.bfloat16)
    ams = accs * m
    stsc_ref[0] += jnp.concatenate(
        [jnp.sum(ams, axis=-1, keepdims=True),
         jnp.sum(accs * ams, axis=-1, keepdims=True)], axis=-1)


def conv3d_stats(x_flat, mask, w, *, grid_dims, tp, h, wsc=None):
    """Conv3d stride 1 'same' on a corner-layout flat activation.

    x_flat: (N, Cin, L) bf16 — valid voxel (z,y,x) at flat index
            z*Hp*Wp + y*Wp + x, zeros everywhere else (trailing ring + tail).
    mask:   (1, L) f32 — 1 at valid voxels, 0 elsewhere.
    Returns (y bf16 (N,Cout,L), stat f32 (N,Cout,2)=[sum, sum_sq])
    plus (ysc, stat_sc) when the 1x1x1 shortcut weight `wsc` is fused.
    """
    N, Cin, L = x_flat.shape
    Dp, Hp, Wp = grid_dims
    Cout, _, kd, kh, kw = w.shape
    pd, ph, pw = (kd - 1) // 2, (kh - 1) // 2, (kw - 1) // 2
    taps = kd * kh * kw
    offsets = tuple(dz * Hp * Wp + dy * Wp + dx
                    for dz in range(kd) for dy in range(kh) for dx in range(kw))
    o_center = pd * Hp * Wp + ph * Wp + pw
    nt = L // tp
    r = tp // h

    w_flat = w.transpose(0, 2, 3, 4, 1).reshape(Cout, taps * Cin).astype(jnp.bfloat16)

    x_b = pl.BlockSpec((1, Cin, h), lambda n, s: (n, 0, jnp.maximum(s * r - 1, 0)))
    x_m = pl.BlockSpec((1, Cin, tp), lambda n, s: (n, 0, s))
    x_f = pl.BlockSpec((1, Cin, h),
                       lambda n, s: (n, 0, jnp.minimum((s + 1) * r, nt * r - 1)))
    w_spec = pl.BlockSpec((Cout, taps * Cin), lambda n, s: (0, 0))
    m_spec = pl.BlockSpec((1, tp), lambda n, s: (0, s))
    y_spec = pl.BlockSpec((1, Cout, tp), lambda n, s: (n, 0, s))
    st_spec = pl.BlockSpec((1, Cout, 2), lambda n, s: (n, 0, 0))
    y_sd = jax.ShapeDtypeStruct((N, Cout, L), jnp.bfloat16)
    st_sd = jax.ShapeDtypeStruct((N, Cout, 2), jnp.float32)
    # Spatial axis is "arbitrary" because the stat output block accumulates
    # across it; the batch axis stays "parallel" for megacore.
    dims = ("parallel", "arbitrary")

    if wsc is None:
        kern = functools.partial(_conv_kernel, offsets=offsets, tp=tp, h=h,
                                 o_center=o_center)
        y, st = pl.pallas_call(
            kern,
            out_shape=(y_sd, st_sd),
            grid_spec=pltpu.PrefetchScalarGridSpec(
                num_scalar_prefetch=0, grid=(N, nt),
                in_specs=[x_b, x_m, x_f, w_spec, m_spec],
                out_specs=[y_spec, st_spec]),
            compiler_params=pltpu.CompilerParams(dimension_semantics=dims),
        )(x_flat, x_flat, x_flat, w_flat, mask)
        return y, st

    wsc_flat = wsc.reshape(Cout, Cin).astype(jnp.bfloat16)
    wsc_spec = pl.BlockSpec((Cout, Cin), lambda n, s: (0, 0))
    kern = functools.partial(_conv_sc_kernel, offsets=offsets, tp=tp, h=h,
                             o_center=o_center)
    y, ysc, st, stsc = pl.pallas_call(
        kern,
        out_shape=(y_sd, y_sd, st_sd, st_sd),
        grid_spec=pltpu.PrefetchScalarGridSpec(
            num_scalar_prefetch=0, grid=(N, nt),
            in_specs=[x_b, x_m, x_f, w_spec, wsc_spec, m_spec],
            out_specs=[y_spec, y_spec, st_spec, st_spec]),
        compiler_params=pltpu.CompilerParams(dimension_semantics=dims),
    )(x_flat, x_flat, x_flat, w_flat, wsc_flat, mask)
    return y, st, ysc, stsc


def _finalize_stats(st, s_count, eps):
    """(N,C,2) [sum, sum_sq] over s_count valid voxels -> mean, rstd (N,C,1)."""
    ssum = st[:, :, 0:1]
    ssq = st[:, :, 1:2]
    mean = ssum / s_count
    var = jnp.maximum(ssq / s_count - mean * mean, 0.0)   # clamp cancellation
    rstd = lax.rsqrt(var + eps)
    return mean, rstd


# ----------------------------------------------------------------------------
# InstanceNorm apply + LeakyReLU + ring masking (keeps corner-flat layout so
# the output feeds the next conv directly).
# ----------------------------------------------------------------------------
def _in_apply_kernel(y_ref, mean_ref, rstd_ref, g_ref, b_ref, m_ref, o_ref,
                     *, slope, out_dtype):
    y = y_ref[0].astype(jnp.float32)                         # (C, tp)
    v = (y - mean_ref[0]) * (rstd_ref[0] * g_ref[0]) + b_ref[0]
    v = jnp.where(v >= 0, v, slope * v)
    v = v * m_ref[...]                                       # zero ring + tail
    o_ref[0] = v.astype(out_dtype)


def instnorm_lrelu_apply(y, mean, rstd, gamma, beta, mask, *, slope, tp,
                         out_dtype):
    N, C, L = y.shape
    nt = L // tp
    vec = pl.BlockSpec((1, C, tp), lambda n, s: (n, 0, s))
    stat = pl.BlockSpec((1, C, 1), lambda n, s: (n, 0, 0))
    aff = pl.BlockSpec((1, C, 1), lambda n, s: (0, 0, 0))
    msk = pl.BlockSpec((1, tp), lambda n, s: (0, s))
    kern = functools.partial(_in_apply_kernel, slope=slope, out_dtype=out_dtype)
    return pl.pallas_call(
        kern,
        out_shape=jax.ShapeDtypeStruct((N, C, L), out_dtype),
        grid_spec=pltpu.PrefetchScalarGridSpec(
            num_scalar_prefetch=0, grid=(N, nt),
            in_specs=[vec, stat, stat, aff, aff, msk],
            out_specs=vec),
        compiler_params=pltpu.CompilerParams(
            dimension_semantics=("parallel", "parallel")),
    )(y, mean, rstd,
      gamma.reshape(1, C, 1).astype(jnp.float32),
      beta.reshape(1, C, 1).astype(jnp.float32),
      mask)


# ----------------------------------------------------------------------------
# Fused: IN(left) + IN(shortcut) + residual add + LeakyReLU
# ----------------------------------------------------------------------------
def _in2_add_lrelu_kernel(a_ref, am_ref, ar_ref, ag_ref, ab_ref,
                          c_ref, cm_ref, cr_ref, cg_ref, cb_ref, o_ref,
                          *, slope):
    a = a_ref[0].astype(jnp.float32)
    c = c_ref[0].astype(jnp.float32)
    ya = (a - am_ref[0]) * (ar_ref[0] * ag_ref[0]) + ab_ref[0]
    yc = (c - cm_ref[0]) * (cr_ref[0] * cg_ref[0]) + cb_ref[0]
    y = ya + yc
    o_ref[0] = jnp.where(y >= 0, y, slope * y)


def fused_in2_add_lrelu(a, am, ar, ag, ab, c, cm, cr, cg, cb, *, slope, tp):
    N, C, L = a.shape
    nt = L // tp
    vec = pl.BlockSpec((1, C, tp), lambda n, s: (n, 0, s))
    stat = pl.BlockSpec((1, C, 1), lambda n, s: (n, 0, 0))
    aff = pl.BlockSpec((1, C, 1), lambda n, s: (0, 0, 0))
    kern = functools.partial(_in2_add_lrelu_kernel, slope=slope)
    return pl.pallas_call(
        kern,
        out_shape=jax.ShapeDtypeStruct((N, C, L), jnp.float32),
        grid_spec=pltpu.PrefetchScalarGridSpec(
            num_scalar_prefetch=0, grid=(N, nt),
            in_specs=[vec, stat, stat, aff, aff, vec, stat, stat, aff, aff],
            out_specs=vec),
        compiler_params=pltpu.CompilerParams(
            dimension_semantics=("parallel", "parallel")),
    )(a, am, ar,
      ag.reshape(1, C, 1).astype(jnp.float32),
      ab.reshape(1, C, 1).astype(jnp.float32),
      c, cm, cr,
      cg.reshape(1, C, 1).astype(jnp.float32),
      cb.reshape(1, C, 1).astype(jnp.float32))


# ----------------------------------------------------------------------------
# ResidualBlock forward.  stride=(1,1,1): the PyTorch module always builds the
# 1x1x1 shortcut conv because `stride != 1` is True for the tuple.
# Conv biases are dropped inside the kernels: IN(x + per-channel const)==IN(x).
# ----------------------------------------------------------------------------
def residual_block_forward(x, p, *, skip=True, eps=1e-5, slope=0.01, tp=1024):
    N, Cin, D, H, W = x.shape
    Cout, _, kd, kh, kw = p["w1"].shape
    pd1, ph1, pw1 = (kd - 1) // 2, (kh - 1) // 2, (kw - 1) // 2
    # Trailing ring per dim, large enough for both conv1 (kernel) and conv2 (3).
    rd, rh, rw = 2 * max(pd1, 1), 2 * max(ph1, 1), 2 * max(pw1, 1)
    Dp, Hp, Wp = D + rd, H + rh, W + rw
    P0 = Dp * Hp * Wp
    S = float(D * H * W)

    o_max = max((kd - 1) * Hp * Wp + (kh - 1) * Wp + (kw - 1),
                2 * Hp * Wp + 2 * Wp + 2)          # conv1 / conv2 tap reach
    h = _round_up(max(o_max, 1), 128)              # halo width (lane aligned)
    tp_eff = max(_round_up(tp, h), h)              # main tile, multiple of halo
    nt = _cdiv(P0, tp_eff)
    L = nt * tp_eff

    # Corner-layout flat activation (single host-side prep for the block input).
    xq = jnp.pad(x, ((0, 0), (0, 0), (0, rd), (0, rh), (0, rw)))
    xq = xq.reshape(N, Cin, P0)
    x_flat = jnp.pad(xq, ((0, 0), (0, 0), (0, L - P0))).astype(jnp.bfloat16)

    # Validity mask (1 at real voxels, 0 at ring / tail).
    mask = jnp.pad(jnp.ones((D, H, W), jnp.float32), ((0, rd), (0, rh), (0, rw)))
    mask = jnp.pad(mask.reshape(1, P0), ((0, 0), (0, L - P0)))

    grid_dims = (Dp, Hp, Wp)

    # conv1 (+ fused 1x1x1 shortcut conv) with fused IN statistics.
    if skip:
        y1, st1, ysc, stsc = conv3d_stats(x_flat, mask, p["w1"],
                                          grid_dims=grid_dims, tp=tp_eff, h=h,
                                          wsc=p["wsc"])
    else:
        y1, st1 = conv3d_stats(x_flat, mask, p["w1"], grid_dims=grid_dims,
                               tp=tp_eff, h=h)

    m1, r1 = _finalize_stats(st1, S, eps)
    y1n = instnorm_lrelu_apply(y1, m1, r1, p["g1"], p["be1"], mask,
                               slope=slope, tp=tp_eff, out_dtype=jnp.bfloat16)

    # conv2 consumes y1n directly (same corner-flat layout, bf16).
    y2, st2 = conv3d_stats(y1n, mask, p["w2"], grid_dims=grid_dims,
                           tp=tp_eff, h=h)
    m2, r2 = _finalize_stats(st2, S, eps)

    if skip:
        msc, rsc = _finalize_stats(stsc, S, eps)
        out_flat = fused_in2_add_lrelu(y2, m2, r2, p["g2"], p["be2"],
                                       ysc, msc, rsc, p["gsc"], p["besc"],
                                       slope=slope, tp=tp_eff)
    else:
        out_flat = instnorm_lrelu_apply(y2, m2, r2, p["g2"], p["be2"], mask,
                                        slope=slope, tp=tp_eff,
                                        out_dtype=jnp.float32)

    # Single extract at the very end.
    out = out_flat[:, :, :P0].reshape(N, Cout, Dp, Hp, Wp)[:, :, :D, :H, :W]
    return out


# ----------------------------------------------------------------------------
# Deterministic synthetic parameters (shapes from the module's __init__).
# Conv biases are kept for the reference path; the kernels drop them (exact,
# since every conv output feeds an InstanceNorm).
# ----------------------------------------------------------------------------
def init_params(key, inchannel, outchannel, kernel=(3, 3, 3)):
    ks = jax.random.split(key, 12)
    kd, kh, kw = kernel
    f32 = jnp.float32
    return {
        "w1": 0.1 * jax.random.normal(ks[0], (outchannel, inchannel, kd, kh, kw), f32),
        "b1": 0.1 * jax.random.normal(ks[1], (outchannel,), f32),
        "g1": 1.0 + 0.05 * jax.random.normal(ks[2], (outchannel,), f32),
        "be1": 0.05 * jax.random.normal(ks[3], (outchannel,), f32),
        "w2": 0.1 * jax.random.normal(ks[4], (outchannel, outchannel, 3, 3, 3), f32),
        "b2": 0.1 * jax.random.normal(ks[5], (outchannel,), f32),
        "g2": 1.0 + 0.05 * jax.random.normal(ks[6], (outchannel,), f32),
        "be2": 0.05 * jax.random.normal(ks[7], (outchannel,), f32),
        "wsc": 0.1 * jax.random.normal(ks[8], (outchannel, inchannel, 1, 1, 1), f32),
        "bsc": 0.1 * jax.random.normal(ks[9], (outchannel,), f32),
        "gsc": 1.0 + 0.05 * jax.random.normal(ks[10], (outchannel,), f32),
        "besc": 0.05 * jax.random.normal(ks[11], (outchannel,), f32),
    }


# ----------------------------------------------------------------------------
# Pure-JAX reference (for a sanity check)
# ----------------------------------------------------------------------------
def ref_forward(x, p, kernel=(3, 3, 3), skip=True):
    def conv(x, w, b, k):
        pad = [((kk - 1) // 2, (kk - 1) // 2) for kk in k]
        y = lax.conv_general_dilated(
            x, w, window_strides=(1, 1, 1), padding=pad,
            dimension_numbers=("NCDHW", "OIDHW", "NCDHW"))
        return y + b.reshape(1, -1, 1, 1, 1)

    def inorm(x, g, be, eps=1e-5):
        m = x.mean(axis=(2, 3, 4), keepdims=True)
        v = ((x - m) ** 2).mean(axis=(2, 3, 4), keepdims=True)
        return (x - m) / jnp.sqrt(v + eps) * g.reshape(1, -1, 1, 1, 1) \
            + be.reshape(1, -1, 1, 1, 1)

    def lrelu(x):
        return jnp.where(x >= 0, x, 0.01 * x)

    y = lrelu(inorm(conv(x, p["w1"], p["b1"], kernel), p["g1"], p["be1"]))
    y = inorm(conv(y, p["w2"], p["b2"], (3, 3, 3)), p["g2"], p["be2"])
    if skip:
        y = y + inorm(conv(x, p["wsc"], p["bsc"], (1, 1, 1)), p["gsc"], p["besc"])
    return lrelu(y)


if __name__ == "__main__":
    N, Cin, Cout, D, H, W = 2, 4, 8, 8, 8, 8
    key = jax.random.PRNGKey(0)
    kx, kp = jax.random.split(key)
    x = jax.random.normal(kx, (N, Cin, D, H, W), jnp.float32)
    params = init_params(kp, Cin, Cout)

    out = residual_block_forward(x, params)
    out = jax.block_until_ready(out)
    assert out.shape == (N, Cout, D, H, W)

    ref = jax.block_until_ready(ref_forward(x, params))
    # bf16 MXU operands + bf16 intermediate storage with f32 stats/accumulation
    # -> small drift vs the f32 reference.
    assert jnp.allclose(out, ref, atol=5e-2, rtol=5e-2), "mismatch vs reference"

    print("KERNEL_OK")
</pallas_src>

<mosaic_0001>
module attributes {stable_mosaic.version = 11 : i64} {
  func.func @_conv_sc_kernel(%arg0: i32, %arg1: i32, %arg2: memref<1x4x256xbf16, #tpu.memory_space<vmem>>, %arg3: memref<1x4x1024xbf16, #tpu.memory_space<vmem>>, %arg4: memref<1x4x256xbf16, #tpu.memory_space<vmem>>, %arg5: memref<8x108xbf16, #tpu.memory_space<vmem>>, %arg6: memref<8x4xbf16, #tpu.memory_space<vmem>>, %arg7: memref<1x1024xf32, #tpu.memory_space<vmem>>, %arg8: memref<1x8x1024xbf16, #tpu.memory_space<vmem>>, %arg9: memref<1x8x1024xbf16, #tpu.memory_space<vmem>>, %arg10: memref<1x8x2xf32, #tpu.memory_space<vmem>>, %arg11: memref<1x8x2xf32, #tpu.memory_space<vmem>>) attributes {dimension_semantics = [#tpu.dimension_semantics<parallel>, #tpu.dimension_semantics<arbitrary>], iteration_bounds = array<i64: 2, 1>, scalar_prefetch = 0 : i64, scratch_operands = 0 : i64, tpu.core_type = #tpu.core_type<tc>, window_params = [{transform_indices = @transform_0, window_bounds = array<i64: 1, 4, 256>}, {transform_indices = @transform_1, window_bounds = array<i64: 1, 4, 1024>}, {transform_indices = @transform_2, window_bounds = array<i64: 1, 4, 256>}, {pipeline_mode = #tpu.pipeline_mode<synchronous>, transform_indices = @transform_3, window_bounds = array<i64: 8, 108>}, {pipeline_mode = #tpu.pipeline_mode<synchronous>, transform_indices = @transform_4, window_bounds = array<i64: 8, 4>}, {transform_indices = @transform_5, window_bounds = array<i64: 1, 1024>}, {transform_indices = @transform_6, window_bounds = array<i64: 1, 8, 1024>}, {transform_indices = @transform_7, window_bounds = array<i64: 1, 8, 1024>}, {transform_indices = @transform_8, window_bounds = array<i64: 1, 8, 2>}, {transform_indices = @transform_9, window_bounds = array<i64: 1, 8, 2>}]} {
    %c0_i32 = arith.constant 0 : i32
    %0 = arith.cmpi eq, %arg1, %c0_i32 : i32
    %1 = arith.extui %0 : i1 to i32
    %c0_i32_0 = arith.constant 0 : i32
    %2 = arith.cmpi ne, %1, %c0_i32_0 : i32
    scf.if %2 {
      %cst_40 = arith.constant 0.000000e+00 : f32
      %90 = vector.broadcast %cst_40 : f32 to vector<8x2xf32>
      %c0_41 = arith.constant 0 : index
      %c0_42 = arith.constant 0 : index
      %c0_43 = arith.constant 0 : index
      %91 = vector.load %arg10[%c0_41, %c0_42, %c0_43] : memref<1x8x2xf32, #tpu.memory_space<vmem>>, vector<1x8x2xf32>
      %92 = vector.shape_cast %91 : vector<1x8x2xf32> to vector<8x2xf32>
      %93 = vector.shape_cast %90 : vector<8x2xf32> to vector<1x8x2xf32>
      tpu.vector_store %arg10[%c0_41, %c0_42, %c0_43], %93 {strides = array<i32>} : memref<1x8x2xf32, #tpu.memory_space<vmem>>, vector<1x8x2xf32>,
      %cst_44 = arith.constant 0.000000e+00 : f32
      %94 = vector.broadcast %cst_44 : f32 to vector<8x2xf32>
      %c0_45 = arith.constant 0 : index
      %c0_46 = arith.constant 0 : index
      %c0_47 = arith.constant 0 : index
      %95 = vector.load %arg11[%c0_45, %c0_46, %c0_47] : memref<1x8x2xf32, #tpu.memory_space<vmem>>, vector<1x8x2xf32>
      %96 = vector.shape_cast %95 : vector<1x8x2xf32> to vector<8x2xf32>
      %97 = vector.shape_cast %94 : vector<8x2xf32> to vector<1x8x2xf32>
      tpu.vector_store %arg11[%c0_45, %c0_46, %c0_47], %97 {strides = array<i32>} : memref<1x8x2xf32, #tpu.memory_space<vmem>>, vector<1x8x2xf32>,
    } else {
    }
    %c1_i32 = arith.constant 1 : i32
    %3 = arith.minsi %arg1, %c1_i32 : i32
    %4 = arith.sitofp %3 : i32 to bf16
    %c0_i32_1 = arith.constant 0 : i32
    %5 = arith.subi %c0_i32_1, %arg1 : i32
    %c1_i32_2 = arith.constant 1 : i32
    %6 = arith.minsi %5, %c1_i32_2 : i32
    %7 = arith.sitofp %6 : i32 to bf16
    %c0 = arith.constant 0 : index
    %c0_3 = arith.constant 0 : index
    %c0_4 = arith.constant 0 : index
    %8 = vector.load %arg3[%c0, %c0_3, %c0_4] : memref<1x4x1024xbf16, #tpu.memory_space<vmem>>, vector<1x4x1024xbf16>
    %9 = vector.shape_cast %8 : vector<1x4x1024xbf16> to vector<4x1024xbf16>
    %c0_5 = arith.constant 0 : index
    %c0_6 = arith.constant 0 : index
    %c0_7 = arith.constant 0 : index
    %10 = vector.load %arg2[%c0_5, %c0_6, %c0_7] : memref<1x4x256xbf16, #tpu.memory_space<vmem>>, vector<1x4x256xbf16>
    %11 = vector.shape_cast %10 : vector<1x4x256xbf16> to vector<4x256xbf16>
    %12 = vector.broadcast %4 : bf16 to vector<4x256xbf16>
    %13 = arith.mulf %11, %12 : vector<4x256xbf16>
    %c0_8 = arith.constant 0 : index
    %c0_9 = arith.constant 0 : index
    %c0_10 = arith.constant 0 : index
    %14 = vector.load %arg4[%c0_8, %c0_9, %c0_10] : memref<1x4x256xbf16, #tpu.memory_space<vmem>>, vector<1x4x256xbf16>
    %15 = vector.shape_cast %14 : vector<1x4x256xbf16> to vector<4x256xbf16>
    %16 = vector.broadcast %7 : bf16 to vector<4x256xbf16>
    %17 = arith.mulf %15, %16 : vector<4x256xbf16>
    %18 = tpu.concatenate %13, %9, %17 in 1 : vector<4x256xbf16>, vector<4x1024xbf16>, vector<4x256xbf16> -> vector<4x1536xbf16>
    %19 = vector.extract_strided_slice %18 {offsets = [0, 145], sizes = [4, 1024], strides = [1, 1]} : vector<4x1536xbf16> to vector<4x1024xbf16>
    %20 = vector.extract_strided_slice %18 {offsets = [0, 146], sizes = [4, 1024], strides = [1, 1]} : vector<4x1536xbf16> to vector<4x1024xbf16>
    %21 = vector.extract_strided_slice %18 {offsets = [0, 147], sizes = [4, 1024], strides = [1, 1]} : vector<4x1536xbf16> to vector<4x1024xbf16>
    %22 = vector.extract_strided_slice %18 {offsets = [0, 155], sizes = [4, 1024], strides = [1, 1]} : vector<4x1536xbf16> to vector<4x1024xbf16>
    %23 = vector.extract_strided_slice %18 {offsets = [0, 156], sizes = [4, 1024], strides = [1, 1]} : vector<4x1536xbf16> to vector<4x1024xbf16>
    %24 = vector.extract_strided_slice %18 {offsets = [0, 157], sizes = [4, 1024], strides = [1, 1]} : vector<4x1536xbf16> to vector<4x1024xbf16>
    %25 = vector.extract_strided_slice %18 {offsets = [0, 165], sizes = [4, 1024], strides = [1, 1]} : vector<4x1536xbf16> to vector<4x1024xbf16>
    %26 = vector.extract_strided_slice %18 {offsets = [0, 166], sizes = [4, 1024], strides = [1, 1]} : vector<4x1536xbf16> to vector<4x1024xbf16>
    %27 = vector.extract_strided_slice %18 {offsets = [0, 167], sizes = [4, 1024], strides = [1, 1]} : vector<4x1536xbf16> to vector<4x1024xbf16>
    %28 = vector.extract_strided_slice %18 {offsets = [0, 245], sizes = [4, 1024], strides = [1, 1]} : vector<4x1536xbf16> to vector<4x1024xbf16>
    %29 = vector.extract_strided_slice %18 {offsets = [0, 246], sizes = [4, 1024], strides = [1, 1]} : vector<4x1536xbf16> to vector<4x1024xbf16>
    %30 = vector.extract_strided_slice %18 {offsets = [0, 247], sizes = [4, 1024], strides = [1, 1]} : vector<4x1536xbf16> to vector<4x1024xbf16>
    %31 = vector.extract_strided_slice %18 {offsets = [0, 255], sizes = [4, 1024], strides = [1, 1]} : vector<4x1536xbf16> to vector<4x1024xbf16>
    %32 = vector.extract_strided_slice %18 {offsets = [0, 256], sizes = [4, 1024], strides = [1, 1]} : vector<4x1536xbf16> to vector<4x1024xbf16>
    %33 = vector.extract_strided_slice %18 {offsets = [0, 257], sizes = [4, 1024], strides = [1, 1]} : vector<4x1536xbf16> to vector<4x1024xbf16>
    %34 = vector.extract_strided_slice %18 {offsets = [0, 265], sizes = [4, 1024], strides = [1, 1]} : vector<4x1536xbf16> to vector<4x1024xbf16>
    %35 = vector.extract_strided_slice %18 {offsets = [0, 266], sizes = [4, 1024], strides = [1, 1]} : vector<4x1536xbf16> to vector<4x1024xbf16>
    %36 = vector.extract_strided_slice %18 {offsets = [0, 267], sizes = [4, 1024], strides = [1, 1]} : vector<4x1536xbf16> to vector<4x1024xbf16>
    %37 = vector.extract_strided_slice %18 {offsets = [0, 345], sizes = [4, 1024], strides = [1, 1]} : vector<4x1536xbf16> to vector<4x1024xbf16>
    %38 = vector.extract_strided_slice %18 {offsets = [0, 346], sizes = [4, 1024], strides = [1, 1]} : vector<4x1536xbf16> to vector<4x1024xbf16>
    %39 = vector.extract_strided_slice %18 {offsets = [0, 347], sizes = [4, 1024], strides = [1, 1]} : vector<4x1536xbf16> to vector<4x1024xbf16>
    %40 = vector.extract_strided_slice %18 {offsets = [0, 355], sizes = [4, 1024], strides = [1, 1]} : vector<4x1536xbf16> to vector<4x1024xbf16>
    %41 = vector.extract_strided_slice %18 {offsets = [0, 356], sizes = [4, 1024], strides = [1, 1]} : vector<4x1536xbf16> to vector<4x1024xbf16>
    %42 = vector.extract_strided_slice %18 {offsets = [0, 357], sizes = [4, 1024], strides = [1, 1]} : vector<4x1536xbf16> to vector<4x1024xbf16>
    %43 = vector.extract_strided_slice %18 {offsets = [0, 365], sizes = [4, 1024], strides = [1, 1]} : vector<4x1536xbf16> to vector<4x1024xbf16>
    %44 = vector.extract_strided_slice %18 {offsets = [0, 366], sizes = [4, 1024], strides = [1, 1]} : vector<4x1536xbf16> to vector<4x1024xbf16>
    %45 = vector.extract_strided_slice %18 {offsets = [0, 367], sizes = [4, 1024], strides = [1, 1]} : vector<4x1536xbf16> to vector<4x1024xbf16>
    %46 = tpu.concatenate %19, %20, %21, %22, %23, %24, %25, %26, %27, %28, %29, %30, %31, %32, %33, %34 in 0 : vector<4x1024xbf16>, vector<4x1024xbf16>, vector<4x1024xbf16>, vector<4x1024xbf16>, vector<4x1024xbf16>, vector<4x1024xbf16>, vector<4x1024xbf16>, vector<4x1024xbf16>, vector<4x1024xbf16>, vector<4x1024xbf16>, vector<4x1024xbf16>, vector<4x1024xbf16>, vector<4x1024xbf16>, vector<4x1024xbf16>, vector<4x1024xbf16>, vector<4x1024xbf16> -> vector<64x1024xbf16>
    %47 = tpu.concatenate %35, %36, %37, %38, %39, %40, %41, %42, %43, %44, %45 in 0 : vector<4x1024xbf16>, vector<4x1024xbf16>, vector<4x1024xbf16>, vector<4x1024xbf16>, vector<4x1024xbf16>, vector<4x1024xbf16>, vector<4x1024xbf16>, vector<4x1024xbf16>, vector<4x1024xbf16>, vector<4x1024xbf16>, vector<4x1024xbf16> -> vector<44x1024xbf16>
    %48 = tpu.concatenate %46, %47 in 0 : vector<64x1024xbf16>, vector<44x1024xbf16> -> vector<108x1024xbf16>
    %c0_11 = arith.constant 0 : index
    %c0_12 = arith.constant 0 : index
    %49 = vector.load %arg7[%c0_11, %c0_12] : memref<1x1024xf32, #tpu.memory_space<vmem>>, vector<1x1024xf32>
    %c0_13 = arith.constant 0 : index
    %c0_14 = arith.constant 0 : index
    %50 = vector.load %arg5[%c0_13, %c0_14] : memref<8x108xbf16, #tpu.memory_space<vmem>>, vector<8x108xbf16>
    %cst = arith.constant dense<0.000000e+00> : vector<8x1024xf32>
    %51 = tpu.matmul %50, %48, %cst {dimension_numbers = #tpu.dot_dimension_numbers<[1], [0], [0], [1], [0, 0, 1, 1], [], []>} : vector<8x108xbf16>, vector<108x1024xbf16>, vector<8x1024xf32> -> vector<8x1024xf32>
    %52 = arith.truncf %51 : vector<8x1024xf32> to vector<8x1024xbf16>
    %c0_15 = arith.constant 0 : index
    %c0_16 = arith.constant 0 : index
    %c0_17 = arith.constant 0 : index
    %53 = vector.load %arg8[%c0_15, %c0_16, %c0_17] : memref<1x8x1024xbf16, #tpu.memory_space<vmem>>, vector<1x8x1024xbf16>
    %54 = vector.shape_cast %53 : vector<1x8x1024xbf16> to vector<8x1024xbf16>
    %55 = vector.shape_cast %52 : vector<8x1024xbf16> to vector<1x8x1024xbf16>
    tpu.vector_store %arg8[%c0_15, %c0_16, %c0_17], %55 {strides = array<i32>} : memref<1x8x1024xbf16, #tpu.memory_space<vmem>>, vector<1x8x1024xbf16>,
    %56 = vector.broadcast %49 : vector<1x1024xf32> to vector<8x1024xf32>
    %57 = arith.mulf %51, %56 : vector<8x1024xf32>
    %c0_18 = arith.constant 0 : index
    %c0_19 = arith.constant 0 : index
    %c0_20 = arith.constant 0 : index
    %58 = vector.load %arg10[%c0_18, %c0_19, %c0_20] : memref<1x8x2xf32, #tpu.memory_space<vmem>>, vector<1x8x2xf32>
    %59 = vector.shape_cast %58 : vector<1x8x2xf32> to vector<8x2xf32>
    %cst_21 = arith.constant dense<0.000000e+00> : vector<8xf32>
    %60 = vector.multi_reduction <add>, %57, %cst_21 [1] : vector<8x1024xf32> to vector<8xf32>
    %61 = vector.shape_cast %60 : vector<8xf32> to vector<8x1xf32>
    %62 = arith.mulf %51, %57 : vector<8x1024xf32>
    %cst_22 = arith.constant dense<0.000000e+00> : vector<8xf32>
    %63 = vector.multi_reduction <add>, %62, %cst_22 [1] : vector<8x1024xf32> to vector<8xf32>
    %64 = vector.shape_cast %63 : vector<8xf32> to vector<8x1xf32>
    %65 = tpu.concatenate %61, %64 in 1 : vector<8x1xf32>, vector<8x1xf32> -> vector<8x2xf32>
    %66 = arith.addf %59, %65 : vector<8x2xf32>
    %c0_23 = arith.constant 0 : index
    %c0_24 = arith.constant 0 : index
    %c0_25 = arith.constant 0 : index
    %67 = vector.load %arg10[%c0_23, %c0_24, %c0_25] : memref<1x8x2xf32, #tpu.memory_space<vmem>>, vector<1x8x2xf32>
    %68 = vector.shape_cast %67 : vector<1x8x2xf32> to vector<8x2xf32>
    %69 = vector.shape_cast %66 : vector<8x2xf32> to vector<1x8x2xf32>
    tpu.vector_store %arg10[%c0_23, %c0_24, %c0_25], %69 {strides = array<i32>} : memref<1x8x2xf32, #tpu.memory_space<vmem>>, vector<1x8x2xf32>,
    %c0_26 = arith.constant 0 : index
    %c0_27 = arith.constant 0 : index
    %70 = vector.load %arg6[%c0_26, %c0_27] : memref<8x4xbf16, #tpu.memory_space<vmem>>, vector<8x4xbf16>
    %cst_28 = arith.constant dense<0.000000e+00> : vector<8x1024xf32>
    %71 = tpu.matmul %70, %9, %cst_28 {dimension_numbers = #tpu.dot_dimension_numbers<[1], [0], [0], [1], [0, 0, 1, 1], [], []>} : vector<8x4xbf16>, vector<4x1024xbf16>, vector<8x1024xf32> -> vector<8x1024xf32>
    %72 = arith.truncf %71 : vector<8x1024xf32> to vector<8x1024xbf16>
    %c0_29 = arith.constant 0 : index
    %c0_30 = arith.constant 0 : index
    %c0_31 = arith.constant 0 : index
    %73 = vector.load %arg9[%c0_29, %c0_30, %c0_31] : memref<1x8x1024xbf16, #tpu.memory_space<vmem>>, vector<1x8x1024xbf16>
    %74 = vector.shape_cast %73 : vector<1x8x1024xbf16> to vector<8x1024xbf16>
    %75 = vector.shape_cast %72 : vector<8x1024xbf16> to vector<1x8x1024xbf16>
    tpu.vector_store %arg9[%c0_29, %c0_30, %c0_31], %75 {strides = array<i32>} : memref<1x8x1024xbf16, #tpu.memory_space<vmem>>, vector<1x8x1024xbf16>,
    %76 = vector.broadcast %49 : vector<1x1024xf32> to vector<8x1024xf32>
    %77 = arith.mulf %71, %76 : vector<8x1024xf32>
    %c0_32 = arith.constant 0 : index
    %c0_33 = arith.constant 0 : index
    %c0_34 = arith.constant 0 : index
    %78 = vector.load %arg11[%c0_32, %c0_33, %c0_34] : memref<1x8x2xf32, #tpu.memory_space<vmem>>, vector<1x8x2xf32>
    %79 = vector.shape_cast %78 : vector<1x8x2xf32> to vector<8x2xf32>
    %cst_35 = arith.constant dense<0.000000e+00> : vector<8xf32>
    %80 = vector.multi_reduction <add>, %77, %cst_35 [1] : vector<8x1024xf32> to vector<8xf32>
    %81 = vector.shape_cast %80 : vector<8xf32> to vector<8x1xf32>
    %82 = arith.mulf %71, %77 : vector<8x1024xf32>
    %cst_36 = arith.constant dense<0.000000e+00> : vector<8xf32>
    %83 = vector.multi_reduction <add>, %82, %cst_36 [1] : vector<8x1024xf32> to vector<8xf32>
    %84 = vector.shape_cast %83 : vector<8xf32> to vector<8x1xf32>
    %85 = tpu.concatenate %81, %84 in 1 : vector<8x1xf32>, vector<8x1xf32> -> vector<8x2xf32>
    %86 = arith.addf %79, %85 : vector<8x2xf32>
    %c0_37 = arith.constant 0 : index
    %c0_38 = arith.constant 0 : index
    %c0_39 = arith.constant 0 : index
    %87 = vector.load %arg11[%c0_37, %c0_38, %c0_39] : memref<1x8x2xf32, #tpu.memory_space<vmem>>, vector<1x8x2xf32>
    %88 = vector.shape_cast %87 : vector<1x8x2xf32> to vector<8x2xf32>
    %89 = vector.shape_cast %86 : vector<8x2xf32> to vector<1x8x2xf32>
    tpu.vector_store %arg11[%c0_37, %c0_38, %c0_39], %89 {strides = array<i32>} : memref<1x8x2xf32, #tpu.memory_space<vmem>>, vector<1x8x2xf32>,
    return
  }
  func.func @transform_0(%arg0: i32, %arg1: i32) -> (i32, i32, i32) {
    %c4_i32 = arith.constant 4 : i32
    %0 = arith.muli %arg1, %c4_i32 : i32
    %c1_i32 = arith.constant 1 : i32
    %1 = arith.subi %0, %c1_i32 : i32
    %c0_i32 = arith.constant 0 : i32
    %2 = arith.maxsi %1, %c0_i32 : i32
    %c0_i32_0 = arith.constant 0 : i32
    %c0_i32_1 = arith.constant 0 : i32
    return %arg0, %c0_i32_0, %2 : i32, i32, i32
  }
  func.func @transform_1(%arg0: i32, %arg1: i32) -> (i32, i32, i32) {
    %c0_i32 = arith.constant 0 : i32
    %c0_i32_0 = arith.constant 0 : i32
    return %arg0, %c0_i32, %arg1 : i32, i32, i32
  }
  func.func @transform_2(%arg0: i32, %arg1: i32) -> (i32, i32, i32) {
    %c1_i32 = arith.constant 1 : i32
    %0 = arith.addi %arg1, %c1_i32 : i32
    %c4_i32 = arith.constant 4 : i32
    %1 = arith.muli %0, %c4_i32 : i32
    %c3_i32 = arith.constant 3 : i32
    %2 = arith.minsi %1, %c3_i32 : i32
    %c0_i32 = arith.constant 0 : i32
    %c0_i32_0 = arith.constant 0 : i32
    return %arg0, %c0_i32, %2 : i32, i32, i32
  }
  func.func @transform_3(%arg0: i32, %arg1: i32) -> (i32, i32) {
    %c0_i32 = arith.constant 0 : i32
    %c0_i32_0 = arith.constant 0 : i32
    %c0_i32_1 = arith.constant 0 : i32
    return %c0_i32, %c0_i32_0 : i32, i32
  }
  func.func @transform_4(%arg0: i32, %arg1: i32) -> (i32, i32) {
    %c0_i32 = arith.constant 0 : i32
    %c0_i32_0 = arith.constant 0 : i32
    %c0_i32_1 = arith.constant 0 : i32
    return %c0_i32, %c0_i32_0 : i32, i32
  }
  func.func @transform_5(%arg0: i32, %arg1: i32) -> (i32, i32) {
    %c0_i32 = arith.constant 0 : i32
    %c0_i32_0 = arith.constant 0 : i32
    return %c0_i32, %arg1 : i32, i32
  }
  func.func @transform_6(%arg0: i32, %arg1: i32) -> (i32, i32, i32) {
    %c0_i32 = arith.constant 0 : i32
    %c0_i32_0 = arith.constant 0 : i32
    return %arg0, %c0_i32, %arg1 : i32, i32, i32
  }
  func.func @transform_7(%arg0: i32, %arg1: i32) -> (i32, i32, i32) {
    %c0_i32 = arith.constant 0 : i32
    %c0_i32_0 = arith.constant 0 : i32
    return %arg0, %c0_i32, %arg1 : i32, i32, i32
  }
  func.func @transform_8(%arg0: i32, %arg1: i32) -> (i32, i32, i32) {
    %c0_i32 = arith.constant 0 : i32
    %c0_i32_0 = arith.constant 0 : i32
    %c0_i32_1 = arith.constant 0 : i32
    return %arg0, %c0_i32, %c0_i32_0 : i32, i32, i32
  }
  func.func @transform_9(%arg0: i32, %arg1: i32) -> (i32, i32, i32) {
    %c0_i32 = arith.constant 0 : i32
    %c0_i32_0 = arith.constant 0 : i32
    %c0_i32_1 = arith.constant 0 : i32
    return %arg0, %c0_i32, %c0_i32_0 : i32, i32, i32
  }
}

</mosaic_0001>

<bundles_post_ra>
// kernel: tpu_custom_call.1
= control target key start
LH: loop header
LB: loop body
LE: loop exit
PB: predicated region body
PF: predicated region fallthrough
CT: control target
= control target key end

     0   :  { %s5194_s0 = inlined_call_operand.hbm [shape: bf16[2,4,1024], index: 0, kind: input, shape index: {}]   ;;  %s5195_s1 = inlined_call_operand.hbm [shape: bf16[2,4,1024], index: 1, kind: input, shape index: {}]   ;;  %s5196_s2 = inlined_call_operand.hbm [shape: bf16[2,4,1024], index: 2, kind: input, shape index: {}]   ;;  %s5197_s3 = inlined_call_operand.vmem [shape: bf16[8,108], index: 3, kind: input, shape index: {}]   ;;  %s5198_s4 = inlined_call_operand.vmem [shape: bf16[8,4], index: 4, kind: input, shape index: {}]   ;;  %s5199_s5 = inlined_call_operand.hbm [shape: f32[1,1024], index: 5, kind: input, shape index: {}]   ;;  %s5200_s6 = inlined_call_operand.hbm [shape: bf16[2,8,1024], index: 6, kind: output, shape index: {0}]   ;;  %s5201_s7 = inlined_call_operand.hbm [shape: bf16[2,8,1024], index: 7, kind: output, shape index: {1}]   ;;  %s5202_s8 = inlined_call_operand.vmem [shape: f32[2,8,2], index: 8, kind: output, shape index: {2}]   ;;  %s5203_s9 = inlined_call_operand.vmem [shape: f32[2,8,2], index: 9, kind: output, shape index: {3}]  }
   0x1   :  { %5319 = sst [smem:[#allocation145_spill]] %s5195_s1 }
   0x2   :  { %5320 = sst [smem:[#allocation146_spill]] %s5199_s5 }
   0x3   :  { %5321 = sst [smem:[#allocation147_spill]] %s5202_s8 }
   0x4   :  { %5322 = sst [smem:[#allocation148_spill]] %s5203_s9 }
   0x5   :  { %15 = vsyncpa [#allocation3], 0 }
   0x6   :  { %17 = vsyncpa [#allocation3 + $0x1], 0 }
   0x7   :  { %18 = vsyncpa [#allocation6], 0 }
   0x8   :  { %20 = vsyncpa [#allocation6 + $0x1], 0 }
   0x9   :  { %21 = vsyncpa [#allocation9], 0 }
   0xa   :  { %22 = vsyncpa [#allocation4], 0 }
   0xb   :  { %24 = vsyncpa [#allocation4 + $0x1], 0 }
   0xc   :  { %25 = vsyncpa [#allocation12], 0 }
   0xd   :  { %27 = vsyncpa [#allocation12 + $0x1], 0  ;;  %s3178_s30 = smov 0   ;;  %s3180_s10 = smov 0  }
   0xe   :  { %s3182_s11 = smov 0   ;;  %s3184_s12 = smov 0  }
   0xf   :  { %s3186_s13 = smov 0   ;;  %s3188_s14 = smov 0  }
  0x10 LB: > { %5323 = sst [smem:[#allocation18_spill]] %s3080_s30  ;;  %s45_s15 = sadd.s32 1, %s3096_s13  ;;  %s3100_s14 = sphi %s3188_s14, %s33_s14   ;;  %s3096_s13 = sphi %s3186_s13, %s5638_s13   ;;  %s3092_s12 = sphi %s3184_s12, %s5637_s12   ;;  %s3088_s11 = sphi %s3182_s11, %s5636_s11   ;;  %s3084_s10 = sphi %s3180_s10, %s5640_s10   ;;  %s3080_s30 = sphi %s3178_s30, %s5639_s30  }
  0x11   : > { %5324 = sst [smem:[#allocation19_spill]] %s3088_s11  ;;  %s62_s16 = sadd.s32 1, %s3088_s11 }
  0x12   : > { %5325 = sst [smem:[#allocation20_spill]] %s3096_s13  ;;  %p47_p0 = scmp.ge.s32.totalorder %s45_s15, 2 }
  0x13   : > { %5326 = sst [smem:[#allocation21_spill]] %s3100_s14  ;;  %p69_p1 = scmp.ne.s32.totalorder %s3088_s11, %s3084_s10 }
  0x14   : > { %p70_p2 = scmp.eq.s32.totalorder %s3100_s14, 0  ;;  %p2695_p3 = scmp.ge.s32.totalorder %s3100_s14, 2 }
  0x15   : > { %s5642_s15 = smov (%p47_p0, %s45_s15), 0  ;;  %p2781_p5 = scmp.lt.s32.totalorder %s3100_s14, 2 }
  0x16   : > { %5327 = sst [smem:[#allocation22_spill]] %s5642_s15  ;;  %p71_p4 = por %p70_p2, %p69_p1 }
  0x17   : > { %s57_s17 = ssub.s32 %s3096_s13, %s5642_s15  ;;  %s3223_s18 = sand.u32 1, %s3088_s11  }
  0x18   : > { %p60_p6 = scmp.eq.s32.totalorder %s57_s17, 0  ;;  %s3226_s19 = sshll.u32 %s3096_s13, 4 }
  0x19   : > { %p3228_p7 = pnand %p2781_p5, %p71_p4  ;;  %s385_s21 = sand.u32 1, %s3100_s14  }
  0x1a   : > { %s3234_s22 = scalar_select %p60_p6, %s3088_s11, %s62_s16  }
  0x1b   : > { %s2699_s23 = sshll.u32 %s3223_s18, 4  ;;  %s5330_s1 = sld [smem:[#allocation145_spill]] }
  0x1c   : > { %5329 = sst [smem:[#allocation23_spill]] %s3234_s22  ;;  %s389_s28 = scalar_lea.vmem [#allocation5], %s2699_s23 }
  0x1d   : > { %s400_s29 = sshll.u32 %s389_s28, 4  ;;  %s3241_s17 = scalar_lea.sflag [#allocation6], %s385_s21  ;;  %s401_s29 = int_to_ptr.vmem [resolvable:$true] %s400_s29 }
  0x1e   : > { %s3247_s16 = sadd.s32 4294967295, %s3100_s14   ;;  %s2692_s24 = sadd.s32 4294967294, %s3100_s14  }
  0x1f   : > { %p75_p8 = scmp.ne.s32.totalorder %s3084_s10, %s3080_s30  ;;  %p76_p9 = scmp.eq.s32.totalorder %s3247_s16, 0 }
  0x20   : > { %p233_p10 = scmp.eq.s32.totalorder %s3247_s16, 1  ;;  %p239_p11 = scmp.eq.s32.totalorder %s2692_s24, 1 }
  0x21   : > { %s396_s26 = scalar_lea.hbm %s5330_s1, %s3226_s19  ;;  %p2693_p12 = scmp.ge.s32.totalorder %s3100_s14, 1 }
  0x22   : > { %s398_s27 = sshll.u32 %s396_s26, 4  ;;  %p3257_p13 = por %p76_p9, %p75_p8  ;;  %s399_s27 = int_to_ptr.hbm [resolvable:$true] %s398_s27 }
  0x23   : > { %2769 = dma.hbm_to_vmem [thread:$0]  (!%p3228_p7), %s399_s27, 256, %s401_s29, %s3241_s17  }
  0x24   : > { %p3264_p0 = por %p233_p10, %p69_p1  ;;  %p3268_p2 = por %p239_p11, %p75_p8 }
  0x25   : > { %p326_p4 = scmp.lt.s32.totalorder %s3100_s14, 3  ;;  %s5336_s5 = sld [smem:[#allocation146_spill]] }
  0x26   : > { %s5332_s23 = scalar_select %p3264_p0, 1, 0 }
  0x27   : > { %s5334_s25 = scalar_select %p3268_p2, 1, 0 }
  0x28   : > { %5333 = sst [smem:[#allocation24_spill]] %s5332_s23  ;;  %p3276_p5 = pnand %p2693_p12, %p326_p4 }
  0x29   : > { %5335 = sst [smem:[#allocation25_spill]] %s5334_s25  ;;  %s3102_s24 = smov [#allocation8]  }
  0x2a   : > { %p2759_p1 = pneg %p3276_p5  ;;  %s348_s1 = sshll.u32 %s3102_s24, 4  ;;  %s349_s1 = int_to_ptr.vmem [resolvable:$true] %s348_s1 }
  0x2b   : > { %s346_s28 = sshll.u32 %s5336_s5, 4  ;;  %s2696_s15 = sshll.u32 %s3223_s18, 2  ;;  %s347_s28 = int_to_ptr.hbm [resolvable:$true] %s346_s28 }
  0x2c   : > { %p2760_p6 = pnand %p2759_p1, %p76_p9  ;;  %s374_s27 = scalar_lea.hbm %s5194_s0, %s3226_s19 }
  0x2d   : > { %s363_s5 = scalar_lea.vmem [#allocation2], %s2696_s15  ;;  %s376_s11 = sshll.u32 %s374_s27, 4  ;;  %s377_s11 = int_to_ptr.hbm [resolvable:$true] %s376_s11 }
  0x2e   : > { %s378_s22 = sshll.u32 %s363_s5, 4  ;;  %s360_s14 = scalar_lea.sflag [#allocation3], %s3223_s18  ;;  %s379_s22 = int_to_ptr.vmem [resolvable:$true] %s378_s22 }
  0x2f   : > { %2762 = dma.hbm_to_vmem [thread:$0]  (!%p2760_p6), %s347_s28, 128, %s349_s1, [#allocation9]  }
  0x30   : > { %2766 = dma.hbm_to_vmem [thread:$0]  (!%p3228_p7), %s377_s11, 64, %s379_s22, %s360_s14  }
  0x31   : > { %s2741_s24 = sadd.s32 12, %s3226_s19  ;;  %s411_s8 = scalar_lea.vmem [#allocation7], %s2696_s15 }
  0x32   : > { %s422_s9 = scalar_lea.hbm %s5196_s2, %s2741_s24  ;;  %s426_s23 = sshll.u32 %s411_s8, 4  ;;  %s427_s23 = int_to_ptr.vmem [resolvable:$true] %s426_s23 }
  0x33   : > { %s424_s13 = sshll.u32 %s422_s9, 4  ;;  %435 = sbr.rel (%p3276_p5) target bundleno = 1381 (0x565), region = 44  ;;  %s425_s13 = int_to_ptr.hbm [resolvable:$true] %s424_s13 }
  0x34   : > { %2772 = dma.hbm_to_vmem [thread:$0]  (!%p3228_p7), %s425_s13, 64, %s427_s23, %s3241_s17  }
  0x38   : > { %s3302_s1 = sand.u32 1, %s3084_s10  }
  0x39   : > { %s2706_s5 = sshll.u32 %s3302_s1, 2  ;;  %s438_s11 = scalar_lea.sflag [#allocation3], %s3302_s1 }
  0x3a   : > { %s441_s30 = scalar_lea.vmem [#allocation2], %s2706_s5 }
  0x3b   : > { %3059 = dma.done.wait (%p3257_p13), %s438_s11, 64  }
  0x3c   : > { %3061 = vsyncadd (%p3257_p13), %s438_s11, 4294967232  ;;  %s447_s8 = sand.u32 1, %s3247_s16   ;;  %s2707_s9 = sshll.u32 %s3302_s1, 4 }
  0x3d   : > { %s448_s14 = scalar_lea.sflag [#allocation6], %s447_s8  ;;  %s3312_s15 = scalar_lea.vmem [#allocation5], %s2707_s9 }
  0x3e   : > { %3063 = dma.done.wait (%p3257_p13), %s448_s14, 320  }
  0x3f   : > { %3065 = vsyncadd (%p3257_p13), %s448_s14, 4294966976  ;;  %s461_s18 = scalar_lea.vmem [#allocation7], %s2706_s5 }
  0x40   : > { %3067 = dma.done.wait (%p76_p9), [#allocation9], 128  }
  0x41   : > { %3069 = vsyncadd (%p76_p9), [#allocation9], 4294967168  ;;  %v5213_v0 = vmov 0.0   ;;  %v583_v2 = vld [vmem:[%s3312_s15 + $0x8] sm:$0xff]  ;;  %v599_v5 = vld [vmem:[%s461_s18] sm:$0xf] }
  0x42   : > { %v590_v1 = vunpack.c.l.bf16 %v5213_v0  ;;  %v584_v3 = vld [vmem:[%s441_s30] sm:$0xf]  ;;  %621 = vst [vmem:[#allocation1 + $0x20] ss:$4 sm:$0xff] %v583_v2  ;;  %v604_v7 = vunpack.c.l.bf16 %v599_v5  ;;  %s3104_s19 = smov 127   ;;  %v582_v22 = vld [vmem:[%s3312_s15] sm:$0xff] }
  0x43   : > { %v589_v4 = vunpack.c.l.bf16 %v584_v3  ;;  %s3105_s20 = smov 126   ;;  %s3106_s22 = smov 118   ;;  %vm668_vm0 = vcmask 1039360   ;;  %vm5298_vm1 = vcmask 1031168   ;;  %vm1072_vm2 = vcmask 1041408  }
  0x44   : > { %v606_v12 = vmul.f32 %v604_v7, %v590_v1  ;;  %s3107_s17 = smov 117   ;;  %s3108_s16 = smov 116   ;;  %vm1092_vm3 = vcmask 1043456   ;;  %vm5295_vm4 = vcmask 965632   ;;  %vm1111_vm5 = vcmask 1045504  }
  0x45   : > { %v591_v6 = vmul.f32 %v590_v1, %v589_v4  ;;  %s3109_s21 = smov 108   ;;  %s3110_s23 = smov 107   ;;  %vm5304_vm6 = vcmask 957440   ;;  %vm5313_vm7 = vcmask 949248   ;;  %vm5302_vm8 = vcmask 883712  }
  0x46   : > { %s3111_s25 = smov 106   ;;  %s3112_s28 = smov 28   ;;  %vm5301_vm9 = vcmask 875520   ;;  %vm902_vm10 = vcmask 228352   ;;  %vm929_vm11 = vcmask 220160   ;;  %vm875_vm12 = vcmask 867328  }
  0x47   : > { %593 = vst [vmem:[#allocation1] ss:$2 sm:$0xff] %v591_v6  ;;  %s3113_s29 = smov 27   ;;  %s3114_s26 = smov 26   ;;  %vm5314_vm13 = vcmask 211968   ;;  %vm983_vm14 = vcmask 146432  }
  0x48   : > { %s3115_s27 = smov 18   ;;  %s3116_s24 = smov 17   ;;  %vm1008_vm15 = vcmask 138240  }
  0x49   : > { %v3324_v8 = vld.sshfl [vmem:[#allocation1 + $0x20] sm:$0xff pattern:$0x73625140]  ;;  %v3326_v9 = vld.sshfl [vmem:[#allocation1 + $0x28] sm:$0xff pattern:$0x73625140] }
  0x4a   : > { %5338 = vst [vmem:[#allocation26_spill] sm:$0xff] %v3326_v9  ;;  %v3329_v10 = vrot.slane %v3324_v8, 6  ;;  %v3332_v11 = vrot.slane %v3326_v9, 6  ;;  %v3334_v13 = vld.sshfl [vmem:[#allocation1 + $0x38] sm:$0xff pattern:$0x73625140] }
  0x4b   : > { %5339 = vst [vmem:[#allocation27_spill] sm:$0xff] %v3334_v13  ;;  %v3336_v14 = vld.sshfl [vmem:[#allocation1 + $0x30] sm:$0xff pattern:$0x73625140]  ;;  %v3348_v19 = vrot.slane %v3334_v13, 6  ;;  %v3365_v26 = vrot.slane %v3324_v8, 4 }
  0x4c   : > { %5340 = vst [vmem:[#allocation28_spill] sm:$0xff] %v3336_v14  ;;  %660 = vrot.lane.b32.xlu2 %v3329_v10, %s3104_s19  ;;  %662 = vrot.lane.b32.xlu0 %v3332_v11, %s3104_s19  ;;  %v3343_v15 = vrot.slane %v3336_v14, 6  ;;  %v3418_v39 = vrot.slane %v3334_v13, 4  ;;  %v3421_v40 = vrot.slane %v3326_v9, 4  ;;  %v3440_v44 = vrot.slane %v3336_v14, 4  ;;  %s3117_s13 = smov 16  }
  0x4d   : > { %2228 = vst [vmem:[#allocation1 + $0x20] ss:$4 sm:$0xff] %v583_v2  ;;  %v3446_v45 = vrot.slane %v3324_v8, 2  ;;  %v3458_v48 = vrot.slane %v3334_v13, 2  ;;  %v3461_v49 = vrot.slane %v3326_v9, 2  ;;  %v3471_v51 = vrot.slane %v3336_v14, 2 }
  0x4e   : > { %v594_v16 = vld.sshfl [vmem:[#allocation1] sm:$0xff pattern:$0x75316420]  ;;  %v595_v17 = vld.sshfl [vmem:[#allocation1 + $0x8] sm:$0xff pattern:$0x75316420]  ;;  %664 = vrot.lane.b32.xlu1 %v3343_v15, %s3104_s19 }
  0x4f   : > { %v598_v18 = vpack.c.bf16 %v595_v17, %v594_v16  ;;  %608 = vst [vmem:[#allocation1] ss:$2 sm:$0xff] %v606_v12  ;;  %s3118_s5 = smov 8   ;;  %s3119_s11 = smov 49  }
  0x50   : > { %s3120_s30 = smov 48   ;;  %s3121_s8 = smov 47  }
  0x51   : > { %v615_v20 = vunpack.c.h.b16 %v598_v18  ;;  %s3122_s9 = smov 39   ;;  %s3123_s14 = smov 29  }
  0x52   : > { %s3124_s15 = smov 38   ;;  %s3125_s18 = smov 37  }
  0x53   : > { %v3350_v21 = vpack.c.b16 %v615_v20, %v615_v20 }
  0x54   : > { %666 = vrot.lane.b32.xlu2 %v3348_v19, %s3104_s19 }
  0x55   : > { %5341 = vst [vmem:[#allocation29_spill] sm:$0xff] %v3350_v21  ;;  %v3356_v23 = vrot.slane %v3350_v21, 6  ;;  %v3368_v27 = vrot.slane %v3350_v21, 4  ;;  %v3436_v43 = vrot.slane %v3350_v21, 2 }
  0x56   : > { %v3358_v24 = vld.sshfl [vmem:[#allocation1] sm:$0xff pattern:$0x75316420]  ;;  %v3360_v25 = vld.sshfl [vmem:[#allocation1 + $0x8] sm:$0xff pattern:$0x75316420] }
  0x57   : > { %650 = vrot.lane.b32.xlu0 %v3356_v23, %s3104_s19  ;;  %618 = vst [vmem:[#allocation1] ss:$4 sm:$0xff] %v582_v22 }
  0x5c   : > { %696 = vrot.lane.b32.xlu2 %v3365_v26, %s3105_s20 }
  0x5e   : > { %v3372_v28 = vld.sshfl [vmem:[#allocation1 + $0x8] sm:$0xff pattern:$0x73625140]  ;;  %v3374_v29 = vld.sshfl [vmem:[#allocation1 + $0x18] sm:$0xff pattern:$0x73625140] }
  0x5f   : > { %686 = vrot.lane.b32.xlu0 %v3368_v27, %s3105_s20  ;;  %v3379_v30 = vrot.slane %v3372_v28, 6  ;;  %v3381_v31 = vld.sshfl [vmem:[#allocation1] sm:$0xff pattern:$0x73625140]  ;;  %v3388_v33 = vrot.slane %v3374_v29, 6  ;;  %v3403_v36 = vrot.slane %v3372_v28, 4 }
  0x60   : > { %v3383_v32 = vld.sshfl [vmem:[#allocation1 + $0x10] sm:$0xff pattern:$0x73625140]  ;;  %v3391_v34 = vrot.slane %v3381_v31, 6  ;;  %v3411_v38 = vrot.slane %v3381_v31, 4  ;;  %v3426_v41 = vrot.slane %v3374_v29, 4 }
  0x61   : > { %654 = vrot.lane.b32.xlu1 %v3379_v30, %s3104_s19  ;;  %2226 = vst [vmem:[#allocation1] ss:$4 sm:$0xff] %v582_v22  ;;  %v3396_v35 = vrot.slane %v3383_v32, 6  ;;  %v3406_v37 = vrot.slane %v3383_v32, 4  ;;  %v3433_v42 = vrot.slane %v3372_v28, 2  ;;  %v3449_v46 = vrot.slane %v3383_v32, 2 }
  0x62   : > { %v3453_v47 = vrot.slane %v3381_v31, 2  ;;  %v3465_v50 = vrot.slane %v3374_v29, 2 }
  0x64   : > { %658 = vrot.lane.b32.xlu2 %v3388_v33, %s3104_s19 }
  0x67   : > { %652 = vrot.lane.b32.xlu0 %v3391_v34, %s3104_s19 }
  0x69   : > { %656 = vrot.lane.b32.xlu1 %v3396_v35, %s3104_s19 }
  0x6c   : > { %690 = vrot.lane.b32.xlu2 %v3403_v36, %s3105_s20 }
  0x6f   : > { %692 = vrot.lane.b32.xlu0 %v3406_v37, %s3105_s20 }
  0x71   : > { %688 = vrot.lane.b32.xlu1 %v3411_v38, %s3105_s20 }
  0x74   : > { %702 = vrot.lane.b32.xlu2 %v3418_v39, %s3105_s20 }
  0x77   : > { %698 = vrot.lane.b32.xlu0 %v3421_v40, %s3105_s20 }
  0x79   : > { %694 = vrot.lane.b32.xlu1 %v3426_v41, %s3105_s20 }
  0x7c   : > { %726 = vrot.lane.b32.xlu2 %v3433_v42, %s3106_s22 }
  0x7f   : > { %722 = vrot.lane.b32.xlu0 %v3436_v43, %s3106_s22 }
  0x81   : > { %700 = vrot.lane.b32.xlu1 %v3440_v44, %s3105_s20  ;;  %s3127_s20 = smov 111  }
  0x84   : > { %732 = vrot.lane.b32.xlu2 %v3446_v45, %s3106_s22 }
  0x87   : > { %728 = vrot.lane.b32.xlu0 %v3449_v46, %s3106_s22 }
  0x89   : > { %724 = vrot.lane.b32.xlu1 %v3453_v47, %s3106_s22 }
  0x8c   : > { %738 = vrot.lane.b32.xlu2 %v3458_v48, %s3106_s22 }
  0x8f   : > { %734 = vrot.lane.b32.xlu0 %v3461_v49, %s3106_s22 }
  0x91   : > { %730 = vrot.lane.b32.xlu1 %v3465_v50, %s3106_s22 }
  0x94   : > { %753 = vrot.lane.b32.xlu2 %v3372_v28, %s3107_s17 }
  0x97   : > { %749 = vrot.lane.b32.xlu0 %v3350_v21, %s3107_s17 }
  0x99   : > { %736 = vrot.lane.b32.xlu1 %v3471_v51, %s3106_s22  ;;  %s2998_s22 = scalar_lea.hbm %s5200_s6, 64 }
  0x9c   : > { %759 = vrot.lane.b32.xlu2 %v3324_v8, %s3107_s17 }
  0x9f   : > { %755 = vrot.lane.b32.xlu0 %v3383_v32, %s3107_s17 }
  0xa1   : > { %751 = vrot.lane.b32.xlu1 %v3381_v31, %s3107_s17 }
  0xa4   : > { %765 = vrot.lane.b32.xlu2 %v3334_v13, %s3107_s17 }
  0xa6   : > { %v3479_v52 = vpop.permute.xlu2 %660 }
  0xa7   : > { %5342 = vst [vmem:[#allocation30_spill] sm:$0xff] %v3479_v52  ;;  %761 = vrot.lane.b32.xlu0 %v3326_v9, %s3107_s17 }
  0xa9   : > { %757 = vrot.lane.b32.xlu1 %v3374_v29, %s3107_s17 }
  0xac   : > { %780 = vrot.lane.b32.xlu2 %v3379_v30, %s3108_s16 }
  0xae   : > { %v3484_v53 = vpop.permute.xlu2 %666 }
  0xaf   : > { %5343 = vst [vmem:[#allocation31_spill] sm:$0xff] %v3484_v53  ;;  %776 = vrot.lane.b32.xlu0 %v3356_v23, %s3108_s16 }
  0xb1   : > { %763 = vrot.lane.b32.xlu1 %v3336_v14, %s3107_s17 }
  0xb4   : > { %786 = vrot.lane.b32.xlu2 %v3329_v10, %s3108_s16 }
  0xb6   : > { %v3489_v54 = vpop.permute.xlu2 %696 }
  0xb7   : > { %5344 = vst [vmem:[#allocation32_spill] sm:$0xff] %v3489_v54  ;;  %782 = vrot.lane.b32.xlu0 %v3396_v35, %s3108_s16 }
  0xb9   : > { %778 = vrot.lane.b32.xlu1 %v3391_v34, %s3108_s16 }
  0xbc   : > { %792 = vrot.lane.b32.xlu2 %v3348_v19, %s3108_s16 }
  0xbe   : > { %v3494_v55 = vpop.permute.xlu2 %658  ;;  %v3497_v56 = vpop.permute.xlu0 %662 }
  0xbf   : > { %5345 = vst [vmem:[#allocation33_spill] sm:$0xff] %v3494_v55  ;;  %788 = vrot.lane.b32.xlu0 %v3332_v11, %s3108_s16 }
  0xc0   : > { %5346 = vst [vmem:[#allocation34_spill] sm:$0xff] %v3497_v56  ;;  %v3507_v59 = vpop.permute.xlu1 %664 }
  0xc1   : > { %784 = vrot.lane.b32.xlu1 %v3388_v33, %s3108_s16  ;;  %5349 = vst [vmem:[#allocation37_spill] sm:$0xff] %v3507_v59 }
  0xc4   : > { %807 = vrot.lane.b32.xlu2 %v3403_v36, %s3109_s21 }
  0xc6   : > { %v3501_v57 = vpop.permute.xlu2 %690 }
  0xc7   : > { %5347 = vst [vmem:[#allocation35_spill] sm:$0xff] %v3501_v57  ;;  %803 = vrot.lane.b32.xlu0 %v3368_v27, %s3109_s21 }
  0xc9   : > { %v3504_v58 = vpop.permute.xlu0 %650  ;;  %790 = vrot.lane.b32.xlu1 %v3343_v15, %s3108_s16 }
  0xca   : > { %5348 = vst [vmem:[#allocation36_spill] sm:$0xff] %v3504_v58 }
  0xcc   : > { %813 = vrot.lane.b32.xlu2 %v3365_v26, %s3109_s21 }
  0xce   : > { %v3510_v60 = vpop.permute.xlu2 %702 }
  0xcf   : > { %5350 = vst [vmem:[#allocation38_spill] sm:$0xff] %v3510_v60  ;;  %809 = vrot.lane.b32.xlu0 %v3406_v37, %s3109_s21 }
  0xd1   : > { %v3513_v61 = vpop.permute.xlu0 %686  ;;  %805 = vrot.lane.b32.xlu1 %v3411_v38, %s3109_s21 }
  0xd2   : > { %5351 = vst [vmem:[#allocation39_spill] sm:$0xff] %v3513_v61 }
  0xd3   : > { %v3516_v62 = vpop.permute.xlu1 %654 }
  0xd4   : > { %5352 = vst [vmem:[#allocation40_spill] sm:$0xff] %v3516_v62  ;;  %819 = vrot.lane.b32.xlu2 %v3418_v39, %s3109_s21 }
  0xd6   : > { %v3519_v63 = vpop.permute.xlu2 %726 }
  0xd7   : > { %5353 = vst [vmem:[#allocation41_spill] sm:$0xff] %v3519_v63  ;;  %815 = vrot.lane.b32.xlu0 %v3421_v40, %s3109_s21 }
  0xd9   : > { %811 = vrot.lane.b32.xlu1 %v3426_v41, %s3109_s21  ;;  %v3523_v1 = vpop.permute.xlu0 %652 }
  0xda   : > { %5354 = vst [vmem:[#allocation42_spill] sm:$0xff] %v3523_v1 }
  0xdb   : > { %v3525_v2 = vpop.permute.xlu1 %656 }
  0xdc   : > { %5355 = vst [vmem:[#allocation43_spill] sm:$0xff] %v3525_v2  ;;  %834 = vrot.lane.b32.xlu2 %v3433_v42, %s3110_s23 }
  0xde   : > { %v3528_v3 = vpop.permute.xlu2 %732 }
  0xdf   : > { %5356 = vst [vmem:[#allocation44_spill] sm:$0xff] %v3528_v3  ;;  %830 = vrot.lane.b32.xlu0 %v3436_v43, %s3110_s23 }
  0xe1   : > { %817 = vrot.lane.b32.xlu1 %v3440_v44, %s3109_s21  ;;  %v3532_v4 = vpop.permute.xlu0 %692 }
  0xe2   : > { %5357 = vst [vmem:[#allocation45_spill] sm:$0xff] %v3532_v4 }
  0xe3   : > { %v3534_v5 = vpop.permute.xlu1 %688 }
  0xe4   : > { %5358 = vst [vmem:[#allocation46_spill] sm:$0xff] %v3534_v5  ;;  %840 = vrot.lane.b32.xlu2 %v3446_v45, %s3110_s23 }
  0xe6   : > { %v3537_v6 = vpop.permute.xlu2 %738 }
  0xe7   : > { %5359 = vst [vmem:[#allocation47_spill] sm:$0xff] %v3537_v6  ;;  %836 = vrot.lane.b32.xlu0 %v3449_v46, %s3110_s23  ;;  %v674_v6 = vsel %vm668_vm0, %v3479_v52, %v3497_v56 }
  0xe9   : > { %832 = vrot.lane.b32.xlu1 %v3453_v47, %s3110_s23  ;;  %v3541_v7 = vpop.permute.xlu0 %698 }
  0xea   : > { %5360 = vst [vmem:[#allocation48_spill] sm:$0xff] %v3541_v7  ;;  %v710_v60 = vsel %vm5298_vm1, %v3489_v54, %v3541_v7  ;;  %vm1063_vm1 = vcmask 64512  }
  0xeb   : > { %v3543_v12 = vpop.permute.xlu1 %694 }
  0xec   : > { %5361 = vst [vmem:[#allocation49_spill] sm:$0xff] %v3543_v12  ;;  %846 = vrot.lane.b32.xlu2 %v3458_v48, %s3110_s23 }
  0xee   : > { %v3546_v16 = vpop.permute.xlu2 %753 }
  0xef   : > { %5362 = vst [vmem:[#allocation50_spill] sm:$0xff] %v3546_v16  ;;  %842 = vrot.lane.b32.xlu0 %v3461_v49, %s3110_s23 }
  0xf1   : > { %838 = vrot.lane.b32.xlu1 %v3465_v50, %s3110_s23  ;;  %v3550_v17 = vpop.permute.xlu0 %722 }
  0xf2   : > { %5363 = vst [vmem:[#allocation51_spill] sm:$0xff] %v3550_v17  ;;  %v3579_v17 = vsel %vm1072_vm2, %v3324_v8, %v674_v6 }
  0xf3   : > { %v3552_v18 = vpop.permute.xlu1 %700  ;;  %5369 = vst [vmem:[#allocation57_spill] sm:$0xff] %v3579_v17  ;;  %v1104_v54 = vsel %vm1092_vm3, %v3579_v17, %v710_v60 }
  0xf4   : > { %5364 = vst [vmem:[#allocation52_spill] sm:$0xff] %v3552_v18  ;;  %861 = vrot.lane.b32.xlu2 %v3372_v28, %s3111_s25 }
  0xf6   : > { %v3556_v20 = vpop.permute.xlu2 %759 }
  0xf7   : > { %5365 = vst [vmem:[#allocation53_spill] sm:$0xff] %v3556_v20  ;;  %857 = vrot.lane.b32.xlu0 %v3350_v21, %s3111_s25 }
  0xf9   : > { %844 = vrot.lane.b32.xlu1 %v3471_v51, %s3110_s23  ;;  %v3561_v22 = vpop.permute.xlu0 %728  ;;  %s2710_s23 = sshll.u32 %s3302_s1, 5 }
  0xfa   : > { %5366 = vst [vmem:[#allocation54_spill] sm:$0xff] %v3561_v22 }
  0xfb   : > { %v3563_v0 = vpop.permute.xlu1 %724 }
  0xfc   : > { %5367 = vst [vmem:[#allocation55_spill] sm:$0xff] %v3563_v0  ;;  %867 = vrot.lane.b32.xlu2 %v3324_v8, %s3111_s25 }
  0xfe   : > { %v3573_v18 = vpop.permute.xlu2 %765 }
  0xff   : > { %5368 = vst [vmem:[#allocation56_spill] sm:$0xff] %v3573_v18  ;;  %863 = vrot.lane.b32.xlu0 %v3383_v32, %s3111_s25 }
 0x101   : > { %859 = vrot.lane.b32.xlu1 %v3381_v31, %s3111_s25  ;;  %v3583_v0 = vpop.permute.xlu0 %734 }
 0x102   : > { %5370 = vst [vmem:[#allocation58_spill] sm:$0xff] %v3583_v0  ;;  %v746_v7 = vsel %vm5295_vm4, %v3528_v3, %v3583_v0  ;;  %vm1035_vm4 = vcmask 130048  }
 0x103   : > { %v3590_v61 = vpop.permute.xlu1 %730  ;;  %v3593_v6 = vsel %vm1111_vm5, %v1104_v54, %v746_v7 }
 0x104   : > { %5371 = vst [vmem:[#allocation59_spill] sm:$0xff] %v3590_v61  ;;  %873 = vrot.lane.b32.xlu2 %v3334_v13, %s3111_s25 }
 0x105   : > { %5372 = vst [vmem:[#allocation60_spill] sm:$0xff] %v3593_v6 }
 0x106   : > { %v3597_v5 = vpop.permute.xlu2 %780 }
 0x107   : > { %5373 = vst [vmem:[#allocation61_spill] sm:$0xff] %v3597_v5  ;;  %869 = vrot.lane.b32.xlu0 %v3326_v9, %s3111_s25  ;;  %v613_v5 = vpack.c.bf16 %v3360_v25, %v3358_v24 }
 0x109   : > { %865 = vrot.lane.b32.xlu1 %v3374_v29, %s3111_s25  ;;  %v3603_v0 = vpop.permute.xlu0 %749 }
 0x10a   : > { %5374 = vst [vmem:[#allocation62_spill] sm:$0xff] %v3603_v0 }
 0x10b   : > { %v3605_v3 = vpop.permute.xlu1 %736 }
 0x10c   : > { %5375 = vst [vmem:[#allocation63_spill] sm:$0xff] %v3605_v3  ;;  %888 = vrot.lane.b32.xlu2 %v3379_v30, %s3112_s28 }
 0x10e   : > { %v3609_v54 = vpop.permute.xlu2 %786 }
 0x10f   : > { %5376 = vst [vmem:[#allocation64_spill] sm:$0xff] %v3609_v54  ;;  %884 = vrot.lane.b32.xlu0 %v3356_v23, %s3112_s28 }
 0x111   : > { %871 = vrot.lane.b32.xlu1 %v3336_v14, %s3111_s25  ;;  %v3615_v60 = vpop.permute.xlu0 %755  ;;  %s5087_s25 = scalar_lea.vmem [#allocation10], %s2710_s23 }
 0x112   : > { %5377 = vst [vmem:[#allocation65_spill] sm:$0xff] %v3615_v60 }
 0x113   : > { %v3617_v7 = vpop.permute.xlu1 %751 }
 0x114   : > { %5378 = vst [vmem:[#allocation66_spill] sm:$0xff] %v3617_v7  ;;  %894 = vrot.lane.b32.xlu2 %v3329_v10, %s3112_s28 }
 0x116   : > { %v3621_v6 = vpop.permute.xlu2 %792 }
 0x117   : > { %5379 = vst [vmem:[#allocation67_spill] sm:$0xff] %v3621_v6  ;;  %890 = vrot.lane.b32.xlu0 %v3396_v35, %s3112_s28 }
 0x119   : > { %886 = vrot.lane.b32.xlu1 %v3391_v34, %s3112_s28  ;;  %v762_v3 = vpop.permute.xlu0 %761 }
 0x11a   : > { %v773_v0 = vsel %vm5304_vm6, %v3556_v20, %v762_v3 }
 0x11b   : > { %v3627_v23 = vpop.permute.xlu1 %757 }
 0x11c   : > { %5380 = vst [vmem:[#allocation68_spill] sm:$0xff] %v3627_v23  ;;  %900 = vrot.lane.b32.xlu2 %v3348_v19, %s3112_s28 }
 0x11e   : > { %v3631_v58 = vpop.permute.xlu2 %807 }
 0x11f   : > { %5381 = vst [vmem:[#allocation69_spill] sm:$0xff] %v3631_v58  ;;  %896 = vrot.lane.b32.xlu0 %v3332_v11, %s3112_s28 }
 0x121   : > { %892 = vrot.lane.b32.xlu1 %v3388_v33, %s3112_s28  ;;  %v3637_v61 = vpop.permute.xlu0 %776 }
 0x122   : > { %5382 = vst [vmem:[#allocation70_spill] sm:$0xff] %v3637_v61 }
 0x123   : > { %v764_v63 = vpop.permute.xlu1 %763 }
 0x124   : > { %915 = vrot.lane.b32.xlu2 %v3403_v36, %s3113_s29 }
 0x126   : > { %v3641_v22 = vpop.permute.xlu2 %813 }
 0x127   : > { %5383 = vst [vmem:[#allocation71_spill] sm:$0xff] %v3641_v22  ;;  %911 = vrot.lane.b32.xlu0 %v3368_v27, %s3113_s29 }
 0x129   : > { %898 = vrot.lane.b32.xlu1 %v3343_v15, %s3112_s28  ;;  %v3647_v12 = vpop.permute.xlu0 %782 }
 0x12a   : > { %5384 = vst [vmem:[#allocation72_spill] sm:$0xff] %v3647_v12 }
 0x12b   : > { %v3649_v57 = vpop.permute.xlu1 %778 }
 0x12c   : > { %5385 = vst [vmem:[#allocation73_spill] sm:$0xff] %v3649_v57  ;;  %921 = vrot.lane.b32.xlu2 %v3365_v26, %s3113_s29 }
 0x12e   : > { %v3653_v4 = vpop.permute.xlu2 %819 }
 0x12f   : > { %5386 = vst [vmem:[#allocation74_spill] sm:$0xff] %v3653_v4  ;;  %917 = vrot.lane.b32.xlu0 %v3406_v37, %s3113_s29 }
 0x131   : > { %913 = vrot.lane.b32.xlu1 %v3411_v38, %s3113_s29  ;;  %v789_v27 = vpop.permute.xlu0 %788 }
 0x132   : > { %v800_v7 = vsel %vm5313_vm7, %v3609_v54, %v789_v27  ;;  %v774_v54 = vsel %vm5304_vm6, %v762_v3, %v764_v63 }
 0x133   : > { %v1147_v61 = vsel %vm1072_vm2, %v773_v0, %v800_v7  ;;  %v3664_v57 = vpop.permute.xlu1 %784  ;;  %v775_v0 = vsel %vm5304_vm6, %v764_v63, %v3573_v18  ;;  %vm1422_vm6 = vcmask 318464  }
 0x134   : > { %5387 = vst [vmem:[#allocation75_spill] sm:$0xff] %v3664_v57  ;;  %927 = vrot.lane.b32.xlu2 %v3418_v39, %s3113_s29 }
 0x136   : > { %v3668_v23 = vpop.permute.xlu2 %834 }
 0x137   : > { %5388 = vst [vmem:[#allocation76_spill] sm:$0xff] %v3668_v23  ;;  %923 = vrot.lane.b32.xlu0 %v3421_v40, %s3113_s29 }
 0x139   : > { %919 = vrot.lane.b32.xlu1 %v3426_v41, %s3113_s29  ;;  %v3674_v58 = vpop.permute.xlu0 %803 }
 0x13a   : > { %5389 = vst [vmem:[#allocation77_spill] sm:$0xff] %v3674_v58 }
 0x13b   : > { %v791_v20 = vpop.permute.xlu1 %790 }
 0x13c   : > { %v801_v7 = vsel %vm5313_vm7, %v789_v27, %v791_v20  ;;  %v802_v57 = vsel %vm5313_vm7, %v791_v20, %v3621_v6  ;;  %942 = vrot.lane.b32.xlu2 %v3433_v42, %s3114_s26  ;;  %vm1449_vm7 = vcmask 310272  }
 0x13d   : > { %v1150_v23 = vsel %vm1072_vm2, %v774_v54, %v801_v7  ;;  %v1153_v16 = vsel %vm1072_vm2, %v775_v0, %v802_v57 }
 0x13e   : > { %v3685_v60 = vpop.permute.xlu2 %840 }
 0x13f   : > { %5390 = vst [vmem:[#allocation78_spill] sm:$0xff] %v3685_v60  ;;  %938 = vrot.lane.b32.xlu0 %v3436_v43, %s3114_s26 }
 0x141   : > { %925 = vrot.lane.b32.xlu1 %v3440_v44, %s3113_s29  ;;  %v3690_v63 = vpop.permute.xlu0 %809 }
 0x142   : > { %5391 = vst [vmem:[#allocation79_spill] sm:$0xff] %v3690_v63 }
 0x143   : > { %v3692_v3 = vpop.permute.xlu1 %805 }
 0x144   : > { %5392 = vst [vmem:[#allocation80_spill] sm:$0xff] %v3692_v3  ;;  %948 = vrot.lane.b32.xlu2 %v3446_v45, %s3114_s26 }
 0x146   : > { %v3695_v20 = vpop.permute.xlu2 %846 }
 0x147   : > { %5393 = vst [vmem:[#allocation81_spill] sm:$0xff] %v3695_v20  ;;  %944 = vrot.lane.b32.xlu0 %v3449_v46, %s3114_s26 }
 0x149   : > { %940 = vrot.lane.b32.xlu1 %v3453_v47, %s3114_s26  ;;  %v816_v57 = vpop.permute.xlu0 %815 }
 0x14b   : > { %v3699_v54 = vpop.permute.xlu1 %811 }
 0x14c   : > { %5394 = vst [vmem:[#allocation82_spill] sm:$0xff] %v3699_v54  ;;  %954 = vrot.lane.b32.xlu2 %v3458_v48, %s3114_s26 }
 0x14e   : > { %v3702_v43 = vpop.permute.xlu2 %861 }
 0x14f   : > { %5395 = vst [vmem:[#allocation83_spill] sm:$0xff] %v3702_v43  ;;  %950 = vrot.lane.b32.xlu0 %v3461_v49, %s3114_s26 }
 0x151   : > { %946 = vrot.lane.b32.xlu1 %v3465_v50, %s3114_s26  ;;  %v3706_v27 = vpop.permute.xlu0 %830 }
 0x152   : > { %5396 = vst [vmem:[#allocation84_spill] sm:$0xff] %v3706_v27  ;;  %v827_v27 = vsel %vm5302_vm8, %v3641_v22, %v816_v57 }
 0x153   : > { %v818_v0 = vpop.permute.xlu1 %817  ;;  %v1168_v3 = vsel %vm1092_vm3, %v1147_v61, %v827_v27 }
 0x154   : > { %969 = vrot.lane.b32.xlu2 %v3372_v28, %s3115_s27  ;;  %v828_v63 = vsel %vm5302_vm8, %v816_v57, %v818_v0 }
 0x156   : > { %v3710_v7 = vpop.permute.xlu2 %867 }
 0x157   : > { %5397 = vst [vmem:[#allocation85_spill] sm:$0xff] %v3710_v7  ;;  %965 = vrot.lane.b32.xlu0 %v3350_v21, %s3115_s27 }
 0x159   : > { %952 = vrot.lane.b32.xlu1 %v3471_v51, %s3114_s26  ;;  %v3715_v18 = vpop.permute.xlu0 %836 }
 0x15a   : > { %5398 = vst [vmem:[#allocation86_spill] sm:$0xff] %v3715_v18 }
 0x15b   : > { %v3717_v6 = vpop.permute.xlu1 %832 }
 0x15c   : > { %5399 = vst [vmem:[#allocation87_spill] sm:$0xff] %v3717_v6  ;;  %975 = vrot.lane.b32.xlu2 %v3324_v8, %s3115_s27 }
 0x15e   : > { %v3723_v58 = vpop.permute.xlu2 %873 }
 0x15f   : > { %5400 = vst [vmem:[#allocation88_spill] sm:$0xff] %v3723_v58  ;;  %971 = vrot.lane.b32.xlu0 %v3383_v32, %s3115_s27 }
 0x161   : > { %967 = vrot.lane.b32.xlu1 %v3381_v31, %s3115_s27  ;;  %v843_v21 = vpop.permute.xlu0 %842 }
 0x162   : > { %v854_v6 = vsel %vm5301_vm9, %v3685_v60, %v843_v21  ;;  %v829_v60 = vsel %vm5302_vm8, %v818_v0, %v3653_v4  ;;  %vm1395_vm8 = vcmask 384000  }
 0x163   : > { %v3732_v18 = vpop.permute.xlu1 %838  ;;  %v3735_v54 = vsel %vm1111_vm5, %v1168_v3, %v854_v6 }
 0x164   : > { %5401 = vst [vmem:[#allocation89_spill] sm:$0xff] %v3732_v18  ;;  %981 = vrot.lane.b32.xlu2 %v3334_v13, %s3115_s27  ;;  %v1172_v18 = vsel %vm1092_vm3, %v1153_v16, %v829_v60 }
 0x165   : > { %5402 = vst [vmem:[#allocation90_spill] sm:$0xff] %v3735_v54  ;;  %v1170_v54 = vsel %vm1092_vm3, %v1150_v23, %v828_v63 }
 0x166   : > { %v3739_v22 = vpop.permute.xlu2 %888 }
 0x167   : > { %977 = vrot.lane.b32.xlu0 %v3326_v9, %s3115_s27 }
 0x169   : > { %973 = vrot.lane.b32.xlu1 %v3374_v29, %s3115_s27  ;;  %v3748_v61 = vpop.permute.xlu0 %857 }
 0x16a   : > { %5403 = vst [vmem:[#allocation91_spill] sm:$0xff] %v3748_v61  ;;  %v639_v61 = vunpack.c.l.b16 %v613_v5 }
 0x16b   : > { %v845_v6 = vpop.permute.xlu1 %844 }
 0x16c   : > { %v855_v3 = vsel %vm5301_vm9, %v843_v21, %v845_v6  ;;  %v856_v27 = vsel %vm5301_vm9, %v845_v6, %v3695_v20  ;;  %996 = vrot.lane.b32.xlu2 %v3396_v35, %s3116_s24  ;;  %vm1368_vm9 = vcmask 392192  }
 0x16d   : > { %v3757_v57 = vsel %vm1111_vm5, %v1170_v54, %v855_v3  ;;  %v3760_v0 = vsel %vm1111_vm5, %v1172_v18, %v856_v27 }
 0x16e   : > { %5404 = vst [vmem:[#allocation92_spill] sm:$0xff] %v3757_v57  ;;  %v3762_v4 = vpop.permute.xlu2 %894 }
 0x16f   : > { %5405 = vst [vmem:[#allocation93_spill] sm:$0xff] %v3760_v0  ;;  %992 = vrot.lane.b32.xlu0 %v3391_v34, %s3116_s24 }
 0x171   : > { %979 = vrot.lane.b32.xlu1 %v3336_v14, %s3115_s27  ;;  %v3767_v21 = vpop.permute.xlu0 %863 }
 0x172   : > { %5406 = vst [vmem:[#allocation94_spill] sm:$0xff] %v3767_v21 }
 0x173   : > { %v3769_v23 = vpop.permute.xlu1 %859 }
 0x174   : > { %5407 = vst [vmem:[#allocation95_spill] sm:$0xff] %v3769_v23  ;;  %1002 = vrot.lane.b32.xlu2 %v3332_v11, %s3116_s24 }
 0x176   : > { %v3772_v16 = vpop.permute.xlu2 %900 }
 0x177   : > { %998 = vrot.lane.b32.xlu0 %v3388_v33, %s3116_s24 }
 0x179   : > { %994 = vrot.lane.b32.xlu1 %v3379_v30, %s3116_s24  ;;  %v3776_v18 = vpop.permute.xlu0 %869 }
 0x17b   : > { %v3778_v60 = vpop.permute.xlu1 %865 }
 0x17c   : > { %5408 = vst [vmem:[#allocation96_spill] sm:$0xff] %v3778_v60  ;;  %1017 = vrot.lane.b32.xlu2 %v3411_v38, %s3117_s13  ;;  %v3823_v60 = vpack.c.b16 %v639_v61, %v639_v61 }
 0x17e   : > { %v3782_v63 = vpop.permute.xlu2 %915  ;;  %5414 = vst [vmem:[#allocation102_spill] sm:$0xff] %v3823_v60  ;;  %v3828_v25 = vrot.slane %v3823_v60, 4  ;;  %v3849_v21 = vrot.slane %v3823_v60, 6  ;;  %v3866_v1 = vrot.slane %v3823_v60, 2 }
 0x17f   : > { %5409 = vst [vmem:[#allocation97_spill] sm:$0xff] %v3782_v63  ;;  %1004 = vrot.lane.b32.xlu0 %v3343_v15, %s3116_s24 }
 0x181   : > { %1000 = vrot.lane.b32.xlu1 %v3329_v10, %s3116_s24  ;;  %v3786_v54 = vpop.permute.xlu0 %884 }
 0x182   : > { %5410 = vst [vmem:[#allocation98_spill] sm:$0xff] %v3786_v54 }
 0x183   : > { %v3788_v6 = vpop.permute.xlu1 %871 }
 0x184   : > { %1023 = vrot.lane.b32.xlu2 %v3426_v41, %s3117_s13 }
 0x186   : > { %v3792_v3 = vpop.permute.xlu2 %921 }
 0x187   : > { %1019 = vrot.lane.b32.xlu0 %v3403_v36, %s3117_s13 }
 0x189   : > { %1006 = vrot.lane.b32.xlu1 %v3348_v19, %s3116_s24  ;;  %v3797_v27 = vpop.permute.xlu0 %890 }
 0x18b   : > { %v3799_v20 = vpop.permute.xlu1 %886 }
 0x18c   : > { %5411 = vst [vmem:[#allocation99_spill] sm:$0xff] %v3799_v20  ;;  %1029 = vrot.lane.b32.xlu2 %v3440_v44, %s3117_s13 }
 0x18e   : > { %v3803_v0 = vpop.permute.xlu2 %927 }
 0x18f   : > { %1025 = vrot.lane.b32.xlu0 %v3365_v26, %s3117_s13 }
 0x191   : > { %1021 = vrot.lane.b32.xlu1 %v3406_v37, %s3117_s13  ;;  %v897_v57 = vpop.permute.xlu0 %896 }
 0x193   : > { %v3811_v12 = vpop.permute.xlu1 %892 }
 0x194   : > { %1045 = vrot.lane.b32.xlu2 %v3453_v47, %s3118_s5 }
 0x196   : > { %v3815_v23 = vpop.permute.xlu2 %942 }
 0x197   : > { %5412 = vst [vmem:[#allocation100_spill] sm:$0xff] %v3815_v23  ;;  %1031 = vrot.lane.b32.xlu0 %v3418_v39, %s3117_s13 }
 0x199   : > { %1027 = vrot.lane.b32.xlu1 %v3421_v40, %s3117_s13  ;;  %v3821_v54 = vpop.permute.xlu0 %911 }
 0x19a   : > { %5413 = vst [vmem:[#allocation101_spill] sm:$0xff] %v3821_v54 }
 0x19b   : > { %v899_v24 = vpop.permute.xlu1 %898 }
 0x19c   : > { %1051 = vrot.lane.b32.xlu2 %v3465_v50, %s3118_s5 }
 0x19e   : > { %v3830_v5 = vpop.permute.xlu2 %948 }
 0x19f   : > { %5415 = vst [vmem:[#allocation103_spill] sm:$0xff] %v3830_v5  ;;  %1047 = vrot.lane.b32.xlu0 %v3433_v42, %s3118_s5 }
 0x1a1   : > { %1033 = vrot.lane.b32.xlu1 %v3828_v25, %s3117_s13  ;;  %v3836_v23 = vpop.permute.xlu0 %917 }
 0x1a2   : > { %5416 = vst [vmem:[#allocation104_spill] sm:$0xff] %v3836_v23 }
 0x1a3   : > { %v3838_v54 = vpop.permute.xlu1 %913 }
 0x1a4   : > { %5417 = vst [vmem:[#allocation105_spill] sm:$0xff] %v3838_v54  ;;  %1057 = vrot.lane.b32.xlu2 %v3471_v51, %s3118_s5 }
 0x1a6   : > { %v3842_v61 = vpop.permute.xlu2 %954 }
 0x1a7   : > { %5418 = vst [vmem:[#allocation106_spill] sm:$0xff] %v3842_v61  ;;  %1053 = vrot.lane.b32.xlu0 %v3446_v45, %s3118_s5 }
 0x1a9   : > { %1049 = vrot.lane.b32.xlu1 %v3449_v46, %s3118_s5  ;;  %v924_v43 = vpop.permute.xlu0 %923 }
 0x1aa   : > { %v3886_v62 = vsel %vm929_vm11, %v3792_v3, %v924_v43 }
 0x1ab   : > { %v3851_v56 = vpop.permute.xlu1 %919 }
 0x1ac   : > { %5419 = vst [vmem:[#allocation107_spill] sm:$0xff] %v3851_v56  ;;  %1320 = vrot.lane.b32.xlu2 %v3849_v21, %s3104_s19  ;;  %s3126_s19 = smov 7  }
 0x1ae   : > { %v3855_v59 = vpop.permute.xlu2 %969 }
 0x1af   : > { %5420 = vst [vmem:[#allocation108_spill] sm:$0xff] %v3855_v59  ;;  %1059 = vrot.lane.b32.xlu0 %v3458_v48, %s3118_s5 }
 0x1b1   : > { %1055 = vrot.lane.b32.xlu1 %v3461_v49, %s3118_s5  ;;  %v3861_v53 = vpop.permute.xlu0 %938 }
 0x1b2   : > { %5421 = vst [vmem:[#allocation109_spill] sm:$0xff] %v3861_v53  ;;  %v3882_v53 = vsel %vm902_vm10, %v3762_v4, %v897_v57 }
 0x1b3   : > { %v926_v17 = vpop.permute.xlu1 %925 }
 0x1b4   : > { %1327 = vrot.lane.b32.xlu2 %v3406_v37, %s3119_s11 }
 0x1b6   : > { %v3868_v55 = vpop.permute.xlu2 %975 }
 0x1b7   : > { %5422 = vst [vmem:[#allocation110_spill] sm:$0xff] %v3868_v55  ;;  %1323 = vrot.lane.b32.xlu0 %v3411_v38, %s3119_s11 }
 0x1b9   : > { %1061 = vrot.lane.b32.xlu1 %v3866_v1, %s3118_s5  ;;  %v3874_v59 = vpop.permute.xlu0 %944 }
 0x1ba   : > { %5423 = vst [vmem:[#allocation111_spill] sm:$0xff] %v3874_v59 }
 0x1bb   : > { %v3876_v52 = vpop.permute.xlu1 %940 }
 0x1bc   : > { %5424 = vst [vmem:[#allocation112_spill] sm:$0xff] %v3876_v52  ;;  %1333 = vrot.lane.b32.xlu2 %v3421_v40, %s3119_s11  ;;  %v881_v52 = vsel %vm875_vm12, %v3710_v7, %v3776_v18  ;;  %v3915_v7 = vsel %vm902_vm10, %v897_v57, %v899_v24  ;;  %v882_v57 = vsel %vm875_vm12, %v3776_v18, %v3788_v6 }
 0x1bd   : > { %v1210_v59 = vsel %vm1072_vm2, %v881_v52, %v3882_v53 }
 0x1be   : > { %v3888_v2 = vpop.permute.xlu2 %981  ;;  %v1231_v63 = vsel %vm1092_vm3, %v1210_v59, %v3886_v62  ;;  %v3922_v59 = vsel %vm929_vm11, %v924_v43, %v926_v17  ;;  %v1213_v43 = vsel %vm1072_vm2, %v882_v57, %v3915_v7 }
 0x1bf   : > { %1329 = vrot.lane.b32.xlu0 %v3426_v41, %s3119_s11 }
 0x1c1   : > { %1325 = vrot.lane.b32.xlu1 %v3403_v36, %s3119_s11  ;;  %v951_v54 = vpop.permute.xlu0 %950 }
 0x1c2   : > { %v962_v20 = vsel %vm5314_vm13, %v3830_v5, %v951_v54  ;;  %v3919_v5 = vsel %vm902_vm10, %v899_v24, %v3772_v16  ;;  %v883_v24 = vsel %vm875_vm12, %v3788_v6, %v3723_v58 }
 0x1c3   : > { %v3903_v23 = vpop.permute.xlu1 %946  ;;  %v3906_v56 = vsel %vm1111_vm5, %v1231_v63, %v962_v20  ;;  %v3926_v20 = vsel %vm929_vm11, %v926_v17, %v3803_v0  ;;  %v1216_v17 = vsel %vm1072_vm2, %v883_v24, %v3919_v5 }
 0x1c4   : > { %5425 = vst [vmem:[#allocation113_spill] sm:$0xff] %v3903_v23  ;;  %1339 = vrot.lane.b32.xlu2 %v3828_v25, %s3119_s11  ;;  %v1235_v18 = vsel %vm1092_vm3, %v1216_v17, %v3926_v20 }
 0x1c5   : > { %5426 = vst [vmem:[#allocation114_spill] sm:$0xff] %v3906_v56 }
 0x1c6   : > { %v3910_v52 = vpop.permute.xlu2 %996 }
 0x1c7   : > { %5427 = vst [vmem:[#allocation115_spill] sm:$0xff] %v3910_v52  ;;  %1335 = vrot.lane.b32.xlu0 %v3440_v44, %s3119_s11  ;;  %v1233_v52 = vsel %vm1092_vm3, %v1213_v43, %v3922_v59 }
 0x1c9   : > { %1331 = vrot.lane.b32.xlu1 %v3365_v26, %s3119_s11  ;;  %v3930_v63 = vpop.permute.xlu0 %965 }
 0x1ca   : > { %5428 = vst [vmem:[#allocation116_spill] sm:$0xff] %v3930_v63 }
 0x1cb   : > { %v953_v56 = vpop.permute.xlu1 %952 }
 0x1cc   : > { %v963_v23 = vsel %vm5314_vm13, %v951_v54, %v953_v56  ;;  %v964_v63 = vsel %vm5314_vm13, %v953_v56, %v3842_v61  ;;  %1354 = vrot.lane.b32.xlu2 %v3449_v46, %s3120_s30  ;;  %vm1476_vm13 = vcmask 302080  }
 0x1cd   : > { %v3951_v6 = vsel %vm1111_vm5, %v1233_v52, %v963_v23  ;;  %v3954_v57 = vsel %vm1111_vm5, %v1235_v18, %v964_v63 }
 0x1ce   : > { %5429 = vst [vmem:[#allocation117_spill] sm:$0xff] %v3951_v6  ;;  %v1003_v24 = vpop.permute.xlu2 %1002 }
 0x1cf   : > { %5430 = vst [vmem:[#allocation118_spill] sm:$0xff] %v3954_v57  ;;  %1350 = vrot.lane.b32.xlu0 %v3453_v47, %s3120_s30 }
 0x1d1   : > { %1337 = vrot.lane.b32.xlu1 %v3418_v39, %s3119_s11  ;;  %v3959_v56 = vpop.permute.xlu0 %971 }
 0x1d2   : > { %5431 = vst [vmem:[#allocation119_spill] sm:$0xff] %v3959_v56 }
 0x1d3   : > { %v3961_v54 = vpop.permute.xlu1 %967 }
 0x1d4   : > { %5432 = vst [vmem:[#allocation120_spill] sm:$0xff] %v3961_v54  ;;  %1360 = vrot.lane.b32.xlu2 %v3461_v49, %s3120_s30 }
 0x1d6   : > { %v3964_v43 = vpop.permute.xlu2 %1017 }
 0x1d7   : > { %5433 = vst [vmem:[#allocation121_spill] sm:$0xff] %v3964_v43  ;;  %1356 = vrot.lane.b32.xlu0 %v3465_v50, %s3120_s30 }
 0x1d9   : > { %1352 = vrot.lane.b32.xlu1 %v3433_v42, %s3120_s30  ;;  %v978_v23 = vpop.permute.xlu0 %977 }
 0x1db   : > { %v3968_v52 = vpop.permute.xlu1 %973 }
 0x1dc   : > { %5434 = vst [vmem:[#allocation122_spill] sm:$0xff] %v3968_v52  ;;  %1366 = vrot.lane.b32.xlu2 %v3866_v1, %s3120_s30 }
 0x1de   : > { %v3971_v63 = vpop.permute.xlu2 %1023 }
 0x1df   : > { %5435 = vst [vmem:[#allocation123_spill] sm:$0xff] %v3971_v63  ;;  %1362 = vrot.lane.b32.xlu0 %v3471_v51, %s3120_s30 }
 0x1e1   : > { %1358 = vrot.lane.b32.xlu1 %v3446_v45, %s3120_s30  ;;  %v3975_v17 = vpop.permute.xlu0 %992 }
 0x1e2   : > { %5436 = vst [vmem:[#allocation124_spill] sm:$0xff] %v3975_v17 }
 0x1e3   : > { %v980_v18 = vpop.permute.xlu1 %979 }
 0x1e4   : > { %1381 = vrot.lane.b32.xlu2 %v3383_v32, %s3121_s8  ;;  %v990_v52 = vsel %vm983_vm14, %v978_v23, %v980_v18 }
 0x1e6   : > { %v1030_v57 = vpop.permute.xlu2 %1029 }
 0x1e7   : > { %1377 = vrot.lane.b32.xlu0 %v3381_v31, %s3121_s8 }
 0x1e9   : > { %1364 = vrot.lane.b32.xlu1 %v3458_v48, %s3120_s30  ;;  %v3982_v61 = vpop.permute.xlu0 %998 }
 0x1ea   : > { %5437 = vst [vmem:[#allocation125_spill] sm:$0xff] %v3982_v61 }
 0x1eb   : > { %v3984_v58 = vpop.permute.xlu1 %994 }
 0x1ec   : > { %5438 = vst [vmem:[#allocation126_spill] sm:$0xff] %v3984_v58  ;;  %1387 = vrot.lane.b32.xlu2 %v3326_v9, %s3121_s8 }
 0x1ee   : > { %v3988_v6 = vpop.permute.xlu2 %1045 }
 0x1ef   : > { %5439 = vst [vmem:[#allocation127_spill] sm:$0xff] %v3988_v6  ;;  %1383 = vrot.lane.b32.xlu0 %v3374_v29, %s3121_s8  ;;  %v989_v6 = vsel %vm983_vm14, %v3868_v55, %v978_v23  ;;  %v991_v23 = vsel %vm983_vm14, %v980_v18, %v3888_v2 }
 0x1f1   : > { %1379 = vrot.lane.b32.xlu1 %v3372_v28, %s3121_s8  ;;  %v1005_v43 = vpop.permute.xlu0 %1004 }
 0x1f2   : > { %v1014_v63 = vsel %vm1008_vm15, %v1003_v24, %v1005_v43 }
 0x1f3   : > { %v1276_v17 = vsel %vm1072_vm2, %v990_v52, %v1014_v63  ;;  %v3997_v61 = vpop.permute.xlu1 %1000 }
 0x1f4   : > { %5440 = vst [vmem:[#allocation128_spill] sm:$0xff] %v3997_v61  ;;  %v1013_v54 = vsel %vm1008_vm15, %v3997_v61, %v1003_v24  ;;  %1393 = vrot.lane.b32.xlu2 %v3823_v60, %s3121_s8 }
 0x1f5   : > { %v1273_v56 = vsel %vm1072_vm2, %v989_v6, %v1013_v54 }
 0x1f6   : > { %v4006_v58 = vpop.permute.xlu2 %1051 }
 0x1f7   : > { %5441 = vst [vmem:[#allocation129_spill] sm:$0xff] %v4006_v58  ;;  %1389 = vrot.lane.b32.xlu0 %v3336_v14, %s3121_s8 }
 0x1f9   : > { %1385 = vrot.lane.b32.xlu1 %v3324_v8, %s3121_s8  ;;  %v4012_v52 = vpop.permute.xlu0 %1019 }
 0x1fa   : > { %5442 = vst [vmem:[#allocation130_spill] sm:$0xff] %v4012_v52 }
 0x1fb   : > { %v1007_v63 = vpop.permute.xlu1 %1006 }
 0x1fc   : > { %v1015_v24 = vsel %vm1008_vm15, %v1005_v43, %v1007_v63  ;;  %1408 = vrot.lane.b32.xlu2 %v3396_v35, %s3122_s9 }
 0x1fd   : > { %v1279_v6 = vsel %vm1072_vm2, %v991_v23, %v1015_v24 }
 0x1fe   : > { %v1058_v54 = vpop.permute.xlu2 %1057 }
 0x1ff   : > { %1404 = vrot.lane.b32.xlu0 %v3391_v34, %s3122_s9 }
 0x201   : > { %1391 = vrot.lane.b32.xlu1 %v3334_v13, %s3121_s8  ;;  %v4024_v55 = vpop.permute.xlu0 %1025  ;;  %s2436_s8 = sshll.u32 %s5087_s25, 4  ;;  %s2437_s8 = int_to_ptr.vmem [resolvable:$true] %s2436_s8 }
 0x202   : > { %5443 = vst [vmem:[#allocation131_spill] sm:$0xff] %v4024_v55 }
 0x203   : > { %v4026_v61 = vpop.permute.xlu1 %1021 }
 0x204   : > { %5444 = vst [vmem:[#allocation132_spill] sm:$0xff] %v4026_v61  ;;  %1414 = vrot.lane.b32.xlu2 %v3332_v11, %s3122_s9 }
 0x206   : > { %v4030_v43 = vpop.permute.xlu2 %1320 }
 0x207   : > { %1410 = vrot.lane.b32.xlu0 %v3388_v33, %s3122_s9 }
 0x209   : > { %1406 = vrot.lane.b32.xlu1 %v3379_v30, %s3122_s9  ;;  %v1032_v34 = vpop.permute.xlu0 %1031 }
 0x20a   : > { %v1042_v35 = vsel %vm1035_vm4, %v1030_v57, %v1032_v34 }
 0x20b   : > { %v1028_v18 = vpop.permute.xlu1 %1027  ;;  %v1298_v23 = vsel %vm1092_vm3, %v1279_v6, %v1042_v35 }
 0x20c   : > { %v1040_v24 = vsel %vm1035_vm4, %v4024_v55, %v1028_v18  ;;  %v1041_v11 = vsel %vm1035_vm4, %v1028_v18, %v1030_v57  ;;  %1420 = vrot.lane.b32.xlu2 %v3849_v21, %s3122_s9 }
 0x20d   : > { %v1296_v33 = vsel %vm1092_vm3, %v1276_v17, %v1041_v11  ;;  %v1294_v58 = vsel %vm1092_vm3, %v1273_v56, %v1040_v24 }
 0x20e   : > { %v4045_v52 = vpop.permute.xlu2 %1327 }
 0x20f   : > { %1416 = vrot.lane.b32.xlu0 %v3343_v15, %s3122_s9 }
 0x211   : > { %1412 = vrot.lane.b32.xlu1 %v3329_v10, %s3122_s9  ;;  %v4051_v30 = vpop.permute.xlu0 %1047 }
 0x212   : > { %5445 = vst [vmem:[#allocation133_spill] sm:$0xff] %v4051_v30 }
 0x213   : > { %v1034_v6 = vpop.permute.xlu1 %1033 }
 0x214   : > { %1491 = vrot.lane.b32.xlu2 %v3374_v29, %s3123_s14 }
 0x216   : > { %v4055_v57 = vpop.permute.xlu2 %1333 }
 0x217   : > { %1487 = vrot.lane.b32.xlu0 %v3372_v28, %s3123_s14 }
 0x219   : > { %1418 = vrot.lane.b32.xlu1 %v3348_v19, %s3122_s9  ;;  %v4061_v56 = vpop.permute.xlu0 %1053 }
 0x21a   : > { %5446 = vst [vmem:[#allocation134_spill] sm:$0xff] %v4061_v56 }
 0x21b   : > { %v4063_v15 = vpop.permute.xlu1 %1049 }
 0x21c   : > { %5447 = vst [vmem:[#allocation135_spill] sm:$0xff] %v4063_v15  ;;  %1495 = vrot.lane.b32.xlu2 %v3326_v9, %s3123_s14 }
 0x21e   : > { %v4067_v10 = vpop.permute.xlu2 %1339 }
 0x21f   : > { %1493 = vrot.lane.b32.xlu0 %v3324_v8, %s3123_s14 }
 0x221   : > { %1489 = vrot.lane.b32.xlu1 %v3383_v32, %s3123_s14  ;;  %v1060_v17 = vpop.permute.xlu0 %1059 }
 0x222   : > { %v1070_v35 = vsel %vm1063_vm1, %v1058_v54, %v1060_v17 }
 0x223   : > { %v1056_v19 = vpop.permute.xlu1 %1055  ;;  %v4075_v18 = vsel %vm1111_vm5, %v1298_v23, %v1070_v35  ;;  %v1043_v23 = vsel %vm1035_vm4, %v1032_v34, %v1034_v6 }
 0x224   : > { %5448 = vst [vmem:[#allocation136_spill] sm:$0xff] %v4075_v18  ;;  %v1068_v24 = vsel %vm1063_vm1, %v4061_v56, %v1056_v19  ;;  %v1069_v11 = vsel %vm1063_vm1, %v1056_v19, %v1058_v54  ;;  %1437 = vrot.lane.b32.xlu2 %v3426_v41, %s3124_s15  ;;  %v1282_v41 = vsel %vm1072_vm2, %v3888_v2, %v1007_v63 }
 0x225   : > { %v4083_v8 = vsel %vm1111_vm5, %v1296_v33, %v1069_v11  ;;  %v4086_v55 = vsel %vm1111_vm5, %v1294_v58, %v1068_v24  ;;  %v1300_v35 = vsel %vm1092_vm3, %v1282_v41, %v1043_v23 }
 0x226   : > { %5449 = vst [vmem:[#allocation137_spill] sm:$0xff] %v4083_v8  ;;  %v4088_v30 = vpop.permute.xlu2 %1354 }
 0x227   : > { %5450 = vst [vmem:[#allocation138_spill] sm:$0xff] %v4086_v55  ;;  %1433 = vrot.lane.b32.xlu0 %v3403_v36, %s3124_s15 }
 0x229   : > { %1485 = vrot.lane.b32.xlu1 %v3381_v31, %s3123_s14  ;;  %v4095_v54 = vpop.permute.xlu0 %1323 }
 0x22b   : > { %v1062_v33 = vpop.permute.xlu1 %1061 }
 0x22c   : > { %v1071_v58 = vsel %vm1063_vm1, %v1060_v17, %v1062_v33  ;;  %1462 = vrot.lane.b32.xlu2 %v3449_v46, %s3125_s18 }
 0x22d   : > { %v4104_v36 = vsel %vm1111_vm5, %v1300_v35, %v1071_v58 }
 0x22e   : > { %5451 = vst [vmem:[#allocation139_spill] sm:$0xff] %v4104_v36  ;;  %v1361_v34 = vpop.permute.xlu2 %1360 }
 0x22f   : > { %1439 = vrot.lane.b32.xlu0 %v3365_v26, %s3124_s15 }
 0x231   : > { %1435 = vrot.lane.b32.xlu1 %v3406_v37, %s3124_s15  ;;  %v4110_v2 = vpop.permute.xlu0 %1329 }
 0x233   : > { %v4112_v63 = vpop.permute.xlu1 %1325 }
 0x234   : > { %1431 = vrot.lane.b32.xlu2 %v3411_v38, %s3124_s15 }
 0x236   : > { %v4116_v6 = vpop.permute.xlu2 %1366 }
 0x237   : > { %5452 = vst [vmem:[#allocation140_spill] sm:$0xff] %v4116_v6  ;;  %1464 = vrot.lane.b32.xlu0 %v3465_v50, %s3125_s18 }
 0x239   : > { %1460 = vrot.lane.b32.xlu1 %v3433_v42, %s3125_s18  ;;  %v4122_v46 = vpop.permute.xlu0 %1335 }
 0x23b   : > { %v4124_v26 = vpop.permute.xlu1 %1331 }
 0x23c   : > { %1468 = vrot.lane.b32.xlu2 %v3461_v49, %s3125_s18 }
 0x23e   : > { %v1382_v37 = vpop.permute.xlu2 %1381 }
 0x23f   : > { %1441 = vrot.lane.b32.xlu0 %v3421_v40, %s3124_s15 }
 0x241   : > { %1466 = vrot.lane.b32.xlu1 %v3446_v45, %s3125_s18  ;;  %v4132_v38 = vpop.permute.xlu0 %1350 }
 0x243   : > { %v4134_v50 = vpop.permute.xlu1 %1337 }
 0x244   : > { %1501 = vrot.lane.b32.xlu2 %v3823_v60, %s3123_s14 }
 0x246   : > { %v1388_v42 = vpop.permute.xlu2 %1387 }
 0x247   : > { %1497 = vrot.lane.b32.xlu0 %v3336_v14, %s3123_s14 }
 0x249   : > { %1458 = vrot.lane.b32.xlu1 %v3453_v47, %s3125_s18  ;;  %v4142_v49 = vpop.permute.xlu0 %1356 }
 0x24b   : > { %v4144_v40 = vpop.permute.xlu1 %1352 }
 0x24c   : > { %1443 = vrot.lane.b32.xlu2 %v3440_v44, %s3124_s15 }
 0x24e   : > { %v1394_v45 = vpop.permute.xlu2 %1393 }
 0x24f   : > { %1512 = vrot.lane.b32.xlu0 %v3849_v21, %s3112_s28  ;;  %s5113_s28 = scalar_lea.vmem [#allocation11], %s2710_s23 }
 0x251   : > { %1499 = vrot.lane.b32.xlu1 %v3334_v13, %s3123_s14  ;;  %v1363_v17 = vpop.permute.xlu0 %1362  ;;  %v5459_v13 = vld [vmem:[#allocation104_spill] sm:$0xff]  ;;  %s2408_s14 = scalar_lea.sflag [#allocation4], %s3302_s1 }
 0x252   : > { %v4153_v19 = vsel %vm1368_vm9, %v1361_v34, %v1363_v17 }
 0x253   : > { %5453 = vst [vmem:[#allocation141_spill] sm:$0xff] %v4153_v19  ;;  %v1359_v47 = vpop.permute.xlu1 %1358 }
 0x254   : > { %v4157_v24 = vsel %vm1368_vm9, %v4142_v49, %v1359_v47  ;;  %v4160_v11 = vsel %vm1368_vm9, %v1359_v47, %v1361_v34  ;;  %1470 = vrot.lane.b32.xlu2 %v3471_v51, %s3125_s18 }
 0x256   : > { %v4166_v44 = vpop.permute.xlu2 %1408 }
 0x257   : > { %1445 = vrot.lane.b32.xlu0 %v3418_v39, %s3124_s15 }
 0x259   : > { %1515 = vrot.lane.b32.xlu1 %v3828_v25, %s3113_s29  ;;  %v1378_v21 = vpop.permute.xlu0 %1377  ;;  %s2742_s29 = sshll.u32 %s3092_s12, 5 }
 0x25a   : > { %s2434_s24 = scalar_lea.hbm %s5200_s6, %s2742_s29  ;;  %s5128_s11 = scalar_lea.hbm %s5201_s7, %s2742_s29 }
 0x25b   : > { %v1365_v23 = vpop.permute.xlu1 %1364  ;;  %s2438_s9 = sshll.u32 %s2434_s24, 4  ;;  %s2439_s9 = int_to_ptr.hbm [resolvable:$true] %s2438_s9 }
 0x25c   : > { %v4171_v41 = vsel %vm1368_vm9, %v1363_v17, %v1365_v23  ;;  %v4175_v33 = vsel %vm1368_vm9, %v1365_v23, %v4116_v6 }
 0x25d   : > { %5454 = vst [vmem:[#allocation142_spill] sm:$0xff] %v4171_v41 }
 0x25e   : > { %5455 = vst [vmem:[#allocation143_spill] sm:$0xff] %v4175_v33  ;;  %v4179_v51 = vpop.permute.xlu2 %1414 }
 0x25f   : > { %1472 = vrot.lane.b32.xlu0 %v3458_v48, %s3125_s18 }
 0x261   : > { %1447 = vrot.lane.b32.xlu1 %v3828_v25, %s3124_s15  ;;  %v1384_v39 = vpop.permute.xlu0 %1383  ;;  %s2992_s15 = sshra.s32 %s2439_s9, 4  ;;  %s2993_s15 = int_to_ptr.hbm [resolvable:$true] %s2992_s15 }
 0x262   : > { %v4184_v35 = vsel %vm1395_vm8, %v1382_v37, %v1384_v39  ;;  %p2999_p10 = scmp.lt.s32.totalorder %s2993_s15, %s5200_s6 }
 0x263   : > { %v1380_v58 = vpop.permute.xlu1 %1379 }
 0x264   : > { %v1396_v34 = vsel %vm1395_vm8, %v1378_v21, %v1380_v58  ;;  %v4188_v17 = vsel %vm1395_vm8, %v1380_v58, %v1382_v37 }
 0x266   : > { %v1421_v47 = vpop.permute.xlu2 %1420 }
 0x267   : > { %v4191_v23 = vsel %vm1072_vm2, %v1394_v45, %v1421_v47 }
 0x269   : > { %1474 = vrot.lane.b32.xlu1 %v3866_v1, %s3125_s18  ;;  %v1390_v48 = vpop.permute.xlu0 %1389  ;;  %s2994_s18 = scalar_lea.hbm %s2993_s15, 32 }
 0x26a   : > { %v1401_v25 = vsel %vm1395_vm8, %v1388_v42, %v1390_v48  ;;  %p2995_p7 = scmp.ne.s32.totalorder %s2993_s15, %s2994_s18  ;;  %p3000_p11 = scmp.lt.s32.totalorder %s2998_s22, %s2994_s18 }
 0x26b   : > { %v1386_v36 = vpop.permute.xlu1 %1385 }
 0x26c   : > { %v4197_v55 = vsel %vm1395_vm8, %v1384_v39, %v1386_v36  ;;  %v4200_v18 = vsel %vm1395_vm8, %v1386_v36, %v1388_v42  ;;  %p2996_p8 = pnand %p2995_p7, %p3264_p0  ;;  %p3001_p12 = por %p3000_p11, %p2999_p10 }
 0x26e   : > { %v1492_v39 = vpop.permute.xlu2 %1491  ;;  %p2997_p9 = pneg %p2996_p8 }
 0x270   : > { %p3002_p13 = pnand %p3001_p12, %p2997_p9 }
 0x271   : > { %v1405_v21 = vpop.permute.xlu0 %1404 }
 0x273   : > { %v1392_v37 = vpop.permute.xlu1 %1391 }
 0x274   : > { %v1402_v58 = vsel %vm1395_vm8, %v1390_v48, %v1392_v37  ;;  %v1403_v8 = vsel %vm1395_vm8, %v1392_v37, %v1394_v45  ;;  %vm1503_vm8 = vcmask 236544  }
 0x276   : > { %v4217_v45 = vpop.permute.xlu2 %1495 }
 0x279   : > { %v4204_v56 = vpop.permute.xlu0 %1410 }
 0x27b   : > { %v1407_v1 = vpop.permute.xlu1 %1406 }
 0x27c   : > { %v1423_v15 = vsel %vm1422_vm6, %v1405_v21, %v1407_v1 }
 0x27d   : > { %v4208_v61 = vsel %vm1072_vm2, %v1396_v34, %v1423_v15 }
 0x281   : > { %v1417_v6 = vpop.permute.xlu0 %1416 }
 0x282   : > { %v1428_v36 = vsel %vm1422_vm6, %v4179_v51, %v1417_v6 }
 0x283   : > { %v4213_v42 = vsel %vm1072_vm2, %v1401_v25, %v1428_v36  ;;  %v4215_v48 = vpop.permute.xlu1 %1412  ;;  %v4230_v25 = vsel %vm902_vm10, %v3811_v12, %v3762_v4  ;;  %v4248_v4 = vsel %vm902_vm10, %v3797_v27, %v3811_v12 }
 0x284   : > { %5456 = vst [vmem:[#allocation144_spill] sm:$0xff] %v4230_v25 }
 0x289   : > { %v1488_v37 = vpop.permute.xlu0 %1487 }
 0x28b   : > { %v1419_v60 = vpop.permute.xlu1 %1418 }
 0x28c   : > { %v1429_v19 = vsel %vm1422_vm6, %v1417_v6, %v1419_v60  ;;  %v1430_v21 = vsel %vm1422_vm6, %v1419_v60, %v1421_v47  ;;  %v4236_v6 = vsel %vm902_vm10, %v3739_v22, %v3797_v27  ;;  %v5457_v60 = vld [vmem:[#allocation107_spill] sm:$0xff] }
 0x28d   : > { %v4222_v15 = vsel %vm1072_vm2, %v1402_v58, %v1429_v19  ;;  %v4225_v34 = vsel %vm1072_vm2, %v1403_v8, %v1430_v21  ;;  %v4241_v19 = vsel %vm929_vm11, %v5457_v60, %v3792_v3  ;;  %v1438_v8 = vpop.permute.xlu2 %1437  ;;  %v5460_v3 = vld [vmem:[#allocation97_spill] sm:$0xff] }
 0x28e   : > { %5458 = vst [vmem:[#allocation107_spill] sm:$0xff] %v4241_v19  ;;  %v4257_v14 = vsel %vm929_vm11, %v5460_v3, %v5459_v13 }
 0x291   : > { %v1494_v41 = vpop.permute.xlu0 %1493 }
 0x292   : > { %v1507_v36 = vsel %vm1503_vm8, %v1492_v39, %v1494_v41 }
 0x293   : > { %v1629_v47 = vsel %vm1072_vm2, %v1507_v36, %v4230_v25  ;;  %v1490_v58 = vpop.permute.xlu1 %1489  ;;  %v4262_v36 = vsel %vm929_vm11, %v5459_v13, %v5457_v60  ;;  %v1508_v13 = vsel %vm1503_vm8, %v1494_v41, %v4217_v45 }
 0x294   : > { %v1505_v21 = vsel %vm1503_vm8, %v1488_v37, %v1490_v58  ;;  %v1506_v33 = vsel %vm1503_vm8, %v1490_v58, %v1492_v39  ;;  %v1645_v9 = vsel %vm1092_vm3, %v1629_v47, %v4241_v19 }
 0x295   : > { %v1625_v12 = vsel %vm1072_vm2, %v1505_v21, %v4236_v6  ;;  %v1627_v27 = vsel %vm1072_vm2, %v1506_v33, %v4248_v4  ;;  %1722 = vrot.lane.b32.xlu1 %v1645_v9, %s3126_s19  ;;  %v1631_v33 = vsel %vm1072_vm2, %v1508_v13, %v3882_v53  ;;  %v5461_v9 = vld [vmem:[#allocation99_spill] sm:$0xff] }
 0x296   : > { %v1644_v39 = vsel %vm1092_vm3, %v1627_v27, %v4262_v36  ;;  %v1643_v47 = vsel %vm1092_vm3, %v1625_v12, %v4257_v14  ;;  %v4282_v21 = vsel %vm902_vm10, %v5461_v9, %v3739_v22  ;;  %v5463_v12 = vld [vmem:[#allocation105_spill] sm:$0xff]  ;;  %v1646_v13 = vsel %vm1092_vm3, %v1631_v33, %v3886_v62 }
 0x297   : > { %1720 = vrot.lane.b32.xlu0 %v1644_v39, %s3126_s19  ;;  %1718 = vrot.lane.b32.xlu2 %v1643_v47, %s3126_s19  ;;  %5462 = vst [vmem:[#allocation104_spill] sm:$0xff] %v4282_v21  ;;  %v4288_v39 = vsel %vm929_vm11, %v5463_v12, %v5460_v3  ;;  %v1463_v47 = vpop.permute.xlu2 %1462  ;;  %v1425_v3 = vsel %vm1422_vm6, %v4166_v44, %v4204_v56 }
 0x298   : > { %5464 = vst [vmem:[#allocation97_spill] sm:$0xff] %v4288_v39  ;;  %v1567_v62 = vsel %vm1072_vm2, %v4184_v35, %v1425_v3 }
 0x299   : > { %v1434_v60 = vpop.permute.xlu0 %1433 }
 0x29b   : > { %v1486_v58 = vpop.permute.xlu1 %1485 }
 0x29c   : > { %v1504_v27 = vsel %vm1503_vm8, %v1486_v58, %v1488_v37 }
 0x29d   : > { %v1623_v41 = vsel %vm1072_vm2, %v1504_v27, %v4282_v21 }
 0x29e   : > { %v1642_v53 = vsel %vm1092_vm3, %v1623_v41, %v4288_v39  ;;  %v1424_v41 = vsel %vm1422_vm6, %v1407_v1, %v4166_v44  ;;  %v1427_v1 = vsel %vm1422_vm6, %v4215_v48, %v4179_v51 }
 0x29f   : > { %1716 = vrot.lane.b32.xlu2 %v1642_v53, %s3126_s19  ;;  %1724 = vrot.lane.b32.xlu0 %v1646_v13, %s3126_s19  ;;  %v1432_v58 = vpop.permute.xlu2 %1431  ;;  %v1564_v25 = vsel %vm1072_vm2, %v4188_v17, %v1424_v41  ;;  %v1426_v17 = vsel %vm1422_vm6, %v4204_v56, %v4215_v48  ;;  %vm1341_vm6 = vcmask 400384  }
 0x2a1   : > { %v1440_v22 = vpop.permute.xlu0 %1439 }
 0x2a3   : > { %v1436_v37 = vpop.permute.xlu1 %1435 }
 0x2a4   : > { %v1452_v27 = vsel %vm1449_vm7, %v1436_v37, %v1438_v8  ;;  %v1451_v33 = vsel %vm1449_vm7, %v1434_v60, %v1436_v37 }
 0x2a5   : > { %v1591_v13 = vsel %vm1092_vm3, %v1567_v62, %v1452_v27  ;;  %v1589_v12 = vsel %vm1092_vm3, %v1564_v25, %v1451_v33  ;;  %v1453_v25 = vsel %vm1449_vm7, %v1438_v8, %v1440_v22  ;;  %v5467_v62 = vld [vmem:[#allocation30_spill] sm:$0xff]  ;;  %v5468_v33 = vld [vmem:[#allocation33_spill] sm:$0xff] }
 0x2a7   : > { %v4323_v37 = vpop.permute.xlu2 %1468 }
 0x2a9   : > { %v1465_v53 = vpop.permute.xlu0 %1464 }
 0x2aa   : > { %v1479_v19 = vsel %vm1476_vm13, %v1463_v47, %v1465_v53 }
 0x2ab   : > { %v1461_v39 = vpop.permute.xlu1 %1460  ;;  %v1609_v21 = vsel %vm1111_vm5, %v1591_v13, %v1479_v19  ;;  %v1343_v13 = vsel %vm1341_vm6, %v4112_v63, %v4045_v52 }
 0x2ac   : > { %v1478_v44 = vsel %vm1476_vm13, %v1461_v39, %v1463_v47  ;;  %1702 = vrot.lane.b32.xlu2 %v1609_v21, %s3126_s19  ;;  %v1573_v21 = vsel %vm1072_vm2, %v4200_v18, %v1427_v1  ;;  %v1570_v47 = vsel %vm1072_vm2, %v4197_v55, %v1426_v17  ;;  %v5466_v55 = vld [vmem:[#allocation40_spill] sm:$0xff]  ;;  %v1370_v1 = vsel %vm1368_vm9, %v4144_v40, %v4088_v30 }
 0x2ad   : > { %v1607_v35 = vsel %vm1111_vm5, %v1589_v12, %v1478_v44  ;;  %v1593_v56 = vsel %vm1092_vm3, %v1570_v47, %v1453_v25  ;;  %v1450_v44 = vsel %vm1449_vm7, %v1432_v58, %v1434_v60 }
 0x2ae   : > { %1700 = vrot.lane.b32.xlu1 %v1607_v35, %s3126_s19  ;;  %v1345_v35 = vsel %vm1341_vm6, %v4110_v2, %v4124_v26  ;;  %v1587_v60 = vsel %vm1092_vm3, %v4208_v61, %v1450_v44  ;;  %v5469_v61 = vld [vmem:[#allocation42_spill] sm:$0xff] }
 0x2b1   : > { %v4326_v19 = vpop.permute.xlu0 %1441 }
 0x2b2   : > { %v1454_v12 = vsel %vm1449_vm7, %v1440_v22, %v4326_v19  ;;  %v5465_v22 = vld [vmem:[#allocation43_spill] sm:$0xff] }
 0x2b3   : > { %v1595_v51 = vsel %vm1092_vm3, %v1573_v21, %v1454_v12  ;;  %v1467_v3 = vpop.permute.xlu1 %1466  ;;  %v671_v41 = vsel %vm668_vm0, %v5466_v55, %v5465_v22  ;;  %v1502_v21 = vpop.permute.xlu2 %1501 }
 0x2b4   : > { %v1480_v48 = vsel %vm1476_vm13, %v1465_v53, %v1467_v3  ;;  %v1481_v8 = vsel %vm1476_vm13, %v1467_v3, %v4323_v37  ;;  %v673_v53 = vsel %vm668_vm0, %v5468_v33, %v5467_v62  ;;  %v4361_v25 = vsel %vm1072_vm2, %v3372_v28, %v671_v41 }
 0x2b5   : > { %v1611_v27 = vsel %vm1111_vm5, %v1593_v56, %v1480_v48  ;;  %v1613_v18 = vsel %vm1111_vm5, %v1595_v51, %v1481_v8  ;;  %v4365_v47 = vsel %vm1072_vm2, %v3374_v29, %v673_v53  ;;  %v1526_v51 = vsel %vm1092_vm3, %v4361_v25, %v1343_v13  ;;  %v5470_v13 = vld [vmem:[#allocation57_spill] sm:$0xff] }
 0x2b6   : > { %1704 = vrot.lane.b32.xlu0 %v1611_v27, %s3126_s19  ;;  %1706 = vrot.lane.b32.xlu2 %v1613_v18, %s3126_s19  ;;  %v1544_v56 = vsel %vm1111_vm5, %v1526_v51, %v1370_v1  ;;  %v1530_v28 = vsel %vm1092_vm3, %v4365_v47, %v1345_v35  ;;  %v672_v48 = vsel %vm668_vm0, %v5465_v22, %v5468_v33 }
 0x2b7   : > { %v1548_v29 = vsel %vm1111_vm5, %v1530_v28, %v4157_v24  ;;  %v1344_v27 = vsel %vm1341_vm6, %v4045_v52, %v4110_v2  ;;  %v1342_v24 = vsel %vm1341_vm6, %v4095_v54, %v4112_v63  ;;  %v1371_v18 = vsel %vm1368_vm9, %v4088_v30, %v4142_v49 }
 0x2b9   : > { %v1498_v17 = vpop.permute.xlu0 %1497 }
 0x2ba   : > { %v1509_v8 = vsel %vm1503_vm8, %v4217_v45, %v1498_v17  ;;  %v4407_v45 = vsel %vm1072_vm2, %v3383_v32, %v672_v48 }
 0x2bb   : > { %v1459_v12 = vpop.permute.xlu1 %1458  ;;  %v1633_v52 = vsel %vm1072_vm2, %v1509_v8, %v3915_v7  ;;  %v1528_v30 = vsel %vm1092_vm3, %v4407_v45, %v1344_v27 }
 0x2bc   : > { %v1477_v58 = vsel %vm1476_vm13, %v1459_v12, %v1461_v39  ;;  %v670_v39 = vsel %vm668_vm0, %v5469_v61, %v5466_v55  ;;  %v1369_v55 = vsel %vm1368_vm9, %v4132_v38, %v4144_v40  ;;  %v1444_v38 = vpop.permute.xlu2 %1443  ;;  %v1546_v49 = vsel %vm1111_vm5, %v1528_v30, %v1371_v18 }
 0x2bd   : > { %v1605_v3 = vsel %vm1111_vm5, %v1587_v60, %v1477_v58  ;;  %v4403_v22 = vsel %vm1072_vm2, %v3381_v31, %v670_v39  ;;  %v1647_v32 = vsel %vm1092_vm3, %v1633_v52, %v3922_v59  ;;  %v1346_v40 = vsel %vm1341_vm6, %v4124_v26, %v4055_v57 }
 0x2be   : > { %1698 = vrot.lane.b32.xlu1 %v1605_v3, %s3126_s19  ;;  %1682 = vrot.lane.b32.xlu0 %v1544_v56, %s3126_s19  ;;  %v1524_v63 = vsel %vm1092_vm3, %v4403_v22, %v1342_v24  ;;  %v1532_v44 = vsel %vm1092_vm3, %v5470_v13, %v1346_v40  ;;  %v1349_v30 = vsel %vm1341_vm6, %v4134_v50, %v4067_v10  ;;  %v5479_v13 = vld [vmem:[#allocation141_spill] sm:$0xff] }
 0x2bf   : > { %1686 = vrot.lane.b32.xlu2 %v1548_v29, %s3126_s19  ;;  %v1542_v31 = vsel %vm1111_vm5, %v1524_v63, %v1369_v55  ;;  %v1550_v59 = vsel %vm1111_vm5, %v1532_v44, %v4160_v11  ;;  %v5472_v55 = vld [vmem:[#allocation37_spill] sm:$0xff]  ;;  %v1347_v63 = vsel %vm1341_vm6, %v4055_v57, %v4122_v46  ;;  %v5478_v57 = vld [vmem:[#allocation142_spill] sm:$0xff] }
 0x2c1   : > { %v1513_v2 = vpop.permute.xlu0 %1512 }
 0x2c2   : > { %v1641_v41 = vsel %vm1072_vm2, %v1502_v21, %v1513_v2  ;;  %v1514_v60 = vsel %vm902_vm10, %v3772_v16, %v1513_v2  ;;  %v1348_v2 = vsel %vm1341_vm6, %v4122_v46, %v4134_v50  ;;  %vm5537_vm6 = vcmask 875520  }
 0x2c3   : > { %v1500_v54 = vpop.permute.xlu1 %1499 }
 0x2c4   : > { %v1510_v7 = vsel %vm1503_vm8, %v1498_v17, %v1500_v54  ;;  %v1471_v26 = vpop.permute.xlu2 %1470  ;;  %v1511_v17 = vsel %vm1503_vm8, %v1500_v54, %v1502_v21 }
 0x2c5   : > { %v1635_v62 = vsel %vm1072_vm2, %v1510_v7, %v3919_v5  ;;  %v1455_v5 = vsel %vm1449_vm7, %v4326_v19, %v1444_v38  ;;  %v1482_v11 = vsel %vm1476_vm13, %v4323_v37, %v1471_v26  ;;  %v1638_v19 = vsel %vm1072_vm2, %v1511_v17, %v1514_v60  ;;  %v5476_v7 = vld [vmem:[#allocation26_spill] sm:$0xff] }
 0x2c6   : > { %1684 = vrot.lane.b32.xlu1 %v1546_v49, %s3126_s19  ;;  %1680 = vrot.lane.b32.xlu0 %v1542_v31, %s3126_s19  ;;  %v1648_v35 = vsel %vm1092_vm3, %v1635_v62, %v3926_v20  ;;  %v1597_v12 = vsel %vm1092_vm3, %v4213_v42, %v1455_v5  ;;  %v5475_v31 = vld [vmem:[#allocation27_spill] sm:$0xff]  ;;  %v5481_v5 = vld [vmem:[#allocation140_spill] sm:$0xff] }
 0x2c7   : > { %1726 = vrot.lane.b32.xlu2 %v1647_v32, %s3126_s19  ;;  %v1615_v51 = vsel %vm1111_vm5, %v1597_v12, %v1482_v11  ;;  %v5477_v62 = vld [vmem:[#allocation143_spill] sm:$0xff] }
 0x2c9   : > { %v1446_v1 = vpop.permute.xlu0 %1445 }
 0x2ca   : > { %v1456_v21 = vsel %vm1449_vm7, %v1444_v38, %v1446_v1  ;;  %v5474_v38 = vld [vmem:[#allocation28_spill] sm:$0xff] }
 0x2cb   : > { %v1516_v33 = vpop.permute.xlu1 %1515  ;;  %v1599_v27 = vsel %vm1092_vm3, %v4222_v15, %v1456_v21  ;;  %v5473_v15 = vld [vmem:[#allocation34_spill] sm:$0xff] }
 0x2cc   : > { %v1652_v53 = vsel %vm1092_vm3, %v1641_v41, %v1516_v33  ;;  %v1517_v20 = vsel %vm929_vm11, %v3803_v0, %v1516_v33  ;;  %v675_v54 = vsel %vm668_vm0, %v5473_v15, %v5472_v55 }
 0x2cd   : > { %v1650_v3 = vsel %vm1092_vm3, %v1638_v19, %v1517_v20  ;;  %v4497_v40 = vsel %vm1072_vm2, %v5476_v7, %v675_v54  ;;  %v5484_v54 = vld [vmem:[#allocation132_spill] sm:$0xff]  ;;  %v5488_v7 = vld [vmem:[#allocation135_spill] sm:$0xff] }
 0x2ce   : > { %1688 = vrot.lane.b32.xlu1 %v1550_v59, %s3126_s19  ;;  %1728 = vrot.lane.b32.xlu0 %v1648_v35, %s3126_s19  ;;  %v5480_v59 = vld [vmem:[#allocation102_spill] sm:$0xff] }
 0x2cf   : > { %1732 = vrot.lane.b32.xlu2 %v1652_v53, %s3126_s19  ;;  %v1534_v53 = vsel %vm1092_vm3, %v4497_v40, %v1347_v63  ;;  %v1522_v35 = vsel %vm1072_vm2, %v5480_v59, %v4030_v43  ;;  %v5486_v63 = vld [vmem:[#allocation119_spill] sm:$0xff]  ;;  %v5490_v59 = vld [vmem:[#allocation120_spill] sm:$0xff] }
 0x2d0   : > { %v1552_v44 = vsel %vm1111_vm5, %v1534_v53, %v5479_v13 }
 0x2d1   : > { %v1473_v42 = vpop.permute.xlu0 %1472 }
 0x2d2   : > { %v1483_v56 = vsel %vm1476_vm13, %v1471_v26, %v1473_v42 }
 0x2d3   : > { %v1448_v58 = vpop.permute.xlu1 %1447  ;;  %v1617_v18 = vsel %vm1111_vm5, %v1599_v27, %v1483_v56 }
 0x2d4   : > { %v1457_v37 = vsel %vm1449_vm7, %v1446_v1, %v1448_v58  ;;  %v1603_v28 = vsel %vm1092_vm3, %v4191_v23, %v1448_v58  ;;  %v5471_v23 = vld [vmem:[#allocation31_spill] sm:$0xff]  ;;  %v1540_v1 = vsel %vm1092_vm3, %v1522_v35, %v4067_v10  ;;  %vm1734_vm7 = vcmask 56320   ;;  %v5491_v35 = vld [vmem:[#allocation116_spill] sm:$0xff] }
 0x2d5   : > { %v1601_v39 = vsel %vm1092_vm3, %v4225_v34, %v1457_v37  ;;  %v676_v34 = vsel %vm668_vm0, %v5472_v55, %v5471_v23  ;;  %v1322_v52 = vsel %vm668_vm0, %v5471_v23, %v4030_v43  ;;  %v1558_v26 = vsel %vm1111_vm5, %v1540_v1, %v5481_v5  ;;  %v5492_v5 = vld [vmem:[#allocation125_spill] sm:$0xff] }
 0x2d6   : > { %1708 = vrot.lane.b32.xlu0 %v1615_v51, %s3126_s19  ;;  %1730 = vrot.lane.b32.xlu1 %v1650_v3, %s3126_s19  ;;  %v4491_v49 = vsel %vm1072_vm2, %v5474_v38, %v676_v34  ;;  %v1519_v32 = vsel %vm1072_vm2, %v5475_v31, %v1322_v52  ;;  %v5482_v34 = vld [vmem:[#allocation115_spill] sm:$0xff]  ;;  %v5483_v52 = vld [vmem:[#allocation126_spill] sm:$0xff]  ;;  %v5487_v38 = vld [vmem:[#allocation108_spill] sm:$0xff]  ;;  %v984_v1 = vsel %vm983_vm14, %v5491_v35, %v5490_v59 }
 0x2d7   : > { %v1538_v41 = vsel %vm1092_vm3, %v1519_v32, %v1349_v30  ;;  %v1536_v50 = vsel %vm1092_vm3, %v4491_v49, %v1348_v2  ;;  %v1010_v15 = vsel %vm1008_vm15, %v5483_v52, %v5482_v34  ;;  %v5485_v2 = vld [vmem:[#allocation130_spill] sm:$0xff]  ;;  %v986_v32 = vsel %vm983_vm14, %v5487_v38, %v5486_v63 }
 0x2d8   : > { %v1556_v33 = vsel %vm1111_vm5, %v1538_v41, %v5477_v62  ;;  %v1554_v46 = vsel %vm1111_vm5, %v1536_v50, %v5478_v57  ;;  %v1037_v30 = vsel %vm1035_vm4, %v5485_v2, %v5484_v54  ;;  %v5489_v41 = vld [vmem:[#allocation133_spill] sm:$0xff]  ;;  %v1264_v62 = vsel %vm1072_vm2, %v986_v32, %v1010_v15  ;;  %v5499_v15 = vld [vmem:[#allocation128_spill] sm:$0xff]  ;;  %v5502_v32 = vld [vmem:[#allocation134_spill] sm:$0xff] }
 0x2d9   : > { %v1065_v50 = vsel %vm1063_vm1, %v5489_v41, %v5488_v7  ;;  %v1288_v13 = vsel %vm1092_vm3, %v1264_v62, %v1037_v30  ;;  %v5503_v35 = vld [vmem:[#allocation94_spill] sm:$0xff] }
 0x2db   : > { %v1475_v29 = vpop.permute.xlu1 %1474 }
 0x2dc   : > { %v1484_v48 = vsel %vm1476_vm13, %v1473_v42, %v1475_v29  ;;  %v1621_v8 = vsel %vm1111_vm5, %v1603_v28, %v1475_v29  ;;  %vm5527_vm13 = vcmask 957440  }
 0x2dd   : > { %v1619_v24 = vsel %vm1111_vm5, %v1601_v39, %v1484_v48 }
 0x2de   : > { %1714 = vrot.lane.b32.xlu0 %v1621_v8, %s3126_s19  ;;  %1712 = vrot.lane.b32.xlu2 %v1619_v24, %s3126_s19 }
 0x2df   : > { %1710 = vrot.lane.b32.xlu1 %v1617_v18, %s3126_s19 }
 0x2e6   : > { %1694 = vrot.lane.b32.xlu0 %v1556_v33, %s3126_s19  ;;  %1692 = vrot.lane.b32.xlu2 %v1554_v46, %s3126_s19 }
 0x2e7   : > { %1690 = vrot.lane.b32.xlu1 %v1552_v44, %s3126_s19  ;;  %v1306_v44 = vsel %vm1111_vm5, %v1288_v13, %v1065_v50 }
 0x2ef   : > { %1696 = vrot.lane.b32.xlu1 %v1558_v26, %s3126_s19  ;;  %v1011_v26 = vsel %vm1008_vm15, %v5482_v34, %v5492_v5 }
 0x2f1   : > { %v1719_v17 = vpop.permute.xlu2 %1718 }
 0x2f9   : > { %v1717_v12 = vpop.permute.xlu2 %1716 }
 0x2fa   : > { %1905 = vrot.lane.b32.xlu1 %v1717_v12, %s3127_s20  ;;  %v1751_v58 = vsel %vm1734_vm7, %v1717_v12, %v1719_v17 }
 0x306   : > { %v1703_v51 = vpop.permute.xlu2 %1702 }
 0x307   : > { %v1723_v11 = vpop.permute.xlu1 %1722 }
 0x309   : > { %v1721_v20 = vpop.permute.xlu0 %1720 }
 0x30a   : > { %v1752_v60 = vsel %vm1734_vm7, %v1719_v17, %v1721_v20  ;;  %v1753_v43 = vsel %vm1734_vm7, %v1721_v20, %v1723_v11  ;;  %v5493_v17 = vld [vmem:[#allocation124_spill] sm:$0xff]  ;;  %v5494_v20 = vld [vmem:[#allocation123_spill] sm:$0xff] }
 0x30b   : > { %1911 = vrot.lane.b32.xlu0 %v1753_v43, %s3127_s20  ;;  %1909 = vrot.lane.b32.xlu2 %v1752_v60, %s3127_s20  ;;  %v1258_v12 = vsel %vm1072_vm2, %v984_v1, %v5493_v17  ;;  %v1038_v60 = vsel %vm1035_vm4, %v5484_v54, %v5494_v20  ;;  %v5495_v43 = vld [vmem:[#allocation122_spill] sm:$0xff]  ;;  %v1012_v54 = vsel %vm1008_vm15, %v5492_v5, %v5499_v15  ;;  %v5504_v1 = vld [vmem:[#allocation83_spill] sm:$0xff]  ;;  %v5520_v15 = vld [vmem:[#allocation104_spill] sm:$0xff] }
 0x30c   : > { %v878_v5 = vsel %vm875_vm12, %v5504_v1, %v5503_v35 }
 0x310   : > { %v4537_v56 = vpop.permute.xlu2 %1706 }
 0x311   : > { %v4526_v10 = vpop.permute.xlu0 %1724 }
 0x312   : > { %v1754_v19 = vsel %vm1734_vm7, %v1723_v11, %v4526_v10  ;;  %v1009_v11 = vsel %vm1008_vm15, %v5493_v17, %v5483_v52  ;;  %vm5532_vm15 = vcmask 883712  }
 0x313   : > { %1907 = vrot.lane.b32.xlu2 %v1751_v58, %s3127_s20  ;;  %1913 = vrot.lane.b32.xlu0 %v1754_v19, %s3127_s20  ;;  %v987_v58 = vsel %vm983_vm14, %v5486_v63, %v5495_v43  ;;  %v5496_v19 = vld [vmem:[#allocation121_spill] sm:$0xff]  ;;  %v5501_v63 = vld [vmem:[#allocation110_spill] sm:$0xff]  ;;  %vm5534_vm8 = vmmov %vm5532_vm15 }
 0x319   : > { %v1687_v8 = vpop.permute.xlu2 %1686 }
 0x320   : > { %v1701_v3 = vpop.permute.xlu1 %1700 }
 0x321   : > { %v1744_v42 = vsel %vm1734_vm7, %v1701_v3, %v1703_v51  ;;  %v1727_v57 = vpop.permute.xlu2 %1726 }
 0x322   : > { %1891 = vrot.lane.b32.xlu1 %v1744_v42, %s3127_s20 }
 0x328   : > { %v1705_v37 = vpop.permute.xlu0 %1704 }
 0x329   : > { %v1745_v21 = vsel %vm1734_vm7, %v1703_v51, %v1705_v37  ;;  %v1746_v39 = vsel %vm1734_vm7, %v1705_v37, %v4537_v56  ;;  %v1036_v51 = vsel %vm1035_vm4, %v5496_v19, %v5485_v2  ;;  %v985_v37 = vsel %vm983_vm14, %v5490_v59, %v5487_v38  ;;  %v5500_v2 = vld [vmem:[#allocation131_spill] sm:$0xff] }
 0x32a   : > { %1893 = vrot.lane.b32.xlu2 %v1745_v21, %s3127_s20  ;;  %v1267_v21 = vsel %vm1072_vm2, %v987_v58, %v1011_v26  ;;  %v1039_v30 = vsel %vm1035_vm4, %v5494_v20, %v5500_v2  ;;  %v988_v38 = vsel %vm983_vm14, %v5495_v43, %v5501_v63  ;;  %v5505_v26 = vld [vmem:[#allocation96_spill] sm:$0xff]  ;;  %v1201_v58 = vsel %vm1072_vm2, %v878_v5, %v4236_v6  ;;  %v5530_v5 = vld [vmem:[#allocation79_spill] sm:$0xff] }
 0x32b   : > { %v1270_v50 = vsel %vm1072_vm2, %v988_v38, %v1012_v54  ;;  %v879_v17 = vsel %vm875_vm12, %v5503_v35, %v5505_v26  ;;  %v5521_v38 = vld [vmem:[#allocation97_spill] sm:$0xff]  ;;  %v5528_v35 = vld [vmem:[#allocation75_spill] sm:$0xff] }
 0x32c   : > { %v1292_v62 = vsel %vm1092_vm3, %v1270_v50, %v1039_v30  ;;  %v5522_v50 = vld [vmem:[#allocation72_spill] sm:$0xff] }
 0x330   : > { %v1699_v28 = vpop.permute.xlu1 %1698  ;;  %v1683_v29 = vpop.permute.xlu0 %1682 }
 0x331   : > { %v1743_v48 = vsel %vm1734_vm7, %v1699_v28, %v1701_v3  ;;  %1887 = vrot.lane.b32.xlu0 %v1699_v28, %s3127_s20  ;;  %v5497_v3 = vld [vmem:[#allocation129_spill] sm:$0xff]  ;;  %v5498_v28 = vld [vmem:[#allocation127_spill] sm:$0xff] }
 0x332   : > { %1889 = vrot.lane.b32.xlu1 %v1743_v48, %s3127_s20  ;;  %1895 = vrot.lane.b32.xlu2 %v1746_v39, %s3127_s20  ;;  %v1066_v42 = vsel %vm1063_vm1, %v5488_v7, %v5497_v3  ;;  %v1261_v39 = vsel %vm1072_vm2, %v985_v37, %v1009_v11  ;;  %v1067_v7 = vsel %vm1063_vm1, %v5497_v3, %v5502_v32  ;;  %v5507_v11 = vld [vmem:[#allocation100_spill] sm:$0xff] }
 0x333   : > { %v1286_v34 = vsel %vm1092_vm3, %v1261_v39, %v1036_v51  ;;  %v1310_v13 = vsel %vm1111_vm5, %v1292_v62, %v1067_v7  ;;  %v1225_v51 = vsel %vm1092_vm3, %v1201_v58, %v4257_v14  ;;  %v5511_v14 = vld [vmem:[#allocation98_spill] sm:$0xff]  ;;  %v5523_v62 = vld [vmem:[#allocation61_spill] sm:$0xff] }
 0x334   : > { %v903_v6 = vsel %vm902_vm10, %v5511_v14, %v5461_v9  ;;  %v5535_v58 = vld [vmem:[#allocation86_spill] sm:$0xff]  ;;  %v5540_v14 = vld [vmem:[#allocation68_spill] sm:$0xff] }
 0x338   : > { %v1685_v27 = vpop.permute.xlu1 %1684  ;;  %v1681_v55 = vpop.permute.xlu0 %1680 }
 0x339   : > { %v1736_v24 = vsel %vm1734_vm7, %v1683_v29, %v1685_v27  ;;  %v1737_v18 = vsel %vm1734_vm7, %v1685_v27, %v1687_v8  ;;  %v1735_v46 = vsel %vm1734_vm7, %v1681_v55, %v1683_v29  ;;  %v1064_v29 = vsel %vm1063_vm1, %v5498_v28, %v5489_v41 }
 0x33a   : > { %1875 = vrot.lane.b32.xlu1 %v1737_v18, %s3127_s20  ;;  %1873 = vrot.lane.b32.xlu0 %v1736_v24, %s3127_s20  ;;  %v1290_v27 = vsel %vm1092_vm3, %v1267_v21, %v1038_v60  ;;  %v1733_v24 = vpop.permute.xlu2 %1732  ;;  %v1304_v52 = vsel %vm1111_vm5, %v1286_v34, %v1064_v29  ;;  %vm5508_vm1 = vcmask 211968   ;;  %v5509_v60 = vld [vmem:[#allocation113_spill] sm:$0xff]  ;;  %v1755_v21 = vsel %vm1734_vm7, %v4526_v10, %v1727_v57  ;;  %v5515_v10 = vld [vmem:[#allocation91_spill] sm:$0xff] }
 0x33b   : > { %1869 = vrot.lane.b32.xlu2 %v1681_v55, %s3127_s20  ;;  %v1308_v55 = vsel %vm1111_vm5, %v1290_v27, %v1066_v42  ;;  %vm5510_vm4 = vmmov %vm5508_vm1  ;;  %v5516_v27 = vld [vmem:[#allocation112_spill] sm:$0xff] }
 0x33c   : > { %vm5518_vm9 = vmmov %vm5508_vm1 }
 0x33d   : > { %vm5519_vm10 = vmmov %vm5508_vm1 }
 0x340   : > { %v4563_v33 = vpop.permute.xlu1 %1688  ;;  %v1729_v41 = vpop.permute.xlu0 %1728 }
 0x341   : > { %v1738_v53 = vsel %vm1734_vm7, %v1687_v8, %v4563_v33  ;;  %v1284_v8 = vsel %vm1092_vm3, %v1258_v12, %v5496_v19  ;;  %v5506_v12 = vld [vmem:[#allocation111_spill] sm:$0xff]  ;;  %v1204_v19 = vsel %vm1072_vm2, %v879_v17, %v4248_v4  ;;  %v5512_v4 = vld [vmem:[#allocation105_spill] sm:$0xff] }
 0x342   : > { %1877 = vrot.lane.b32.xlu1 %v1738_v53, %s3127_s20  ;;  %1871 = vrot.lane.b32.xlu0 %v1735_v46, %s3127_s20  ;;  %v1302_v18 = vsel %vm1111_vm5, %v1284_v8, %v5498_v28  ;;  %v1756_v46 = vsel %vm1734_vm7, %v1727_v57, %v1729_v41  ;;  %v4636_v59 = vpop.permute.xlu2 %1712  ;;  %v959_v20 = vsel %vm5508_vm1, %v5507_v11, %v5506_v12  ;;  %v5514_v8 = vld [vmem:[#allocation95_spill] sm:$0xff]  ;;  %v5531_v17 = vld [vmem:[#allocation69_spill] sm:$0xff] }
 0x343   : > { %1855 = vrot.lane.b32.xlu2 %v1306_v44, %s3127_s20  ;;  %v960_v43 = vsel %vm5510_vm4, %v5506_v12, %v5509_v60  ;;  %v1227_v3 = vsel %vm1092_vm3, %v1204_v19, %v4262_v36  ;;  %v1243_v42 = vsel %vm1111_vm5, %v1225_v51, %v959_v20  ;;  %v5513_v36 = vld [vmem:[#allocation101_spill] sm:$0xff]  ;;  %v876_v57 = vsel %vm875_vm12, %v5515_v10, %v5514_v8  ;;  %v5533_v20 = vld [vmem:[#allocation82_spill] sm:$0xff]  ;;  %v5536_v19 = vld [vmem:[#allocation76_spill] sm:$0xff] }
 0x344   : > { %v1245_v37 = vsel %vm1111_vm5, %v1227_v3, %v960_v43  ;;  %v930_v29 = vsel %vm929_vm11, %v5513_v36, %v5512_v4  ;;  %v877_v34 = vsel %vm875_vm12, %v5514_v8, %v5504_v1  ;;  %v1195_v9 = vsel %vm1072_vm2, %v876_v57, %v903_v6  ;;  %v5538_v3 = vld [vmem:[#allocation85_spill] sm:$0xff]  ;;  %vm5541_vm4 = vmmov %vm5527_vm13  ;;  %v5544_v8 = vld [vmem:[#allocation144_spill] sm:$0xff] }
 0x345   : > { %v1198_v54 = vsel %vm1072_vm2, %v877_v34, %v5520_v15  ;;  %v1221_v2 = vsel %vm1092_vm3, %v1195_v9, %v930_v29  ;;  %vm5524_vm11 = vcmask 949248   ;;  %v824_v12 = vsel %vm5532_vm15, %v5531_v17, %v5530_v5  ;;  %v5542_v36 = vld [vmem:[#allocation89_spill] sm:$0xff] }
 0x346   : > { %v1223_v32 = vsel %vm1092_vm3, %v1198_v54, %v5521_v38  ;;  %vm5529_vm14 = vmmov %vm5524_vm11  ;;  %v825_v43 = vsel %vm5534_vm8, %v5530_v5, %v5533_v20  ;;  %v851_v51 = vsel %vm5537_vm6, %v5536_v19, %v5535_v58  ;;  %v5546_v54 = vld [vmem:[#allocation73_spill] sm:$0xff]  ;;  %v5555_v5 = vld [vmem:[#allocation87_spill] sm:$0xff] }
 0x347   : > { %v798_v1 = vsel %vm5529_vm14, %v5522_v50, %v5528_v35  ;;  %vm5557_vm14 = vmmov %vm5537_vm6 }
 0x348   : > { %v1731_v48 = vpop.permute.xlu1 %1730  ;;  %v4693_v63 = vpop.permute.xlu0 %1708 }
 0x349   : > { %v1757_v44 = vsel %vm1734_vm7, %v1729_v41, %v1731_v48  ;;  %v1758_v30 = vsel %vm1734_vm7, %v1731_v48, %v1733_v24  ;;  %v5525_v24 = vld [vmem:[#allocation65_spill] sm:$0xff] }
 0x34a   : > { %1851 = vrot.lane.b32.xlu1 %v1302_v18, %s3127_s20  ;;  %1857 = vrot.lane.b32.xlu0 %v1308_v55, %s3127_s20  ;;  %v4674_v39 = vpop.permute.xlu2 %1692  ;;  %v5517_v18 = vld [vmem:[#allocation109_spill] sm:$0xff]  ;;  %v771_v6 = vsel %vm5541_vm4, %v5525_v24, %v5540_v14 }
 0x34b   : > { %1853 = vrot.lane.b32.xlu2 %v1304_v52, %s3127_s20  ;;  %v957_v55 = vsel %vm5518_vm9, %v5517_v18, %v5516_v27  ;;  %v958_v52 = vsel %vm5519_vm10, %v5516_v27, %v5507_v11  ;;  %vm5543_vm9 = vmmov %vm5537_vm6  ;;  %v1141_v57 = vsel %vm1072_vm2, %v771_v6, %v798_v1 }
 0x34c   : > { %v1239_v7 = vsel %vm1111_vm5, %v1221_v2, %v957_v55  ;;  %v1241_v41 = vsel %vm1111_vm5, %v1223_v32, %v958_v52  ;;  %v852_v29 = vsel %vm5543_vm9, %v5535_v58, %v5542_v36  ;;  %v1164_v55 = vsel %vm1092_vm3, %v1141_v57, %v825_v43  ;;  %v5547_v2 = vld [vmem:[#allocation70_spill] sm:$0xff]  ;;  %vm5548_vm10 = vmmov %vm5524_vm11  ;;  %v5549_v32 = vld [vmem:[#allocation80_spill] sm:$0xff] }
 0x34d   : > { %v1182_v9 = vsel %vm1111_vm5, %v1164_v55, %v852_v29  ;;  %vm5558_vm15 = vmmov %vm5548_vm10  ;;  %v5559_v29 = vld [vmem:[#allocation64_spill] sm:$0xff] }
 0x34e   : > { %vm5565_vm9 = vmmov %vm5541_vm4 }
 0x350   : > { %v1715_v52 = vpop.permute.xlu0 %1714 }
 0x351   : > { %v4630_v53 = vpop.permute.xlu1 %1710 }
 0x352   : > { %1859 = vrot.lane.b32.xlu0 %v1310_v13, %s3127_s20  ;;  %1917 = vrot.lane.b32.xlu1 %v1756_v46, %s3127_s20  ;;  %v797_v46 = vsel %vm5524_vm11, %v5523_v62, %v5522_v50  ;;  %v5526_v13 = vld [vmem:[#allocation50_spill] sm:$0xff]  ;;  %vm5551_vm11 = vmmov %vm5534_vm8 }
 0x353   : > { %1919 = vrot.lane.b32.xlu2 %v1757_v44, %s3127_s20  ;;  %v770_v44 = vsel %vm5527_vm13, %v5526_v13, %v5525_v24  ;;  %v5552_v24 = vld [vmem:[#allocation66_spill] sm:$0xff]  ;;  %vm5554_vm13 = vmmov %vm5541_vm4 }
 0x354   : > { %v1138_v4 = vsel %vm1072_vm2, %v770_v44, %v797_v46  ;;  %v5553_v44 = vld [vmem:[#allocation62_spill] sm:$0xff]  ;;  %vm5560_vm8 = vmmov %vm5548_vm10 }
 0x355   : > { %v768_v1 = vsel %vm5554_vm13, %v5553_v44, %v5552_v24  ;;  %vm5561_vm6 = vmmov %vm5551_vm11  ;;  %vm5571_vm13 = vcmask 1031168   ;;  %v1750_v44 = vsel %vm1734_vm7, %v4636_v59, %v1715_v52  ;;  %v5581_v52 = vld [vmem:[#allocation39_spill] sm:$0xff] }
 0x359   : > { %v4663_v28 = vpop.permute.xlu1 %1690 }
 0x35a   : > { %1837 = vrot.lane.b32.xlu0 %v1243_v42, %s3127_s20  ;;  %1839 = vrot.lane.b32.xlu1 %v1245_v37, %s3127_s20  ;;  %v880_v42 = vsel %vm875_vm12, %v5505_v26, %v5538_v3  ;;  %v5539_v37 = vld [vmem:[#allocation103_spill] sm:$0xff]  ;;  %vm1923_vm12 = vcmask 908288  }
 0x35b   : > { %1915 = vrot.lane.b32.xlu2 %v1755_v21, %s3127_s20  ;;  %v961_v21 = vsel %vm5508_vm1, %v5509_v60, %v5539_v37  ;;  %v1207_v10 = vsel %vm1072_vm2, %v880_v42, %v5544_v8  ;;  %v5545_v26 = vld [vmem:[#allocation107_spill] sm:$0xff]  ;;  %v1162_v60 = vsel %vm1092_vm3, %v1138_v4, %v824_v12  ;;  %v5556_v12 = vld [vmem:[#allocation84_spill] sm:$0xff]  ;;  %v1748_v42 = vsel %vm1734_vm7, %v4693_v63, %v4630_v53  ;;  %vm5563_vm1 = vmmov %vm5561_vm6 }
 0x35c   : > { %v1229_v27 = vsel %vm1092_vm3, %v1207_v10, %v5545_v26  ;;  %v1180_v34 = vsel %vm1111_vm5, %v1162_v60, %v851_v51  ;;  %v849_v43 = vsel %vm5557_vm14, %v5556_v12, %v5555_v5  ;;  %v1749_v37 = vsel %vm1734_vm7, %v4630_v53, %v4636_v59  ;;  %v5562_v10 = vld [vmem:[#allocation71_spill] sm:$0xff]  ;;  %v4791_v26 = vpop.permute.xlu0 %1694  ;;  %v5564_v60 = vld [vmem:[#allocation53_spill] sm:$0xff]  ;;  %v5580_v59 = vld [vmem:[#allocation46_spill] sm:$0xff] }
 0x35d   : > { %v1247_v18 = vsel %vm1111_vm5, %v1229_v27, %v961_v21  ;;  %v796_v4 = vsel %vm5558_vm15, %v5546_v54, %v5523_v62  ;;  %v799_v8 = vsel %vm5560_vm8, %v5528_v35, %v5559_v29  ;;  %v823_v53 = vsel %vm5561_vm6, %v5549_v32, %v5531_v17  ;;  %vm5582_vm6 = vmmov %vm5571_vm13 }
 0x35e   : > { %v826_v57 = vsel %vm5563_vm1, %v5533_v20, %v5562_v10  ;;  %v769_v27 = vsel %vm5541_vm4, %v5552_v24, %v5526_v13  ;;  %v772_v62 = vsel %vm5565_vm9, %v5540_v14, %v5564_v60  ;;  %vm5576_vm15 = vcmask 965632  }
 0x35f   : > { %v1135_v20 = vsel %vm1072_vm2, %v769_v27, %v796_v4  ;;  %v1144_v55 = vsel %vm1072_vm2, %v772_v62, %v799_v8  ;;  %vm5578_vm8 = vmmov %vm5576_vm15  ;;  %v1741_v29 = vsel %vm1734_vm7, %v4674_v39, %v4791_v26  ;;  %v5588_v27 = vld [vmem:[#allocation32_spill] sm:$0xff] }
 0x360   : > { %v1160_v13 = vsel %vm1092_vm3, %v1135_v20, %v823_v53  ;;  %vm5585_vm1 = vmmov %vm5578_vm8 }
 0x361   : > { %v4705_v48 = vpop.permute.xlu1 %1696  ;;  %vm5590_vm9 = vmmov %vm5585_vm1 }
 0x362   : > { %1921 = vrot.lane.b32.xlu0 %v1758_v30, %s3127_s20  ;;  %1833 = vrot.lane.b32.xlu1 %v1239_v7, %s3127_s20  ;;  %v795_v30 = vsel %vm5548_vm10, %v5547_v2, %v5546_v54  ;;  %v5550_v7 = vld [vmem:[#allocation77_spill] sm:$0xff]  ;;  %vm5566_vm10 = vmmov %vm5557_vm14 }
 0x363   : > { %1835 = vrot.lane.b32.xlu2 %v1241_v41, %s3127_s20  ;;  %v822_v41 = vsel %vm5551_vm11, %v5550_v7, %v5549_v32  ;;  %v1132_v3 = vsel %vm1072_vm2, %v768_v1, %v795_v30  ;;  %v850_v35 = vsel %vm5566_vm10, %v5555_v5, %v5536_v19  ;;  %vm5568_vm11 = vmmov %vm5566_vm10  ;;  %v1747_v19 = vsel %vm1734_vm7, %v4537_v56, %v4693_v63  ;;  %v5572_v30 = vld [vmem:[#allocation49_spill] sm:$0xff]  ;;  %v5574_v32 = vld [vmem:[#allocation54_spill] sm:$0xff] }
 0x364   : > { %v1158_v21 = vsel %vm1092_vm3, %v1132_v3, %v822_v41  ;;  %v1178_v14 = vsel %vm1111_vm5, %v1160_v13, %v850_v35  ;;  %vm5573_vm14 = vmmov %vm5571_vm13  ;;  %v5575_v7 = vld [vmem:[#allocation41_spill] sm:$0xff]  ;;  %v5577_v63 = vld [vmem:[#allocation59_spill] sm:$0xff]  ;;  %v1739_v13 = vsel %vm1734_vm7, %v4563_v33, %v4663_v28 }
 0x365   : > { %v4716_v11 = vpop.permute.xlu2 %1909  ;;  %v1176_v6 = vsel %vm1111_vm5, %v1158_v21, %v849_v43  ;;  %v743_v41 = vsel %vm5576_vm15, %v5575_v7, %v5574_v32  ;;  %v5579_v43 = vld [vmem:[#allocation36_spill] sm:$0xff]  ;;  %v5583_v3 = vld [vmem:[#allocation55_spill] sm:$0xff]  ;;  %vm5592_vm10 = vmmov %vm5585_vm1 }
 0x366   : > { %v742_v62 = vsel %vm5590_vm9, %v5583_v3, %v5575_v7  ;;  %v5591_v35 = vld [vmem:[#allocation44_spill] sm:$0xff] }
 0x367   : > { %v5594_v33 = vld [vmem:[#allocation136_spill] sm:$0xff] }
 0x36a   : > { %1841 = vrot.lane.b32.xlu0 %v1247_v18, %s3127_s20  ;;  %1819 = vrot.lane.b32.xlu1 %v1180_v34, %s3127_s20  ;;  %v5567_v18 = vld [vmem:[#allocation78_spill] sm:$0xff]  ;;  %v1166_v34 = vsel %vm1092_vm3, %v1144_v55, %v826_v57 }
 0x36b   : > { %1821 = vrot.lane.b32.xlu2 %v1182_v9, %s3127_s20  ;;  %v853_v17 = vsel %vm5568_vm11, %v5542_v36, %v5567_v18  ;;  %v5569_v36 = vld [vmem:[#allocation45_spill] sm:$0xff]  ;;  %v745_v18 = vsel %vm5592_vm10, %v5577_v63, %v5591_v35 }
 0x36c   : > { %v1906_v15 = vpop.permute.xlu1 %1905  ;;  %v1184_v9 = vsel %vm1111_vm5, %v1166_v34, %v853_v17 }
 0x36d   : > { %v1908_v38 = vpop.permute.xlu2 %1907 }
 0x36e   : > { %v1972_v50 = vsel %vm1923_vm12, %v1906_v15, %v1908_v38  ;;  %v1973_v46 = vsel %vm1923_vm12, %v1908_v38, %v4716_v11  ;;  %v5570_v15 = vld [vmem:[#allocation35_spill] sm:$0xff]  ;;  %v708_v38 = vsel %vm5573_vm14, %v5569_v36, %v5572_v30  ;;  %vm5614_vm14 = vmmov %vm5585_vm1 }
 0x36f   : > { %v2033_v58 = vsel %vm1111_vm5, %v1972_v50, 0  ;;  %v2036_v51 = vsel %vm1111_vm5, %v1973_v46, 0  ;;  %v707_v54 = vsel %vm5571_vm13, %v5570_v15, %v5569_v36  ;;  %v744_v50 = vsel %vm5578_vm8, %v5574_v32, %v5577_v63  ;;  %v5595_v36 = vld [vmem:[#allocation138_spill] sm:$0xff]  ;;  %v5598_v32 = vld [vmem:[#allocation88_spill] sm:$0xff]  ;;  %vm5612_vm13 = vmmov %vm5585_vm1 }
 0x370   : > { %2057 = vmatpush.bf16.msra.mxu0 %v2033_v58  ;;  %2070 = vmatpush.bf16.msra.mxu1 %v2036_v51  ;;  %v1098_v24 = vsel %vm1092_vm3, %v4361_v25, %v707_v54  ;;  %v1100_v5 = vsel %vm1092_vm3, %v4407_v45, %v708_v38  ;;  %v669_v25 = vsel %vm668_vm0, %v5579_v43, %v5469_v61  ;;  %vm5587_vm0 = vmmov %vm5582_vm6  ;;  %v5597_v54 = vld [vmem:[#allocation117_spill] sm:$0xff] }
 0x371   : > { %v1117_v1 = vsel %vm1111_vm5, %v1098_v24, %v743_v41  ;;  %v705_v51 = vsel %vm5582_vm6, %v5581_v52, %v5580_v59  ;;  %v1740_v61 = vsel %vm1734_vm7, %v4663_v28, %v4674_v39  ;;  %v706_v57 = vsel %vm5587_vm0, %v5580_v59, %v5570_v15  ;;  %vm5589_vm4 = vmmov %vm5587_vm0  ;;  %v5596_v15 = vld [vmem:[#allocation139_spill] sm:$0xff]  ;;  %v5606_v59 = vld [vmem:[#allocation48_spill] sm:$0xff] }
 0x372   : > { %1901 = vrot.lane.b32.xlu1 %v1749_v37, %s3127_s20  ;;  %1899 = vrot.lane.b32.xlu0 %v1748_v42, %s3127_s20  ;;  %v5584_v42 = vld [vmem:[#allocation51_spill] sm:$0xff]  ;;  %v709_v39 = vsel %vm5589_vm4, %v5572_v30, %v5588_v27  ;;  %v1096_v17 = vsel %vm1092_vm3, %v4403_v22, %v706_v57  ;;  %v1219_v7 = vsel %vm1072_vm2, %v5598_v32, %v3772_v16  ;;  %vm5609_vm11 = vmmov %vm5587_vm0  ;;  %v5616_v27 = vld [vmem:[#allocation56_spill] sm:$0xff]  ;;  %vm2237_vm4 = vcmask 31744  }
 0x373   : > { %1815 = vrot.lane.b32.xlu2 %v1176_v6, %s3127_s20  ;;  %v741_v37 = vsel %vm5585_vm1, %v5584_v42, %v5583_v3  ;;  %v5586_v6 = vld [vmem:[#allocation29_spill] sm:$0xff]  ;;  %v1102_v20 = vsel %vm1092_vm3, %v4365_v47, %v709_v39  ;;  %v1115_v55 = vsel %vm1111_vm5, %v1096_v17, %v742_v62  ;;  %v1742_v47 = vsel %vm1734_vm7, %v4791_v26, %v4705_v48  ;;  %vm5607_vm7 = vmmov %vm5587_vm0  ;;  %v5615_v57 = vld [vmem:[#allocation67_spill] sm:$0xff] }
 0x374   : > { %v1075_v4 = vsel %vm1072_vm2, %v5586_v6, %v669_v25  ;;  %v1121_v34 = vsel %vm1111_vm5, %v1102_v20, %v745_v18  ;;  %v1237_v41 = vsel %vm1092_vm3, %v1219_v7, %v3803_v0  ;;  %v5602_v0 = vld [vmem:[#allocation92_spill] sm:$0xff]  ;;  %v5610_v6 = vld [vmem:[#allocation63_spill] sm:$0xff]  ;;  %v1156_v39 = vsel %vm1072_vm2, %v5616_v27, %v5615_v57 }
 0x375   : > { %v1094_v8 = vsel %vm1092_vm3, %v1075_v4, %v705_v51  ;;  %v5605_v25 = vld [vmem:[#allocation52_spill] sm:$0xff]  ;;  %v5611_v4 = vld [vmem:[#allocation58_spill] sm:$0xff] }
 0x376   : > { %v1113_v53 = vsel %vm1111_vm5, %v1094_v8, %v741_v37  ;;  %v711_v52 = vsel %vm5607_vm7, %v5606_v59, %v5605_v25  ;;  %v5608_v37 = vld [vmem:[#allocation38_spill] sm:$0xff]  ;;  %v5613_v8 = vld [vmem:[#allocation47_spill] sm:$0xff] }
 0x377   : > { %v1106_v35 = vsel %vm1092_vm3, %v4497_v40, %v711_v52 }
 0x37a   : > { %1823 = vrot.lane.b32.xlu1 %v1184_v9, %s3127_s20  ;;  %1817 = vrot.lane.b32.xlu0 %v1178_v14, %s3127_s20 }
 0x37b   : > { %1897 = vrot.lane.b32.xlu2 %v1747_v19, %s3127_s20  ;;  %v5593_v19 = vld [vmem:[#allocation137_spill] sm:$0xff] }
 0x37d   : > { %v1912_v2 = vpop.permute.xlu0 %1911 }
 0x37e   : > { %v1974_v56 = vsel %vm1923_vm12, %v4716_v11, %v1912_v2  ;;  %v1119_v11 = vsel %vm1111_vm5, %v1100_v5, %v744_v50  ;;  %v5600_v50 = vld [vmem:[#allocation118_spill] sm:$0xff]  ;;  %v5603_v5 = vld [vmem:[#allocation93_spill] sm:$0xff] }
 0x37f   : > { %v2039_v46 = vsel %vm1111_vm5, %v1974_v56, 0  ;;  %v5599_v56 = vld [vmem:[#allocation106_spill] sm:$0xff] }
 0x380   : > { %2083 = vmatpush.bf16.msra.mxu2 %v2039_v46  ;;  %v1255_v63 = vsel %vm1111_vm5, %v1237_v41, %v5599_v56  ;;  %v5601_v46 = vld [vmem:[#allocation114_spill] sm:$0xff] }
 0x382   : > { %1801 = vrot.lane.b32.xlu1 %v1117_v1, %s3127_s20  ;;  %1903 = vrot.lane.b32.xlu0 %v1750_v44, %s3127_s20 }
 0x383   : > { %1803 = vrot.lane.b32.xlu2 %v1119_v11, %s3127_s20  ;;  %v5604_v11 = vld [vmem:[#allocation90_spill] sm:$0xff] }
 0x384   : > { %v1894_v12 = vpop.permute.xlu2 %1893 }
 0x385   : > { %v4846_v58 = vpop.permute.xlu0 %1913 }
 0x386   : > { %v1975_v45 = vsel %vm1923_vm12, %v1912_v2, %v4846_v58 }
 0x387   : > { %v2042_v21 = vsel %vm1111_vm5, %v1975_v45, 0 }
 0x388   : > { %2096 = vmatpush.bf16.msra.mxu3 %v2042_v21  ;;  %v712_v21 = vsel %vm5609_vm11, %v5605_v25, %v5608_v37 }
 0x389   : > { %v1108_v18 = vsel %vm1092_vm3, %v4491_v49, %v712_v21  ;;  %v1091_v49 = vsel %vm1072_vm2, %v5475_v31, %v5471_v23 }
 0x38a   : > { %1881 = vrot.lane.b32.xlu0 %v1740_v61, %s3127_s20  ;;  %1883 = vrot.lane.b32.xlu1 %v1741_v29, %s3127_s20  ;;  %v747_v61 = vsel %vm5612_vm13, %v5611_v4, %v5610_v6 }
 0x38b   : > { %1797 = vrot.lane.b32.xlu2 %v1113_v53, %s3127_s20  ;;  %v748_v53 = vsel %vm5614_vm14, %v5610_v6, %v5613_v8  ;;  %v1125_v20 = vsel %vm1111_vm5, %v1106_v35, %v747_v61 }
 0x38c   : > { %v4870_v10 = vpop.permute.xlu2 %1895 }
 0x38d   : > { %v1967_v60 = vsel %vm1923_vm12, %v1894_v12, %v4870_v10 }
 0x38e   : > { %2097 = vmatpush.bf16.msra.mxu3 %v1967_v60  ;;  %v5617_v60 = vld [vmem:[#allocation74_spill] sm:$0xff] }
 0x38f   : > { %v1174_v62 = vsel %vm1092_vm3, %v1156_v39, %v5617_v60 }
 0x392   : > { %1799 = vrot.lane.b32.xlu0 %v1115_v55, %s3127_s20  ;;  %1805 = vrot.lane.b32.xlu1 %v1121_v34, %s3127_s20  ;;  %v1127_v55 = vsel %vm1111_vm5, %v1108_v18, %v748_v53  ;;  %v5015_v53 = vld [vmem:[%s5197_s3] sm:$0xf] }
 0x393   : > { %1879 = vrot.lane.b32.xlu2 %v1739_v13, %s3127_s20 }
 0x394   : > { %v1892_v9 = vpop.permute.xlu1 %1891 }
 0x395   : > { %v1870_v14 = vpop.permute.xlu2 %1869  ;;  %v1966_v22 = vsel %vm1923_vm12, %v1892_v9, %v1894_v12 }
 0x396   : > { %2084 = vmatpush.bf16.msra.mxu2 %v1966_v22 }
 0x39a   : > { %1885 = vrot.lane.b32.xlu0 %v1742_v47, %s3127_s20  ;;  %1863 = vrot.lane.b32.xlu1 %v5593_v19, %s3127_s20  ;;  %v1110_v47 = vsel %vm1092_vm3, %v1091_v49, %v5608_v37  ;;  %vm5620_vm3 = vcmask 883712  }
 0x39b   : > { %1865 = vrot.lane.b32.xlu2 %v5594_v33, %s3127_s20  ;;  %v1129_v19 = vsel %vm1111_vm5, %v1110_v47, %v5613_v8  ;;  %v5619_v33 = vld [vmem:[#allocation60_spill] sm:$0xff]  ;;  %vm5621_vm15 = vmmov %vm5620_vm3 }
 0x39c   : > { %vm5622_vm8 = vmmov %vm5620_vm3 }
 0x39d   : > { %v1856_v28 = vpop.permute.xlu2 %1855  ;;  %vm5623_vm6 = vmmov %vm5620_vm3 }
 0x39e   : > { %vm5625_vm1 = vmmov %vm5620_vm3 }
 0x39f   : > { %vm5626_vm0 = vmmov %vm5625_vm1 }
 0x3a2   : > { %1861 = vrot.lane.b32.xlu0 %v5595_v36, %s3127_s20  ;;  %1867 = vrot.lane.b32.xlu1 %v5596_v15, %s3127_s20 }
 0x3a3   : > { %1845 = vrot.lane.b32.xlu2 %v5597_v54, %s3127_s20  ;;  %v1888_v2 = vpop.permute.xlu0 %1887 }
 0x3a4   : > { %v1890_v48 = vpop.permute.xlu1 %1889 }
 0x3a5   : > { %v1854_v26 = vpop.permute.xlu2 %1853  ;;  %v1964_v30 = vsel %vm1923_vm12, %v1888_v2, %v1890_v48  ;;  %v1965_v38 = vsel %vm1923_vm12, %v1890_v48, %v1892_v9 }
 0x3a6   : > { %2058 = vmatpush.bf16.msra.mxu0 %v1964_v30  ;;  %2071 = vmatpush.bf16.msra.mxu1 %v1965_v38  ;;  %v1949_v34 = vsel %vm1923_vm12, %v1854_v26, %v1856_v28 }
 0x3aa   : > { %1847 = vrot.lane.b32.xlu0 %v5600_v50, %s3127_s20  ;;  %1843 = vrot.lane.b32.xlu1 %v5601_v46, %s3127_s20 }
 0x3ab   : > { %1849 = vrot.lane.b32.xlu2 %v1255_v63, %s3127_s20 }
 0x3ac   : > { %v1876_v24 = vpop.permute.xlu1 %1875  ;;  %v1874_v44 = vpop.permute.xlu0 %1873 }
 0x3ad   : > { %v4927_v1 = vpop.permute.xlu2 %1919  ;;  %v1958_v16 = vsel %vm1923_vm12, %v1874_v44, %v1876_v24 }
 0x3ae   : > { %2085 = vmatpush.bf16.msra.mxu2 %v1958_v16 }
 0x3b2   : > { %1827 = vrot.lane.b32.xlu0 %v5602_v0, %s3127_s20  ;;  %1829 = vrot.lane.b32.xlu1 %v5603_v5, %s3127_s20 }
 0x3b3   : > { %1825 = vrot.lane.b32.xlu2 %v5604_v11, %s3127_s20 }
 0x3b4   : > { %v4936_v12 = vpop.permute.xlu1 %1877  ;;  %v1872_v43 = vpop.permute.xlu0 %1871 }
 0x3b5   : > { %v1916_v51 = vpop.permute.xlu2 %1915  ;;  %v1956_v45 = vsel %vm1923_vm12, %v1870_v14, %v1872_v43  ;;  %v1957_v3 = vsel %vm1923_vm12, %v1872_v43, %v1874_v44  ;;  %v1959_v42 = vsel %vm1923_vm12, %v1876_v24, %v4936_v12 }
 0x3b6   : > { %2059 = vmatpush.bf16.msra.mxu0 %v1956_v45  ;;  %2072 = vmatpush.bf16.msra.mxu1 %v1957_v3  ;;  %v4953_v29 = vsel %vm1923_vm12, %v4846_v58, %v1916_v51  ;;  %v5618_v58 = vld [vmem:[#allocation81_spill] sm:$0xff] }
 0x3b7   : > { %2098 = vmatpush.bf16.msra.mxu3 %v1959_v42  ;;  %v1192_v17 = vsel %vm1111_vm5, %v1174_v62, %v5618_v58  ;;  %v2045_v18 = vsel %vm1111_vm5, %v4953_v29, 0 }
 0x3ba   : > { %1831 = vrot.lane.b32.xlu0 %v1192_v17, %s3127_s20  ;;  %1809 = vrot.lane.b32.xlu1 %v1125_v20, %s3127_s20 }
 0x3bb   : > { %1811 = vrot.lane.b32.xlu2 %v1127_v55, %s3127_s20  ;;  %2073 = vmatpush.bf16.msra.mxu1 %v1949_v34 }
 0x3bc   : > { %v1852_v40 = vpop.permute.xlu1 %1851  ;;  %v1858_v13 = vpop.permute.xlu0 %1857 }
 0x3bd   : > { %v1836_v9 = vpop.permute.xlu2 %1835  ;;  %v1948_v14 = vsel %vm1923_vm12, %v1852_v40, %v1854_v26  ;;  %v1950_v22 = vsel %vm1923_vm12, %v1856_v28, %v1858_v13 }
 0x3be   : > { %2060 = vmatpush.bf16.msra.mxu0 %v1948_v14  ;;  %2086 = vmatpush.bf16.msra.mxu2 %v1950_v22 }
 0x3c2   : > { %1807 = vrot.lane.b32.xlu0 %v5619_v33, %s3127_s20  ;;  %1813 = vrot.lane.b32.xlu1 %v1129_v19, %s3127_s20 }
 0x3c4   : > { %v1918_v36 = vpop.permute.xlu1 %1917  ;;  %v4987_v23 = vpop.permute.xlu0 %1859 }
 0x3c5   : > { %v1822_v31 = vpop.permute.xlu2 %1821  ;;  %v1951_v28 = vsel %vm1923_vm12, %v1858_v13, %v4987_v23  ;;  %v1977_v15 = vsel %vm1923_vm12, %v1916_v51, %v1918_v36  ;;  %v1978_v52 = vsel %vm1923_vm12, %v1918_v36, %v4927_v1 }
 0x3c6   : > { %2099 = vmatpush.bf16.msra.mxu3 %v1951_v28  ;;  %v2051_v37 = vsel %vm1111_vm5, %v1978_v52, 0  ;;  %v2048_v58 = vsel %vm1111_vm5, %v1977_v15, 0 }
 0x3cc   : > { %v1840_v54 = vpop.permute.xlu1 %1839  ;;  %v1838_v2 = vpop.permute.xlu0 %1837 }
 0x3cd   : > { %v1816_v48 = vpop.permute.xlu2 %1815  ;;  %v1941_v26 = vsel %vm1923_vm12, %v1836_v9, %v1838_v2  ;;  %v1942_v30 = vsel %vm1923_vm12, %v1838_v2, %v1840_v54 }
 0x3ce   : > { %2074 = vmatpush.bf16.msra.mxu1 %v1941_v26  ;;  %2087 = vmatpush.bf16.msra.mxu2 %v1942_v30 }
 0x3d4   : > { %v1834_v38 = vpop.permute.xlu1 %1833  ;;  %v1922_v32 = vpop.permute.xlu0 %1921 }
 0x3d5   : > { %v1940_v7 = vsel %vm1923_vm12, %v1834_v38, %v1836_v9  ;;  %v1898_v41 = vpop.permute.xlu2 %1897  ;;  %v1979_v39 = vsel %vm1923_vm12, %v4927_v1, %v1922_v32 }
 0x3d6   : > { %2061 = vmatpush.bf16.msra.mxu0 %v1940_v7  ;;  %v2054_v17 = vsel %vm1111_vm5, %v1979_v39, 0  ;;  %v1968_v20 = vsel %vm1923_vm12, %v4870_v10, %v1898_v41  ;;  %v2231_v7 = vld.sshfl [vmem:[#allocation1 + $0x10] sm:$0xff pattern:$0x73625140]  ;;  %vm5624_vm5 = vmmov %vm5620_vm3 }
 0x3dc   : > { %v1820_v56 = vpop.permute.xlu1 %1819  ;;  %v4995_v63 = vpop.permute.xlu0 %1841 }
 0x3dd   : > { %v1934_v50 = vsel %vm1923_vm12, %v1820_v56, %v1822_v31  ;;  %v1943_v46 = vsel %vm1923_vm12, %v1840_v54, %v4995_v63  ;;  %v1804_v24 = vpop.permute.xlu2 %1803 }
 0x3de   : > { %2088 = vmatpush.bf16.msra.mxu2 %v1934_v50  ;;  %2100 = vmatpush.bf16.msra.mxu3 %v1943_v46  ;;  %v2245_v50 = vsel %vm1072_vm2, %v2231_v7, 0  ;;  %v2235_v46 = vld.sshfl [vmem:[#allocation1 + $0x30] sm:$0xff pattern:$0x73625140] }
 0x3e4   : > { %v1902_v44 = vpop.permute.xlu1 %1901  ;;  %v1900_v16 = vpop.permute.xlu0 %1899 }
 0x3e5   : > { %v1798_v0 = vpop.permute.xlu2 %1797  ;;  %v1970_v21 = vsel %vm1923_vm12, %v1900_v16, %v1902_v44  ;;  %v1969_v29 = vsel %vm1923_vm12, %v1898_v41, %v1900_v16  ;;  %v2253_v16 = vsel %vm1072_vm2, %v2235_v46, 0 }
 0x3ec   : > { %v5000_v5 = vpop.permute.xlu1 %1823  ;;  %v1818_v11 = vpop.permute.xlu0 %1817 }
 0x3ed   : > { %v1932_v43 = vsel %vm1923_vm12, %v1816_v48, %v1818_v11  ;;  %v1933_v25 = vsel %vm1923_vm12, %v1818_v11, %v1820_v56  ;;  %v1935_v59 = vsel %vm1923_vm12, %v1822_v31, %v5000_v5  ;;  %v1880_v3 = vpop.permute.xlu2 %1879  ;;  %v2230_v11 = vld.sshfl [vmem:[#allocation1 + $0x8] sm:$0xff pattern:$0x73625140] }
 0x3ee   : > { %2062 = vmatpush.bf16.msra.mxu0 %v1932_v43  ;;  %2075 = vmatpush.bf16.msra.mxu1 %v1933_v25  ;;  %v1960_v10 = vsel %vm1923_vm12, %v4936_v12, %v1880_v3 }
 0x3ef   : > { %2101 = vmatpush.bf16.msra.mxu3 %v1935_v59 }
 0x3f4   : > { %v1802_v51 = vpop.permute.xlu1 %1801  ;;  %v1904_v45 = vpop.permute.xlu0 %1903 }
 0x3f5   : > { %v1926_v42 = vsel %vm1923_vm12, %v1802_v51, %v1804_v24  ;;  %v1866_v8 = vpop.permute.xlu2 %1865  ;;  %v1971_v55 = vsel %vm1923_vm12, %v1902_v44, %v1904_v45  ;;  %v2233_v45 = vld.sshfl [vmem:[#allocation1 + $0x20] sm:$0xff pattern:$0x73625140] }
 0x3f6   : > { %2089 = vmatpush.bf16.msra.mxu2 %v1926_v42 }
 0x3f9   : > { %2716 = vmatmul.msk.bf16.vlgmr.msra.gmra.mxu2 %vm5620_vm3, %v5015_v53 }
 0x3fa   : > { %2135 = vmatpush.bf16.msrb.mxu2 %v2051_v37 }
 0x3fc   : > { %v1884_v6 = vpop.permute.xlu1 %1883  ;;  %v1882_v4 = vpop.permute.xlu0 %1881 }
 0x3fd   : > { %v1962_v61 = vsel %vm1923_vm12, %v1882_v4, %v1884_v6  ;;  %v1846_v1 = vpop.permute.xlu2 %1845  ;;  %v1961_v9 = vsel %vm1923_vm12, %v1880_v3, %v1882_v4  ;;  %v2249_v4 = vsel %vm1072_vm2, %v2233_v45, 0 }
 0x3fe   : > { %2136 = vmatpush.bf16.msrb.mxu2 %v1970_v21  ;;  %v2236_v21 = vld.sshfl [vmem:[#allocation1 + $0x38] sm:$0xff pattern:$0x73625140] }
 0x402   : > { %2137 = vmatpush.bf16.msrb.mxu2 %v1962_v61  ;;  %v2255_v61 = vsel %vm1072_vm2, %v2236_v21, 0 }
 0x404   : > { %v5019_v57 = vpop.permute.xlu1 %1805  ;;  %v1800_v27 = vpop.permute.xlu0 %1799 }
 0x405   : > { %v1924_v60 = vsel %vm1923_vm12, %v1798_v0, %v1800_v27  ;;  %v1925_v62 = vsel %vm1923_vm12, %v1800_v27, %v1802_v51  ;;  %v1927_v35 = vsel %vm1923_vm12, %v1804_v24, %v5019_v57  ;;  %v1850_v14 = vpop.permute.xlu2 %1849  ;;  %v2229_v0 = vld.sshfl [vmem:[#allocation1] sm:$0xff pattern:$0x73625140]  ;;  %v2243_v51 = vsel %vm1072_vm2, %v2230_v11, 0 }
 0x406   : > { %2063 = vmatpush.bf16.msra.mxu0 %v1924_v60  ;;  %2076 = vmatpush.bf16.msra.mxu1 %v1925_v62  ;;  %v2241_v59 = vsel %vm1072_vm2, %v2229_v0, 0 }
 0x407   : > { %2102 = vmatpush.bf16.msra.mxu3 %v1927_v35 }
 0x409   : > { %2714 = vmatmul.msk.bf16.vlgmr.msra.gmra.mxu0 %vm5621_vm15, %v5015_v53  ;;  %2715 = vmatmul.msk.bf16.vlgmr.msra.gmra.mxu1 %vm5622_vm8, %v5015_v53 }
 0x40a   : > { %2109 = vmatpush.bf16.msrb.mxu0 %v2045_v18  ;;  %2122 = vmatpush.bf16.msrb.mxu1 %v2048_v58 }
 0x40b   : > { %2148 = vmatpush.bf16.msrb.mxu3 %v2054_v17 }
 0x40c   : > { %2717 = vmatmul.msk.bf16.vlgmr.msra.gmra.mxu3 %vm5623_vm6, %v5015_v53  ;;  %v1864_v34 = vpop.permute.xlu1 %1863  ;;  %v1886_v40 = vpop.permute.xlu0 %1885 }
 0x40d   : > { %v1954_v13 = vsel %vm1923_vm12, %v1864_v34, %v1866_v8  ;;  %v1963_v49 = vsel %vm1923_vm12, %v1884_v6, %v1886_v40  ;;  %v1826_v48 = vpop.permute.xlu2 %1825  ;;  %v2234_v6 = vld.sshfl [vmem:[#allocation1 + $0x28] sm:$0xff pattern:$0x73625140] }
 0x40e   : > { %2110 = vmatpush.bf16.msrb.mxu0 %v1968_v20  ;;  %2123 = vmatpush.bf16.msrb.mxu1 %v1969_v29  ;;  %v5091_v20 = vld [vmem:[#allocation8] sm:$0xff] }
 0x40f   : > { %2149 = vmatpush.bf16.msrb.mxu3 %v1971_v55  ;;  %2138 = vmatpush.bf16.msrb.mxu2 %v1954_v13  ;;  %v2169_v29 = vperm.slane %v5091_v20, 0  ;;  %v2170_v55 = vperm.slane %v5091_v20, 1  ;;  %v2171_v13 = vperm.slane %v5091_v20, 2 }
 0x412   : > { %2111 = vmatpush.bf16.msrb.mxu0 %v1960_v10  ;;  %2124 = vmatpush.bf16.msrb.mxu1 %v1961_v9 }
 0x413   : > { %2150 = vmatpush.bf16.msrb.mxu3 %v1963_v49 }
 0x414   : > { %v1868_v22 = vpop.permute.xlu1 %1867  ;;  %v1862_v47 = vpop.permute.xlu0 %1861 }
 0x415   : > { %v1952_v19 = vsel %vm1923_vm12, %v4987_v23, %v1862_v47  ;;  %v1953_v33 = vsel %vm1923_vm12, %v1862_v47, %v1864_v34  ;;  %v1955_v36 = vsel %vm1923_vm12, %v1866_v8, %v1868_v22  ;;  %v1936_v23 = vsel %vm1923_vm12, %v5000_v5, %v1826_v48  ;;  %v1812_v41 = vpop.permute.xlu2 %1811  ;;  %v2232_v5 = vld.sshfl [vmem:[#allocation1 + $0x18] sm:$0xff pattern:$0x73625140] }
 0x416   : > { %2112 = vmatpush.bf16.msrb.mxu0 %v1952_v19  ;;  %2125 = vmatpush.bf16.msrb.mxu1 %v1953_v33  ;;  %v2247_v52 = vsel %vm1072_vm2, %v2232_v5, 0  ;;  %v2251_v8 = vsel %vm1072_vm2, %v2234_v6, 0 }
 0x417   : > { %2151 = vmatpush.bf16.msrb.mxu3 %v1955_v36 }
 0x41c   : > { %v1844_v31 = vpop.permute.xlu1 %1843  ;;  %v1848_v12 = vpop.permute.xlu0 %1847 }
 0x41d   : > { %v1944_v28 = vsel %vm1923_vm12, %v4995_v63, %v1844_v31  ;;  %v1945_v15 = vsel %vm1923_vm12, %v1844_v31, %v1846_v1  ;;  %v1946_v54 = vsel %vm1923_vm12, %v1846_v1, %v1848_v12  ;;  %v1947_v2 = vsel %vm1923_vm12, %v1848_v12, %v1850_v14 }
 0x41e   : > { %2113 = vmatpush.bf16.msrb.mxu0 %v1944_v28  ;;  %2126 = vmatpush.bf16.msrb.mxu1 %v1945_v15  ;;  %v2172_v14 = vperm.slane %v5091_v20, 3  ;;  %v2173_v31 = vperm.slane %v5091_v20, 4  ;;  %v2174_v12 = vperm.slane %v5091_v20, 5 }
 0x41f   : > { %2139 = vmatpush.bf16.msrb.mxu2 %v1946_v54  ;;  %2152 = vmatpush.bf16.msrb.mxu3 %v1947_v2  ;;  %v2175_v2 = vperm.slane %v5091_v20, 6 }
 0x422   : > { %2114 = vmatpush.bf16.msrb.mxu0 %v1936_v23 }
 0x424   : > { %v1830_v26 = vpop.permute.xlu1 %1829  ;;  %v1828_v30 = vpop.permute.xlu0 %1827 }
 0x425   : > { %v1937_v38 = vsel %vm1923_vm12, %v1826_v48, %v1828_v30  ;;  %v1938_v32 = vsel %vm1923_vm12, %v1828_v30, %v1830_v26 }
 0x426   : > { %2127 = vmatpush.bf16.msrb.mxu1 %v1937_v38  ;;  %2140 = vmatpush.bf16.msrb.mxu2 %v1938_v32 }
 0x42c   : > { %v1810_v56 = vpop.permute.xlu1 %1809  ;;  %v1832_v63 = vpop.permute.xlu0 %1831 }
 0x42d   : > { %v1930_v24 = vsel %vm1923_vm12, %v1810_v56, %v1812_v41  ;;  %v1939_v44 = vsel %vm1923_vm12, %v1830_v26, %v1832_v63 }
 0x42e   : > { %2141 = vmatpush.bf16.msrb.mxu2 %v1930_v24  ;;  %2153 = vmatpush.bf16.msrb.mxu3 %v1939_v44 }
 0x431   : > { %2720 = vmatmul.msk.bf16.vlgmr.msrb.gmra.mxu2 %vm5624_vm5, %v5015_v53 }
 0x432   : > { %2290 = vmatpush.bf16.msra.mxu2 %v2245_v50  ;;  %v2176_v50 = vperm.slane %v5091_v20, 7 }
 0x434   : > { %v1814_v43 = vpop.permute.xlu1 %1813  ;;  %v1808_v25 = vpop.permute.xlu0 %1807 }
 0x435   : > { %v1928_v3 = vsel %vm1923_vm12, %v5019_v57, %v1808_v25  ;;  %v1929_v42 = vsel %vm1923_vm12, %v1808_v25, %v1810_v56  ;;  %v1931_v37 = vsel %vm1923_vm12, %v1812_v41, %v1814_v43  ;;  %vm5627_vm12 = vmmov %vm5626_vm0  ;;  %v2225_v57 = vld [vmem:[%s5198_s4] sm:$0xf] }
 0x436   : > { %2342 = vmatpush.bf16.msrb.mxu2 %v2253_v16  ;;  %2115 = vmatpush.bf16.msrb.mxu0 %v1928_v3 }
 0x437   : > { %2128 = vmatpush.bf16.msrb.mxu1 %v1929_v42  ;;  %2154 = vmatpush.bf16.msrb.mxu3 %v1931_v37 }
 0x439   : > { %2718 = vmatmul.msk.bf16.vlgmr.msrb.gmra.mxu0 %vm5625_vm1, %v5015_v53 }
 0x43a   : > { %2264 = vmatpush.bf16.msra.mxu0 %v2241_v59  ;;  %2719 = vmatmul.msk.bf16.vlgmr.msrb.gmra.mxu1 %vm5626_vm0, %v5015_v53 }
 0x43b   : > { %2303 = vmatpush.bf16.msra.mxu3 %v2247_v52  ;;  %2277 = vmatpush.bf16.msra.mxu1 %v2243_v51 }
 0x43c   : > { %2721 = vmatmul.msk.bf16.vlgmr.msrb.gmra.mxu3 %vm5627_vm12, %v5015_v53 }
 0x43e   : > { %2316 = vmatpush.bf16.msrb.mxu0 %v2249_v4 }
 0x43f   : > { %2355 = vmatpush.bf16.msrb.mxu3 %v2255_v61  ;;  %2329 = vmatpush.bf16.msrb.mxu1 %v2251_v8 }
 0x441   : > { %2724 = vmatmul.msk.bf16.vlgmr.msra.gmra.mxu2 %vm2237_vm4, %v2225_v57 }
 0x449   : > { %2722 = vmatmul.msk.bf16.vlgmr.msra.gmra.mxu0 %vm2237_vm4, %v2225_v57 }
 0x44a   : > { %2723 = vmatmul.msk.bf16.vlgmr.msra.gmra.mxu1 %vm2237_vm4, %v2225_v57 }
 0x44c   : > { %2725 = vmatmul.msk.bf16.vlgmr.msra.gmra.mxu3 %vm2237_vm4, %v2225_v57 }
 0x451   : > { %2728 = vmatmul.msk.bf16.vlgmr.msrb.gmra.mxu2 %vm2237_vm4, %v2225_v57 }
 0x459   : > { %2726 = vmatmul.msk.bf16.vlgmr.msrb.gmra.mxu0 %vm2237_vm4, %v2225_v57 }
 0x45a   : > { %2727 = vmatmul.msk.bf16.vlgmr.msrb.gmra.mxu1 %vm2237_vm4, %v2225_v57 }
 0x45c   : > { %2729 = vmatmul.msk.bf16.vlgmr.msrb.gmra.mxu3 %vm2237_vm4, %v2225_v57 }
 0x47c   : > { %v2091_v27 = vpop.f32.mrf.mxu2 }
 0x47d   : > { %v2187_v9 = vmul.f32 %v2171_v13, %v2091_v27 }
 0x47f   : > { %v2205_v19 = vmul.f32 %v2187_v9, %v2091_v27 }
 0x484   : > { %v2093_v62 = vpop.f32.mrf.mxu2 }
 0x486   : > { %v2065_v53 = vpop.f32.mrf.mxu0  ;;  %v2078_v39 = vpop.f32.mrf.mxu1 }
 0x487   : > { %v2160_v60 = vpack.c.bf16 %v2078_v39, %v2065_v53  ;;  %v2185_v34 = vmul.f32 %v2169_v29, %v2065_v53  ;;  %v2186_v40 = vmul.f32 %v2170_v55, %v2078_v39 }
 0x489   : > { %2164 = vst [vmem:[%s5087_s25] sm:$0xff] %v2160_v60  ;;  %v2203_v49 = vmul.f32 %v2185_v34, %v2065_v53  ;;  %v2204_v10 = vmul.f32 %v2186_v40, %v2078_v39  ;;  %v2194_v22 = vadd.f32 %v2186_v40, %v2185_v34 }
 0x48b   : > { %v2211_v47 = vadd.f32 %v2204_v10, %v2203_v49  ;;  %v2195_v36 = vadd.f32 %v2194_v22, %v2187_v9 }
 0x48d   : > { %v2212_v15 = vadd.f32 %v2211_v47, %v2205_v19 }
 0x48e   : > { %v2067_v58 = vpop.f32.mrf.mxu0  ;;  %v2080_v17 = vpop.f32.mrf.mxu1 }
 0x48f   : > { %v2104_v35 = vpop.f32.mrf.mxu3 }
 0x490   : > { %v2161_v18 = vpack.c.bf16 %v2104_v35, %v2091_v27  ;;  %v2188_v33 = vmul.f32 %v2172_v14, %v2104_v35 }
 0x492   : > { %2165 = vst [vmem:[%s5087_s25 + $0x8] sm:$0xff] %v2161_v18  ;;  %v2206_v54 = vmul.f32 %v2188_v33, %v2104_v35  ;;  %v2196_v26 = vadd.f32 %v2195_v36, %v2188_v33 }
 0x494   : > { %v2213_v7 = vadd.f32 %v2212_v15, %v2206_v54 }
 0x497   : > { %v2106_v1 = vpop.f32.mrf.mxu3 }
 0x4b4   : > { %v2143_v28 = vpop.f32.mrf.mxu2 }
 0x4b5   : > { %v2191_v41 = vmul.f32 %v2175_v2, %v2143_v28 }
 0x4b6   : > { %v2117_v48 = vpop.f32.mrf.mxu0 }
 0x4b7   : > { %v2130_v23 = vpop.f32.mrf.mxu1  ;;  %v2189_v30 = vmul.f32 %v2173_v31, %v2117_v48  ;;  %v2209_v0 = vmul.f32 %v2191_v41, %v2143_v28 }
 0x4b8   : > { %v2162_v38 = vpack.c.bf16 %v2130_v23, %v2117_v48  ;;  %v2190_v32 = vmul.f32 %v2174_v12, %v2130_v23 }
 0x4b9   : > { %v2197_v56 = vadd.f32 %v2196_v26, %v2189_v30  ;;  %v2207_v63 = vmul.f32 %v2189_v30, %v2117_v48 }
 0x4ba   : > { %2166 = vst [vmem:[%s5087_s25 + $0x10] sm:$0xff] %v2162_v38  ;;  %v2208_v44 = vmul.f32 %v2190_v32, %v2130_v23 }
 0x4bb   : > { %v2214_v46 = vadd.f32 %v2213_v7, %v2207_v63  ;;  %v2198_v24 = vadd.f32 %v2197_v56, %v2190_v32 }
 0x4bc   : > { %v2145_v16 = vpop.f32.mrf.mxu2 }
 0x4bd   : > { %v2215_v5 = vadd.f32 %v2214_v46, %v2208_v44  ;;  %v2199_v43 = vadd.f32 %v2198_v24, %v2191_v41 }
 0x4be   : > { %v2119_v52 = vpop.f32.mrf.mxu0 }
 0x4bf   : > { %v2156_v11 = vpop.f32.mrf.mxu3  ;;  %v2132_v51 = vpop.f32.mrf.mxu1  ;;  %v2216_v45 = vadd.f32 %v2215_v5, %v2209_v0 }
 0x4c0   : > { %v2163_v25 = vpack.c.bf16 %v2156_v11, %v2143_v28  ;;  %v2192_v59 = vmul.f32 %v2176_v50, %v2156_v11 }
 0x4c2   : > { %2167 = vst [vmem:[%s5087_s25 + $0x18] sm:$0xff] %v2163_v25  ;;  %v2210_v3 = vmul.f32 %v2192_v59, %v2156_v11  ;;  %v2200_v42 = vadd.f32 %v2199_v43, %v2192_v59 }
 0x4c4   : > { %2201 = vadd.xlane.f32.xlu2 %v2200_v42  ;;  %v2217_v37 = vadd.f32 %v2216_v45, %v2210_v3  ;;  %v2292_v21 = vpop.f32.mrf.mxu2 }
 0x4c5   : > { %v2371_v60 = vmul.f32 %v2292_v21, %v2171_v13 }
 0x4c6   : > { %2218 = vadd.xlane.f32.xlu0 %v2217_v37  ;;  %v2266_v4 = vpop.f32.mrf.mxu0 }
 0x4c7   : > { %v2158_v6 = vpop.f32.mrf.mxu3  ;;  %v2279_v61 = vpop.f32.mrf.mxu1  ;;  %v2369_v57 = vmul.f32 %v2266_v4, %v2169_v29  ;;  %v2389_v40 = vmul.f32 %v2371_v60, %v2292_v21 }
 0x4c8   : > { %v2361_v8 = vpack.c.bf16 %v2279_v61, %v2266_v4  ;;  %v2370_v27 = vmul.f32 %v2279_v61, %v2170_v55 }
 0x4c9   : > { %v2387_v62 = vmul.f32 %v2369_v57, %v2266_v4 }
 0x4ca   : > { %2365 = vst [vmem:[%s5113_s28] sm:$0xff] %v2361_v8  ;;  %v2388_v35 = vmul.f32 %v2370_v27, %v2279_v61  ;;  %v2378_v1 = vadd.f32 %v2370_v27, %v2369_v57 }
 0x4cc   : > { %v2294_v53 = vpop.f32.mrf.mxu2  ;;  %v2395_v49 = vadd.f32 %v2388_v35, %v2387_v62  ;;  %v2379_v9 = vadd.f32 %v2378_v1, %v2371_v60 }
 0x4ce   : > { %v2268_v58 = vpop.f32.mrf.mxu0  ;;  %v2396_v55 = vadd.f32 %v2395_v49, %v2389_v40 }
 0x4cf   : > { %v2305_v39 = vpop.f32.mrf.mxu3  ;;  %v2281_v17 = vpop.f32.mrf.mxu1 }
 0x4d0   : > { %v2362_v18 = vpack.c.bf16 %v2305_v39, %v2292_v21  ;;  %v2372_v34 = vmul.f32 %v2305_v39, %v2172_v14 }
 0x4d2   : > { %2366 = vst [vmem:[%s5113_s28 + $0x8] sm:$0xff] %v2362_v18  ;;  %v2390_v22 = vmul.f32 %v2372_v34, %v2305_v39  ;;  %v2380_v19 = vadd.f32 %v2379_v9, %v2372_v34 }
 0x4d4   : > { %v2344_v10 = vpop.f32.mrf.mxu2  ;;  %v2397_v14 = vadd.f32 %v2396_v55, %v2390_v22 }
 0x4d5   : > { %v2375_v15 = vmul.f32 %v2344_v10, %v2175_v2 }
 0x4d6   : > { %v2318_v47 = vpop.f32.mrf.mxu0 }
 0x4d7   : > { %v2307_v29 = vpop.f32.mrf.mxu3  ;;  %v2331_v13 = vpop.f32.mrf.mxu1  ;;  %v2373_v33 = vmul.f32 %v2318_v47, %v2173_v31 }
 0x4d8   : > { %v2363_v36 = vpack.c.bf16 %v2331_v13, %v2318_v47  ;;  %v2374_v28 = vmul.f32 %v2331_v13, %v2174_v12 }
 0x4d9   : > { %v2381_v31 = vadd.f32 %v2380_v19, %v2373_v33  ;;  %v2391_v54 = vmul.f32 %v2373_v33, %v2318_v47 }
 0x4da   : > { %2367 = vst [vmem:[%s5113_s28 + $0x10] sm:$0xff] %v2363_v36  ;;  %v2392_v23 = vmul.f32 %v2374_v28, %v2331_v13 }
 0x4db   : > { %v2398_v12 = vadd.f32 %v2397_v14, %v2391_v54  ;;  %v2382_v48 = vadd.f32 %v2381_v31, %v2374_v28 }
 0x4dc   : > { %v2346_v26 = vpop.f32.mrf.mxu2 }
 0x4dd   : > { %3005 = shalt.err (!%p3002_p13)
}
 0x4de   : > { %2755 = dma.vmem_to_hbm [thread:$0]  (%p3264_p0), %s2437_s8, 512, %s2439_s9, %s2408_s14   ;;  %v2393_v2 = vmul.f32 %v2375_v15, %v2344_v10  ;;  %v2399_v30 = vadd.f32 %v2398_v12, %v2392_v23  ;;  %v2383_v32 = vadd.f32 %v2382_v48, %v2375_v15  ;;  %v2320_v56 = vpop.f32.mrf.mxu0 }
 0x4df   : > { %v2357_v38 = vpop.f32.mrf.mxu3  ;;  %s2453_s21 = sshll.u32 %s5113_s28, 4  ;;  %s2455_s23 = sshll.u32 %s5128_s11, 4  ;;  %v2333_v63 = vpop.f32.mrf.mxu1  ;;  %s2454_s21 = int_to_ptr.vmem [resolvable:$true] %s2453_s21  ;;  %s2456_s23 = int_to_ptr.hbm [resolvable:$true] %s2455_s23 }
 0x4e0   : > { %v2364_v7 = vpack.c.bf16 %v2357_v38, %v2344_v10  ;;  %v2376_v41 = vmul.f32 %v2357_v38, %v2176_v50  ;;  %v2400_v46 = vadd.f32 %v2399_v30, %v2393_v2  ;;  %s2413_s25 = scalar_lea.sflag [#allocation12], %s3302_s1  ;;  %s3020_s29 = sshra.s32 %s2456_s23, 4  ;;  %s3021_s29 = int_to_ptr.hbm [resolvable:$true] %s3020_s29 }
 0x4e1   : > { %s3022_s26 = scalar_lea.hbm %s3021_s29, 32  ;;  %s3026_s13 = scalar_lea.hbm %s5201_s7, 64 }
 0x4e2   : > { %2368 = vst [vmem:[%s5113_s28 + $0x18] sm:$0xff] %v2364_v7  ;;  %v2394_v24 = vmul.f32 %v2376_v41, %v2357_v38  ;;  %v2384_v44 = vadd.f32 %v2383_v32, %v2376_v41  ;;  %p3023_p4 = scmp.ne.s32.totalorder %s3021_s29, %s3022_s26  ;;  %p3027_p6 = scmp.lt.s32.totalorder %s3021_s29, %s5201_s7 }
 0x4e3   : > { %p3028_p7 = scmp.lt.s32.totalorder %s3026_s13, %s3022_s26 }
 0x4e4   : > { %p3024_p5 = pnand %p3023_p4, %p3264_p0 }
 0x4e5   : > { %p3029_p8 = por %p3028_p7, %p3027_p6 }
 0x4e6   : > { %p3025_p1 = pneg %p3024_p5 }
 0x4e8   : > { %p3030_p9 = pnand %p3029_p8, %p3025_p1 }
 0x4ea   : > { %3033 = shalt.err (!%p3030_p9)
}
 0x4eb   : > { %2756 = dma.vmem_to_hbm [thread:$0]  (%p3264_p0), %s2454_s21, 512, %s2456_s23, %s2413_s25   ;;  %2385 = vadd.xlane.f32.xlu1 %v2384_v44  ;;  %v2401_v20 = vadd.f32 %v2400_v46, %v2394_v24  ;;  %v2359_v50 = vpop.f32.mrf.mxu3  ;;  %vm552_vm2 = vcmask 15360   ;;  %v5631_v16 = vmov 0.0   ;;  %vm2220_vm9 = vcmask 7168  }
 0x4ec   : > { %p539_p10 = scmp.lt.s32.totalorder %s3092_s12, 1  ;;  %s5629_s9 = sld [smem:[#allocation147_spill]] }
 0x4ed   : > { %2402 = vadd.xlane.f32.xlu2 %v2401_v20  ;;  %s5630_s19 = sld [smem:[#allocation148_spill]] }
 0x4ee   : > { %s5644_s12 = smov (!%p539_p10, %s3092_s12), 1 }
 0x4ef   : > { %s2712_s1 = sshll.u32 %s5644_s12, 3 }
 0x4f2   : > { %s542_s14 = scalar_lea.vmem %s5629_s9, %s2712_s1 }
 0x4f3   : > { %s546_s20 = scalar_lea.vmem %s5630_s19, %s2712_s1  ;;  %553 = vst.msk [vmem:[%s542_s14] sm:$0xff] %vm552_vm2, %v5631_v16 }
 0x4f4   : > { %554 = vst.msk [vmem:[%s546_s20] sm:$0xff] %vm552_vm2, %v5631_v16 }
 0x4fa   : > { %v2193_v0 = vld [vmem:[%s542_s14] sm:$0xff] }
 0x4fb   : > { %v2377_v59 = vld [vmem:[%s546_s20] sm:$0xff] }
 0x537   : > { %v2202_v5 = vpop.xlane.xlu2 %2201 }
 0x539   : > { %v2219_v11 = vpop.xlane.xlu0 %2218 }
 0x53a   : > { %v2221_v43 = vsel %vm2220_vm9, %v2202_v5, %v2219_v11 }
 0x53b   : > { %v2222_v25 = vadd.f32 %v2221_v43, %v2193_v0 }
 0x53d   : > { %2224 = vst.msk [vmem:[%s542_s14] sm:$0xff] %vm552_vm2, %v2222_v25 }
 0x55e   : > { %v2386_v52 = vpop.xlane.xlu1 %2385 }
 0x560   : > { %v2403_v51 = vpop.xlane.xlu2 %2402 }
 0x561   : > { %v2404_v45 = vsel %vm2220_vm9, %v2386_v52, %v2403_v51 }
 0x562   : > { %v2405_v3 = vadd.f32 %v2404_v45, %v2377_v59 }
 0x564   : > { %2406 = vst.msk [vmem:[%s546_s20] sm:$0xff] %vm552_vm2, %v2405_v3 }
 0x565 PF: > { %s5632_s12 = sld [smem:[#allocation18_spill]]  ;;  %p2774_p0 = pnand %p2695_p3, %p3268_p2 }
 0x566   : > { %s5634_s22 = sld [smem:[#allocation21_spill]] }
 0x567   : > { %p2775_p11 = pneg %p2774_p0 }
 0x56b   : > { %s2473_s17 = sand.u32 1, %s5632_s12  }
 0x56c   : > { %s2474_s16 = scalar_lea.sflag [#allocation4], %s2473_s17 }
 0x56d   : > { %3071 = dma.done.wait (%p2775_p11), %s2474_s16, 512  }
 0x56e   : > { %3073 = vsyncadd (%p2775_p11), %s2474_s16, 4294966784  ;;  %s2484_s21 = scalar_lea.sflag [#allocation12], %s2473_s17 }
 0x56f   : > { %3075 = dma.done.wait (%p2775_p11), %s2484_s21, 512  }
 0x570   : > { %3077 = vsyncadd (%p2775_p11), %s2484_s21, 4294966784  ;;  %s33_s14 = sadd.s32 1, %s5634_s22   ;;  %s5635_s23 = sld [smem:[#allocation19_spill]] }
 0x571   : > { %p30_p12 = scmp.ge.s32.totalorder %s33_s14, 4   ;;  %s5636_s11 = sld [smem:[#allocation23_spill]] }
 0x572   : > { %s5637_s12 = sld [smem:[#allocation20_spill]]  ;;  %s5639_s30 = smov %s3084_s10 }
 0x573   : > { %s5638_s13 = sld [smem:[#allocation22_spill]]  ;;  %32 = sbr.rel (!%p30_p12) target bundleno = 16 (0x10), region = 165 }
 0x576   : > { %s5640_s10 = smov %s5635_s23 }
 0x578   :  { %2504 = vsyncpa [#allocation3], 1 }
 0x579   :  { %2506 = vsyncpa [#allocation3 + $0x1], 1 }
 0x57a   :  { %2507 = vsyncpa [#allocation6], 1 }
 0x57b   :  { %2509 = vsyncpa [#allocation6 + $0x1], 1 }
 0x57c   :  { %2510 = vsyncpa [#allocation9], 1 }
 0x57d   :  { %2511 = vsyncpa [#allocation4], 1 }
 0x57e   :  { %2513 = vsyncpa [#allocation4 + $0x1], 1 }
 0x57f   :  { %2514 = vsyncpa [#allocation12], 1 }
 0x580   :  { %2516 = vsyncpa [#allocation12 + $0x1], 1 }

</bundles_post_ra>
